<compile_context>
chip_gen: v7x
topology: tpu7x:2x2x1
jax: 0.10.0
libtpu: 0.0.40
codegen_flags: <defaults>
</compile_context>

<pallas_src>
import jax
import jax.numpy as jnp
from jax.experimental import pallas as pl
from jax.experimental.pallas import tpu as pltpu


def _dot_attention_kernel(text_ref, imgs_ref, wt_ref, wi_ref, out_ref):
    # text_ref : (TB, text_dim)      VMEM
    # imgs_ref : (TB, K, imgs_dim)   VMEM
    # wt_ref   : (text_dim, hidden)  VMEM (grid-invariant)
    # wi_ref   : (imgs_dim, hidden)  VMEM (grid-invariant)
    # out_ref  : (TB, K)             VMEM
    tb, k, imgs_dim = imgs_ref.shape

    # Text projection for all TB rows:  (TB, text_dim) @ (text_dim, hidden)  [MXU]
    t_h = jnp.dot(text_ref[...], wt_ref[...], preferred_element_type=jnp.float32)

    # Fused image projection over all TB*K candidates in a single matmul:
    # (TB*K, imgs_dim) @ (imgs_dim, hidden)                                  [MXU]
    i_flat = imgs_ref[...].reshape(tb * k, imgs_dim)
    i_h = jnp.dot(i_flat, wi_ref[...], preferred_element_type=jnp.float32)
    i_h = i_h.reshape(tb, k, -1)                      # (TB, K, hidden)

    # scores[b, j] = <i_h[b, j, :], t_h[b, :]>  -- contract hidden without
    # materializing any transpose (VPU multiply + XLU lane reduction).
    s = jnp.sum(i_h * t_h[:, None, :], axis=-1)       # (TB, K)

    out_ref[...] = jnp.tanh(s).astype(out_ref.dtype)


def dot_attention(text_feats, imgs_feats, w_text, w_imgs, *, tb=32):
    """
    text_feats: [B, L, text_dim]
    imgs_feats: [B, K, imgs_dim]
    w_text:     [hidden, text_dim]   (PyTorch nn.Linear layout)
    w_imgs:     [hidden, imgs_dim]
    returns scores: [B, K]
    """
    B, L, text_dim = text_feats.shape
    _, K, imgs_dim = imgs_feats.shape
    hidden = w_text.shape[0]

    # Glue: take last LSTM output & pre-transpose weights so kernel does x @ W.
    text_last = text_feats[:, -1, :]          # [B, text_dim]
    wt = jnp.transpose(w_text)                # [text_dim, hidden]
    wi = jnp.transpose(w_imgs)                # [imgs_dim, hidden]

    # Pad batch to a multiple of the batch tile TB (zeros -> sliced off below).
    nb = pl.cdiv(B, tb)
    bp = nb * tb
    if bp != B:
        text_last = jnp.pad(text_last, ((0, bp - B), (0, 0)))
        imgs_feats = jnp.pad(imgs_feats, ((0, bp - B), (0, 0), (0, 0)))

    grid_spec = pltpu.PrefetchScalarGridSpec(
        num_scalar_prefetch=0,
        grid=(nb,),
        in_specs=[
            pl.BlockSpec((tb, text_dim), lambda b: (b, 0)),
            pl.BlockSpec((tb, K, imgs_dim), lambda b: (b, 0, 0)),
            pl.BlockSpec((text_dim, hidden), lambda b: (0, 0)),
            pl.BlockSpec((imgs_dim, hidden), lambda b: (0, 0)),
        ],
        out_specs=pl.BlockSpec((tb, K), lambda b: (b, 0)),
    )

    out = pl.pallas_call(
        _dot_attention_kernel,
        out_shape=jax.ShapeDtypeStruct((bp, K), jnp.float32),
        grid_spec=grid_spec,
        compiler_params=pltpu.CompilerParams(
            dimension_semantics=("parallel",)
        ),
    )(text_last, imgs_feats, wt, wi)

    return out[:B]


def _reference(text_feats, imgs_feats, w_text, w_imgs):
    # Pure-JAX reference mirroring the PyTorch forward (full-precision matmuls).
    hp = jax.lax.Precision.HIGHEST
    t = jnp.dot(text_feats[:, -1, :], w_text.T, precision=hp)       # [B, hidden]
    B, K, _ = imgs_feats.shape
    i = jnp.dot(imgs_feats.reshape(B * K, -1), w_imgs.T, precision=hp)
    i = i.reshape(B, K, -1)
    scores = jnp.einsum("bkh,bh->bk", i, t, precision=hp)
    return jnp.tanh(scores)


if __name__ == "__main__":
    # Shapes matching the module defaults (small problem overall).
    B, L, K = 2, 8, 8
    text_dim, imgs_dim, hidden_dim = 256, 1024, 512

    key = jax.random.PRNGKey(0)
    k1, k2, k3, k4 = jax.random.split(key, 4)

    text_feats = jax.random.normal(k1, (B, L, text_dim), dtype=jnp.float32)
    imgs_feats = jax.random.normal(k2, (B, K, imgs_dim), dtype=jnp.float32)

    # Deterministic parameter init (nn.Linear weight shapes: [out, in], no bias),
    # scaled so scores stay mostly in tanh's non-saturated region.
    w_text = jax.random.normal(k3, (hidden_dim, text_dim), dtype=jnp.float32) * 0.01
    w_imgs = jax.random.normal(k4, (hidden_dim, imgs_dim), dtype=jnp.float32) * 0.005

    out = dot_attention(text_feats, imgs_feats, w_text, w_imgs)
    out = jax.block_until_ready(out)

    ref = _reference(text_feats, imgs_feats, w_text, w_imgs)
    assert out.shape == (B, K), out.shape
    assert jnp.allclose(out, ref, atol=2e-3, rtol=2e-3), "mismatch vs reference"

    print("KERNEL_OK")
</pallas_src>

<mosaic_0001>
module attributes {stable_mosaic.version = 11 : i64} {
  func.func @_dot_attention_kernel(%arg0: i32, %arg1: memref<32x256xf32, #tpu.memory_space<vmem>>, %arg2: memref<32x8x1024xf32, #tpu.memory_space<vmem>>, %arg3: memref<256x512xf32, #tpu.memory_space<vmem>>, %arg4: memref<1024x512xf32, #tpu.memory_space<vmem>>, %arg5: memref<32x8xf32, #tpu.memory_space<vmem>>) attributes {dimension_semantics = [#tpu.dimension_semantics<parallel>], iteration_bounds = array<i64: 1>, scalar_prefetch = 0 : i64, scratch_operands = 0 : i64, tpu.core_type = #tpu.core_type<tc>, window_params = [{transform_indices = @transform_0, window_bounds = array<i64: 32, 256>}, {transform_indices = @transform_1, window_bounds = array<i64: 32, 8, 1024>}, {pipeline_mode = #tpu.pipeline_mode<synchronous>, transform_indices = @transform_2, window_bounds = array<i64: 256, 512>}, {pipeline_mode = #tpu.pipeline_mode<synchronous>, transform_indices = @transform_3, window_bounds = array<i64: 1024, 512>}, {transform_indices = @transform_4, window_bounds = array<i64: 32, 8>}]} {
    %c0 = arith.constant 0 : index
    %c0_0 = arith.constant 0 : index
    %0 = vector.load %arg1[%c0, %c0_0] : memref<32x256xf32, #tpu.memory_space<vmem>>, vector<32x256xf32>
    %c0_1 = arith.constant 0 : index
    %c0_2 = arith.constant 0 : index
    %1 = vector.load %arg3[%c0_1, %c0_2] : memref<256x512xf32, #tpu.memory_space<vmem>>, vector<256x512xf32>
    %cst = arith.constant dense<0.000000e+00> : vector<32x512xf32>
    %2 = tpu.matmul %0, %1, %cst {dimension_numbers = #tpu.dot_dimension_numbers<[1], [0], [0], [1], [0, 0, 1, 1], [], []>} : vector<32x256xf32>, vector<256x512xf32>, vector<32x512xf32> -> vector<32x512xf32>
    %c0_3 = arith.constant 0 : index
    %c0_4 = arith.constant 0 : index
    %c0_5 = arith.constant 0 : index
    %3 = vector.load %arg2[%c0_3, %c0_4, %c0_5] : memref<32x8x1024xf32, #tpu.memory_space<vmem>>, vector<32x8x1024xf32>
    %4 = vector.shape_cast %3 : vector<32x8x1024xf32> to vector<256x1024xf32>
    %c0_6 = arith.constant 0 : index
    %c0_7 = arith.constant 0 : index
    %5 = vector.load %arg4[%c0_6, %c0_7] : memref<1024x512xf32, #tpu.memory_space<vmem>>, vector<1024x512xf32>
    %cst_8 = arith.constant dense<0.000000e+00> : vector<256x512xf32>
    %6 = tpu.matmul %4, %5, %cst_8 {dimension_numbers = #tpu.dot_dimension_numbers<[1], [0], [0], [1], [0, 0, 1, 1], [], []>} : vector<256x1024xf32>, vector<1024x512xf32>, vector<256x512xf32> -> vector<256x512xf32>
    %7 = vector.shape_cast %6 : vector<256x512xf32> to vector<32x8x512xf32>
    %8 = vector.shape_cast %2 : vector<32x512xf32> to vector<32x1x512xf32>
    %9 = vector.broadcast %8 : vector<32x1x512xf32> to vector<32x8x512xf32>
    %10 = arith.mulf %7, %9 : vector<32x8x512xf32>
    %cst_9 = arith.constant dense<0.000000e+00> : vector<32x8xf32>
    %11 = vector.multi_reduction <add>, %10, %cst_9 [2] : vector<32x8x512xf32> to vector<32x8xf32>
    %12 = math.tanh %11 : vector<32x8xf32>
    %c0_10 = arith.constant 0 : index
    %c0_11 = arith.constant 0 : index
    %13 = vector.load %arg5[%c0_10, %c0_11] : memref<32x8xf32, #tpu.memory_space<vmem>>, vector<32x8xf32>
    tpu.vector_store %arg5[%c0_10, %c0_11], %12 {strides = array<i32>} : memref<32x8xf32, #tpu.memory_space<vmem>>, vector<32x8xf32>,
    return
  }
  func.func @transform_0(%arg0: i32) -> (i32, i32) {
    %c0_i32 = arith.constant 0 : i32
    %c0_i32_0 = arith.constant 0 : i32
    return %arg0, %c0_i32 : i32, i32
  }
  func.func @transform_1(%arg0: i32) -> (i32, i32, i32) {
    %c0_i32 = arith.constant 0 : i32
    %c0_i32_0 = arith.constant 0 : i32
    %c0_i32_1 = arith.constant 0 : i32
    return %arg0, %c0_i32, %c0_i32_0 : i32, i32, i32
  }
  func.func @transform_2(%arg0: i32) -> (i32, i32) {
    %c0_i32 = arith.constant 0 : i32
    %c0_i32_0 = arith.constant 0 : i32
    %c0_i32_1 = arith.constant 0 : i32
    return %c0_i32, %c0_i32_0 : i32, i32
  }
  func.func @transform_3(%arg0: i32) -> (i32, i32) {
    %c0_i32 = arith.constant 0 : i32
    %c0_i32_0 = arith.constant 0 : i32
    %c0_i32_1 = arith.constant 0 : i32
    return %c0_i32, %c0_i32_0 : i32, i32
  }
  func.func @transform_4(%arg0: i32) -> (i32, i32) {
    %c0_i32 = arith.constant 0 : i32
    %c0_i32_0 = arith.constant 0 : i32
    return %arg0, %c0_i32 : i32, i32
  }
}

</mosaic_0001>

<bundles_post_ra>
// kernel: tpu_custom_call.1
= control target key start
LH: loop header
LB: loop body
LE: loop exit
PB: predicated region body
PF: predicated region fallthrough
CT: control target
= control target key end

     0   :  { %9 = vsyncpa [#allocation3], 0  ;;  %s6368_s0 = inlined_call_operand.hbm [shape: f32[32,256], index: 0, kind: input, shape index: {}]   ;;  %s6369_s1 = inlined_call_operand.hbm [shape: f32[32,8,1024], index: 1, kind: input, shape index: {}]   ;;  %s6370_s2 = inlined_call_operand.hbm [shape: f32[256,512], index: 2, kind: input, shape index: {}]   ;;  %s6371_s3 = inlined_call_operand.hbm [shape: f32[1024,512], index: 3, kind: input, shape index: {}]   ;;  %s6372_s4 = inlined_call_operand.vmem [shape: f32[32,8], index: 4, kind: output, shape index: {}]  }
   0x1   :  { %10 = vsyncpa [#allocation5], 0 }
   0x2   :  { %11 = vsyncpa [#allocation8], 0  ;;  %s5864_s15 = smov [#allocation4]   ;;  %s5770_s19 = scalar_lea.hbm %s6369_s1, 32768 }
   0x3   :  { %s29_s16 = sshll.u32 %s5864_s15, 4  ;;  %p5771_p0 = scmp.ne.s32.totalorder %s6369_s1, %s5770_s19  ;;  %s30_s16 = int_to_ptr.vmem [resolvable:$true] %s29_s16 }
   0x4   :  { %p5774_p1 = scmp.lt.u32.totalorder %s5770_s19, %s6369_s1 }
   0x6   :  { %p5776_p2 = pnand %p5774_p1, %p5771_p0 }
   0x8   :  { %5779 = shalt.err (!%p5776_p2)
}
   0x9   :  { %s5780_s24 = scalar_lea.vmem %s30_s16, 32768  ;;  %p5785_p4 = scmp.lt.s32.totalorder %s30_s16, %s30_s16 }
   0xa   :  { %p5781_p3 = scmp.ne.s32.totalorder %s30_s16, %s5780_s24  ;;  %p5786_p5 = scmp.lt.s32.totalorder %s5780_s24, %s5780_s24 }
   0xc   :  { %p5787_p6 = por %p5786_p5, %p5785_p4 }
   0xe   :  { %p5788_p7 = pnand %p5787_p6, %p5781_p3 }
  0x10   :  { %5791 = shalt.err (!%p5788_p7)
}
  0x11   :  { %s5865_s25 = smov 1024   ;;  %s5866_s26 = smov 64  }
  0x12   :  { %35 = dma.hbm_to_vmem [thread:$0]  %s6369_s1, 32768, %s30_s16, [#allocation5], %s5865_s25, %s5865_s25, %s5866_s26  }
  0x13   :  { %s5867_s29 = smov [#allocation2]   ;;  %s5792_s7 = scalar_lea.hbm %s6368_s0, 1024 }
  0x14   :  { %s17_s30 = sshll.u32 %s5867_s29, 4  ;;  %p5793_p8 = scmp.ne.s32.totalorder %s6368_s0, %s5792_s7  ;;  %s18_s30 = int_to_ptr.vmem [resolvable:$true] %s17_s30 }
  0x15   :  { %p5796_p9 = scmp.lt.u32.totalorder %s5792_s7, %s6368_s0 }
  0x17   :  { %p5798_p10 = pnand %p5796_p9, %p5793_p8 }
  0x19   :  { %5801 = shalt.err (!%p5798_p10)
}
  0x1a   :  { %s5802_s12 = scalar_lea.vmem %s18_s30, 1024  ;;  %p5807_p12 = scmp.lt.s32.totalorder %s18_s30, %s18_s30 }
  0x1b   :  { %p5803_p11 = scmp.ne.s32.totalorder %s18_s30, %s5802_s12  ;;  %p5808_p13 = scmp.lt.s32.totalorder %s5802_s12, %s5802_s12 }
  0x1d   :  { %p5809_p0 = por %p5808_p13, %p5807_p12 }
  0x1f   :  { %p5810_p1 = pnand %p5809_p0, %p5803_p11 }
  0x21   :  { %5813 = shalt.err (!%p5810_p1)
}
  0x22   :  { %s5868_s1 = smov 256   ;;  %s5869_s13 = smov 16  }
  0x23   :  { %23 = dma.hbm_to_vmem [thread:$0]  %s6368_s0, 1024, %s18_s30, [#allocation3], %s5868_s1, %s5868_s1, %s5869_s13  }
  0x24   :  { %s5870_s16 = smov [#allocation6]   ;;  %s5814_s20 = scalar_lea.hbm %s6370_s2, 16384 }
  0x25   :  { %s41_s17 = sshll.u32 %s5870_s16, 4  ;;  %p5815_p2 = scmp.ne.s32.totalorder %s6370_s2, %s5814_s20  ;;  %s42_s17 = int_to_ptr.vmem [resolvable:$true] %s41_s17 }
  0x26   :  { %p5818_p3 = scmp.lt.u32.totalorder %s5814_s20, %s6370_s2 }
  0x28   :  { %p5820_p4 = pnand %p5818_p3, %p5815_p2 }
  0x2a   :  { %5823 = shalt.err (!%p5820_p4)
}
  0x2b   :  { %s5824_s25 = scalar_lea.vmem %s42_s17, 16384  ;;  %p5829_p6 = scmp.lt.s32.totalorder %s42_s17, %s42_s17 }
  0x2c   :  { %p5825_p5 = scmp.ne.s32.totalorder %s42_s17, %s5824_s25  ;;  %p5830_p7 = scmp.lt.s32.totalorder %s5824_s25, %s5824_s25 }
  0x2e   :  { %p5831_p8 = por %p5830_p7, %p5829_p6 }
  0x30   :  { %p5832_p9 = pnand %p5831_p8, %p5825_p5 }
  0x32   :  { %5835 = shalt.err (!%p5832_p9)
}
  0x33   :  { %s5871_s0 = smov 512   ;;  %s5872_s26 = smov 32  }
  0x34   :  { %47 = dma.hbm_to_vmem [thread:$0]  %s6370_s2, 16384, %s42_s17, [#allocation5], %s5871_s0, %s5871_s0, %s5872_s26  }
  0x35   :  { %s5873_s29 = smov [#allocation7]   ;;  %s5836_s7 = scalar_lea.hbm %s6371_s3, 65536 }
  0x36   :  { %s53_s30 = sshll.u32 %s5873_s29, 4  ;;  %p5837_p10 = scmp.ne.s32.totalorder %s6371_s3, %s5836_s7  ;;  %s54_s30 = int_to_ptr.vmem [resolvable:$true] %s53_s30 }
  0x37   :  { %p5840_p11 = scmp.lt.u32.totalorder %s5836_s7, %s6371_s3 }
  0x39   :  { %p5842_p12 = pnand %p5840_p11, %p5837_p10 }
  0x3b   :  { %5845 = shalt.err (!%p5842_p12)
}
  0x3c   :  { %s5846_s12 = scalar_lea.vmem %s54_s30, 65536  ;;  %p5851_p0 = scmp.lt.s32.totalorder %s54_s30, %s54_s30 }
  0x3d   :  { %p5847_p13 = scmp.ne.s32.totalorder %s54_s30, %s5846_s12  ;;  %p5852_p1 = scmp.lt.s32.totalorder %s5846_s12, %s5846_s12 }
  0x3f   :  { %p5853_p2 = por %p5852_p1, %p5851_p0 }
  0x41   :  { %p5854_p3 = pnand %p5853_p2, %p5847_p13 }
  0x43   :  { %5857 = shalt.err (!%p5854_p3)
}
  0x44   :  { %59 = dma.hbm_to_vmem [thread:$0]  %s6371_s3, 65536, %s54_s30, [#allocation8], %s5871_s0, %s5871_s0, %s5872_s26  }
  0x45   :  { %5858 = dma.done.wait [#allocation3], 1024  }
  0x46   :  { %5859 = vsyncadd [#allocation3], 4294966272 }
  0x47   :  { %5860 = dma.done.wait [#allocation5], 49152  }
  0x48   :  { %5861 = vsyncadd [#allocation5], 4294918144 }
  0x49   :  { %5862 = dma.done.wait [#allocation8], 65536  }
  0x4a   :  { %5863 = vsyncadd [#allocation8], 4294901760  ;;  %v81_v0 = vld [vmem:[#allocation6 + $0x8] sm:$0xff]  ;;  %v83_v2 = vld [vmem:[#allocation6 + $0x18] sm:$0xff]  ;;  %vm4620_vm0 = vcmask 1041409   ;;  %vm4622_vm1 = vcmask 1042434  }
  0x4b   :  { %v85_v1 = vld [vmem:[#allocation6 + $0x28] sm:$0xff]  ;;  %v87_v4 = vld [vmem:[#allocation6 + $0x38] sm:$0xff]  ;;  %v80_v5 = vld [vmem:[#allocation6] sm:$0xff]  ;;  %vm4624_vm2 = vcmask 1043459   ;;  %vm4626_vm3 = vcmask 1044484   ;;  %vm4628_vm4 = vcmask 1045509  }
  0x4c   :  { %v4671_v3 = vpack.c.bf16 %v85_v1, %v81_v0  ;;  %v84_v6 = vld [vmem:[#allocation6 + $0x20] sm:$0xff]  ;;  %v4735_v7 = vpack.c.bf16 %v87_v4, %v83_v2  ;;  %v82_v9 = vld [vmem:[#allocation6 + $0x10] sm:$0xff]  ;;  %v89_v11 = vld [vmem:[#allocation6 + $0x48] sm:$0xff]  ;;  %vm4632_vm5 = vcmask 1047559   ;;  %vm4630_vm6 = vcmask 1046534  }
  0x4d   :  { %v4673_v8 = vpack.c.bf16 %v84_v6, %v80_v5  ;;  %v86_v10 = vld [vmem:[#allocation6 + $0x30] sm:$0xff]  ;;  %v93_v13 = vld [vmem:[#allocation6 + $0x68] sm:$0xff]  ;;  %v91_v14 = vld [vmem:[#allocation6 + $0x58] sm:$0xff]  ;;  %vm4659_vm7 = vcmask 64512  }
  0x4e   :  { %4672 = vmatprep.subr.bf16.mxu0 %v4671_v3  ;;  %v4737_v12 = vpack.c.bf16 %v86_v10, %v82_v9  ;;  %v95_v15 = vld [vmem:[#allocation6 + $0x78] sm:$0xff]  ;;  %4736 = vmatprep.subr.bf16.mxu1 %v4735_v7  ;;  %v4675_v16 = vpack.c.bf16 %v93_v13, %v89_v11  ;;  %v88_v18 = vld [vmem:[#allocation6 + $0x40] sm:$0xff]  ;;  %v90_v20 = vld [vmem:[#allocation6 + $0x50] sm:$0xff] }
  0x4f   :  { %4674 = vmatpush1.bf16.msra.mxu0 %v4673_v8  ;;  %v4739_v17 = vpack.c.bf16 %v95_v15, %v91_v14  ;;  %v92_v19 = vld [vmem:[#allocation6 + $0x60] sm:$0xff]  ;;  %v94_v22 = vld [vmem:[#allocation6 + $0x70] sm:$0xff]  ;;  %v97_v23 = vld [vmem:[#allocation6 + $0x88] sm:$0xff] }
  0x50   :  { %4738 = vmatpush1.bf16.msra.mxu1 %v4737_v12  ;;  %v4677_v21 = vpack.c.bf16 %v92_v19, %v88_v18  ;;  %v101_v24 = vld [vmem:[#allocation6 + $0xa8] sm:$0xff]  ;;  %4676 = vmatprep.subr.bf16.mxu0 %v4675_v16  ;;  %v4741_v25 = vpack.c.bf16 %v94_v22, %v90_v20  ;;  %v99_v27 = vld [vmem:[#allocation6 + $0x98] sm:$0xff]  ;;  %v96_v29 = vld [vmem:[#allocation6 + $0x80] sm:$0xff] }
  0x51   :  { %4740 = vmatprep.subr.bf16.mxu1 %v4739_v17  ;;  %v4679_v26 = vpack.c.bf16 %v101_v24, %v97_v23  ;;  %v103_v28 = vld [vmem:[#allocation6 + $0xb8] sm:$0xff]  ;;  %v100_v31 = vld [vmem:[#allocation6 + $0xa0] sm:$0xff]  ;;  %v98_v32 = vld [vmem:[#allocation6 + $0x90] sm:$0xff] }
  0x52   :  { %v4743_v30 = vpack.c.bf16 %v103_v28, %v99_v27  ;;  %v102_v33 = vld [vmem:[#allocation6 + $0xb0] sm:$0xff]  ;;  %v4681_v34 = vpack.c.bf16 %v100_v31, %v96_v29  ;;  %v105_v35 = vld [vmem:[#allocation6 + $0xc8] sm:$0xff]  ;;  %v107_v37 = vld [vmem:[#allocation6 + $0xd8] sm:$0xff] }
  0x53   :  { %4678 = vmatpush1.bf16.msra.mxu0 %v4677_v21  ;;  %v109_v36 = vld [vmem:[#allocation6 + $0xe8] sm:$0xff]  ;;  %v4745_v38 = vpack.c.bf16 %v102_v33, %v98_v32  ;;  %v111_v40 = vld [vmem:[#allocation6 + $0xf8] sm:$0xff]  ;;  %v104_v41 = vld [vmem:[#allocation6 + $0xc0] sm:$0xff] }
  0x54   :  { %4742 = vmatpush1.bf16.msra.mxu1 %v4741_v25  ;;  %4680 = vmatprep.subr.bf16.mxu0 %v4679_v26  ;;  %v4683_v39 = vpack.c.bf16 %v109_v36, %v105_v35  ;;  %v108_v42 = vld [vmem:[#allocation6 + $0xe0] sm:$0xff]  ;;  %v4747_v43 = vpack.c.bf16 %v111_v40, %v107_v37  ;;  %v106_v44 = vld [vmem:[#allocation6 + $0xd0] sm:$0xff]  ;;  %v113_v46 = vld [vmem:[#allocation6 + $0x108] sm:$0xff] }
  0x55   :  { %4744 = vmatprep.subr.bf16.mxu1 %v4743_v30  ;;  %v110_v45 = vld [vmem:[#allocation6 + $0xf0] sm:$0xff]  ;;  %v117_v47 = vld [vmem:[#allocation6 + $0x128] sm:$0xff]  ;;  %v115_v48 = vld [vmem:[#allocation6 + $0x118] sm:$0xff]  ;;  %v4685_v50 = vpack.c.bf16 %v108_v42, %v104_v41 }
  0x56   :  { %v119_v49 = vld [vmem:[#allocation6 + $0x138] sm:$0xff]  ;;  %v4749_v51 = vpack.c.bf16 %v110_v45, %v106_v44  ;;  %v4687_v52 = vpack.c.bf16 %v117_v47, %v113_v46  ;;  %v112_v53 = vld [vmem:[#allocation6 + $0x100] sm:$0xff]  ;;  %v114_v55 = vld [vmem:[#allocation6 + $0x110] sm:$0xff] }
  0x57   :  { %4682 = vmatpush1.bf16.msra.mxu0 %v4681_v34  ;;  %v116_v54 = vld [vmem:[#allocation6 + $0x120] sm:$0xff]  ;;  %v4751_v56 = vpack.c.bf16 %v119_v49, %v115_v48  ;;  %v118_v57 = vld [vmem:[#allocation6 + $0x130] sm:$0xff]  ;;  %v121_v58 = vld [vmem:[#allocation6 + $0x148] sm:$0xff] }
  0x58   :  { %4746 = vmatpush1.bf16.msra.mxu1 %v4745_v38  ;;  %4684 = vmatprep.subr.bf16.mxu0 %v4683_v39  ;;  %v125_v59 = vld [vmem:[#allocation6 + $0x168] sm:$0xff]  ;;  %v123_v60 = vld [vmem:[#allocation6 + $0x158] sm:$0xff]  ;;  %v4689_v62 = vpack.c.bf16 %v116_v54, %v112_v53  ;;  %v4753_v63 = vpack.c.bf16 %v118_v57, %v114_v55  ;;  %v120_v1 = vld [vmem:[#allocation6 + $0x140] sm:$0xff] }
  0x59   :  { %4748 = vmatprep.subr.bf16.mxu1 %v4747_v43  ;;  %v127_v61 = vld [vmem:[#allocation6 + $0x178] sm:$0xff]  ;;  %v4691_v0 = vpack.c.bf16 %v125_v59, %v121_v58  ;;  %v124_v2 = vld [vmem:[#allocation6 + $0x160] sm:$0xff]  ;;  %v122_v3 = vld [vmem:[#allocation6 + $0x150] sm:$0xff] }
  0x5a   :  { %v4755_v4 = vpack.c.bf16 %v127_v61, %v123_v60  ;;  %v126_v5 = vld [vmem:[#allocation6 + $0x170] sm:$0xff]  ;;  %v129_v6 = vld [vmem:[#allocation6 + $0x188] sm:$0xff]  ;;  %v131_v8 = vld [vmem:[#allocation6 + $0x198] sm:$0xff]  ;;  %v4693_v10 = vpack.c.bf16 %v124_v2, %v120_v1 }
  0x5b   :  { %4686 = vmatpush1.bf16.msra.mxu0 %v4685_v50  ;;  %v133_v7 = vld [vmem:[#allocation6 + $0x1a8] sm:$0xff]  ;;  %v135_v9 = vld [vmem:[#allocation6 + $0x1b8] sm:$0xff]  ;;  %v4757_v11 = vpack.c.bf16 %v126_v5, %v122_v3  ;;  %v128_v13 = vld [vmem:[#allocation6 + $0x180] sm:$0xff] }
  0x5c   :  { %4750 = vmatpush1.bf16.msra.mxu1 %v4749_v51  ;;  %4688 = vmatprep.subr.bf16.mxu0 %v4687_v52  ;;  %v4695_v12 = vpack.c.bf16 %v133_v7, %v129_v6  ;;  %v132_v14 = vld [vmem:[#allocation6 + $0x1a0] sm:$0xff]  ;;  %v130_v15 = vld [vmem:[#allocation6 + $0x190] sm:$0xff]  ;;  %v4759_v16 = vpack.c.bf16 %v135_v9, %v131_v8  ;;  %v137_v18 = vld [vmem:[#allocation6 + $0x1c8] sm:$0xff] }
  0x5d   :  { %4752 = vmatprep.subr.bf16.mxu1 %v4751_v56  ;;  %v134_v17 = vld [vmem:[#allocation6 + $0x1b0] sm:$0xff]  ;;  %v141_v19 = vld [vmem:[#allocation6 + $0x1e8] sm:$0xff]  ;;  %v139_v20 = vld [vmem:[#allocation6 + $0x1d8] sm:$0xff]  ;;  %v4697_v22 = vpack.c.bf16 %v132_v14, %v128_v13 }
  0x5e   :  { %v143_v21 = vld [vmem:[#allocation6 + $0x1f8] sm:$0xff]  ;;  %v4761_v23 = vpack.c.bf16 %v134_v17, %v130_v15  ;;  %v4699_v24 = vpack.c.bf16 %v141_v19, %v137_v18  ;;  %v136_v25 = vld [vmem:[#allocation6 + $0x1c0] sm:$0xff]  ;;  %v138_v27 = vld [vmem:[#allocation6 + $0x1d0] sm:$0xff] }
  0x5f   :  { %4690 = vmatpush1.bf16.msra.mxu0 %v4689_v62  ;;  %v140_v26 = vld [vmem:[#allocation6 + $0x1e0] sm:$0xff]  ;;  %v4763_v28 = vpack.c.bf16 %v143_v21, %v139_v20  ;;  %v142_v29 = vld [vmem:[#allocation6 + $0x1f0] sm:$0xff]  ;;  %v145_v30 = vld [vmem:[#allocation6 + $0x208] sm:$0xff] }
  0x60   :  { %4754 = vmatpush1.bf16.msra.mxu1 %v4753_v63  ;;  %4692 = vmatprep.subr.bf16.mxu0 %v4691_v0  ;;  %v149_v31 = vld [vmem:[#allocation6 + $0x228] sm:$0xff]  ;;  %v147_v32 = vld [vmem:[#allocation6 + $0x218] sm:$0xff]  ;;  %v4701_v34 = vpack.c.bf16 %v140_v26, %v136_v25  ;;  %v4765_v35 = vpack.c.bf16 %v142_v29, %v138_v27  ;;  %v144_v37 = vld [vmem:[#allocation6 + $0x200] sm:$0xff] }
  0x61   :  { %4756 = vmatprep.subr.bf16.mxu1 %v4755_v4  ;;  %v151_v33 = vld [vmem:[#allocation6 + $0x238] sm:$0xff]  ;;  %v4703_v36 = vpack.c.bf16 %v149_v31, %v145_v30  ;;  %v148_v38 = vld [vmem:[#allocation6 + $0x220] sm:$0xff]  ;;  %v146_v39 = vld [vmem:[#allocation6 + $0x210] sm:$0xff] }
  0x62   :  { %v4767_v40 = vpack.c.bf16 %v151_v33, %v147_v32  ;;  %v150_v41 = vld [vmem:[#allocation6 + $0x230] sm:$0xff]  ;;  %v153_v42 = vld [vmem:[#allocation6 + $0x248] sm:$0xff]  ;;  %v155_v44 = vld [vmem:[#allocation6 + $0x258] sm:$0xff]  ;;  %v4705_v46 = vpack.c.bf16 %v148_v38, %v144_v37 }
  0x63   :  { %4694 = vmatpush1.bf16.msra.mxu0 %v4693_v10  ;;  %v157_v43 = vld [vmem:[#allocation6 + $0x268] sm:$0xff]  ;;  %v159_v45 = vld [vmem:[#allocation6 + $0x278] sm:$0xff]  ;;  %v4769_v47 = vpack.c.bf16 %v150_v41, %v146_v39  ;;  %v152_v49 = vld [vmem:[#allocation6 + $0x240] sm:$0xff] }
  0x64   :  { %4758 = vmatpush1.bf16.msra.mxu1 %v4757_v11  ;;  %4696 = vmatprep.subr.bf16.mxu0 %v4695_v12  ;;  %v4707_v48 = vpack.c.bf16 %v157_v43, %v153_v42  ;;  %v156_v50 = vld [vmem:[#allocation6 + $0x260] sm:$0xff]  ;;  %v154_v51 = vld [vmem:[#allocation6 + $0x250] sm:$0xff]  ;;  %v4771_v52 = vpack.c.bf16 %v159_v45, %v155_v44  ;;  %v161_v54 = vld [vmem:[#allocation6 + $0x288] sm:$0xff] }
  0x65   :  { %4760 = vmatprep.subr.bf16.mxu1 %v4759_v16  ;;  %v158_v53 = vld [vmem:[#allocation6 + $0x270] sm:$0xff]  ;;  %v165_v55 = vld [vmem:[#allocation6 + $0x2a8] sm:$0xff]  ;;  %v163_v56 = vld [vmem:[#allocation6 + $0x298] sm:$0xff]  ;;  %v4709_v58 = vpack.c.bf16 %v156_v50, %v152_v49 }
  0x66   :  { %v167_v57 = vld [vmem:[#allocation6 + $0x2b8] sm:$0xff]  ;;  %v4773_v59 = vpack.c.bf16 %v158_v53, %v154_v51  ;;  %v4711_v60 = vpack.c.bf16 %v165_v55, %v161_v54  ;;  %v160_v61 = vld [vmem:[#allocation6 + $0x280] sm:$0xff]  ;;  %v162_v63 = vld [vmem:[#allocation6 + $0x290] sm:$0xff] }
  0x67   :  { %4698 = vmatpush1.bf16.msra.mxu0 %v4697_v22  ;;  %v164_v62 = vld [vmem:[#allocation6 + $0x2a0] sm:$0xff]  ;;  %v4775_v0 = vpack.c.bf16 %v167_v57, %v163_v56  ;;  %v166_v1 = vld [vmem:[#allocation6 + $0x2b0] sm:$0xff]  ;;  %v169_v2 = vld [vmem:[#allocation6 + $0x2c8] sm:$0xff] }
  0x68   :  { %4762 = vmatpush1.bf16.msra.mxu1 %v4761_v23  ;;  %4700 = vmatprep.subr.bf16.mxu0 %v4699_v24  ;;  %v173_v3 = vld [vmem:[#allocation6 + $0x2e8] sm:$0xff]  ;;  %v171_v4 = vld [vmem:[#allocation6 + $0x2d8] sm:$0xff]  ;;  %v4713_v6 = vpack.c.bf16 %v164_v62, %v160_v61  ;;  %v168_v7 = vld [vmem:[#allocation6 + $0x2c0] sm:$0xff]  ;;  %v4777_v8 = vpack.c.bf16 %v166_v1, %v162_v63 }
  0x69   :  { %4764 = vmatprep.subr.bf16.mxu1 %v4763_v28  ;;  %v175_v5 = vld [vmem:[#allocation6 + $0x2f8] sm:$0xff]  ;;  %v4715_v9 = vpack.c.bf16 %v173_v3, %v169_v2  ;;  %v172_v10 = vld [vmem:[#allocation6 + $0x2e0] sm:$0xff]  ;;  %v170_v11 = vld [vmem:[#allocation6 + $0x2d0] sm:$0xff] }
  0x6a   :  { %v174_v12 = vld [vmem:[#allocation6 + $0x2f0] sm:$0xff]  ;;  %v4779_v13 = vpack.c.bf16 %v175_v5, %v171_v4  ;;  %v177_v14 = vld [vmem:[#allocation6 + $0x308] sm:$0xff]  ;;  %v179_v17 = vld [vmem:[#allocation6 + $0x318] sm:$0xff]  ;;  %v4717_v19 = vpack.c.bf16 %v172_v10, %v168_v7 }
  0x6b   :  { %4702 = vmatpush1.bf16.msra.mxu0 %v4701_v34  ;;  %v181_v15 = vld [vmem:[#allocation6 + $0x328] sm:$0xff]  ;;  %v183_v18 = vld [vmem:[#allocation6 + $0x338] sm:$0xff]  ;;  %v4781_v20 = vpack.c.bf16 %v174_v12, %v170_v11  ;;  %v176_v22 = vld [vmem:[#allocation6 + $0x300] sm:$0xff] }
  0x6c   :  { %4766 = vmatpush1.bf16.msra.mxu1 %v4765_v35  ;;  %4704 = vmatprep.subr.bf16.mxu0 %v4703_v36  ;;  %v73_v16 = vld [vmem:[#allocation2 + $0x8] sm:$0xff]  ;;  %v4719_v21 = vpack.c.bf16 %v181_v15, %v177_v14  ;;  %v180_v23 = vld [vmem:[#allocation6 + $0x320] sm:$0xff]  ;;  %v178_v24 = vld [vmem:[#allocation6 + $0x310] sm:$0xff]  ;;  %v4783_v25 = vpack.c.bf16 %v183_v18, %v179_v17 }
  0x6d   :  { %4768 = vmatprep.subr.bf16.mxu1 %v4767_v40  ;;  %272 = vmatprep.mubr.f32.mxu0 %v73_v16  ;;  %v182_v26 = vld [vmem:[#allocation6 + $0x330] sm:$0xff]  ;;  %v185_v27 = vld [vmem:[#allocation6 + $0x348] sm:$0xff]  ;;  %v187_v29 = vld [vmem:[#allocation6 + $0x358] sm:$0xff]  ;;  %v4721_v31 = vpack.c.bf16 %v180_v23, %v176_v22 }
  0x6e   :  { %361 = vmatprep.mubr.f32.mxu1 %v73_v16  ;;  %v189_v28 = vld [vmem:[#allocation6 + $0x368] sm:$0xff]  ;;  %v191_v30 = vld [vmem:[#allocation6 + $0x378] sm:$0xff]  ;;  %v4785_v32 = vpack.c.bf16 %v182_v26, %v178_v24  ;;  %v184_v34 = vld [vmem:[#allocation6 + $0x340] sm:$0xff] }
  0x6f   :  { %4706 = vmatpush1.bf16.msra.mxu0 %v4705_v46  ;;  %v4723_v33 = vpack.c.bf16 %v189_v28, %v185_v27  ;;  %v188_v35 = vld [vmem:[#allocation6 + $0x360] sm:$0xff]  ;;  %v186_v36 = vld [vmem:[#allocation6 + $0x350] sm:$0xff]  ;;  %v4787_v37 = vpack.c.bf16 %v191_v30, %v187_v29  ;;  %v193_v39 = vld [vmem:[#allocation6 + $0x388] sm:$0xff] }
  0x70   :  { %4770 = vmatpush1.bf16.msra.mxu1 %v4769_v47  ;;  %4708 = vmatprep.subr.bf16.mxu0 %v4707_v48  ;;  %v190_v38 = vld [vmem:[#allocation6 + $0x370] sm:$0xff]  ;;  %v197_v40 = vld [vmem:[#allocation6 + $0x3a8] sm:$0xff]  ;;  %v195_v41 = vld [vmem:[#allocation6 + $0x398] sm:$0xff]  ;;  %v4725_v43 = vpack.c.bf16 %v188_v35, %v184_v34 }
  0x71   :  { %4772 = vmatprep.subr.bf16.mxu1 %v4771_v52  ;;  %v199_v42 = vld [vmem:[#allocation6 + $0x3b8] sm:$0xff]  ;;  %v4789_v44 = vpack.c.bf16 %v190_v38, %v186_v36  ;;  %v4727_v45 = vpack.c.bf16 %v197_v40, %v193_v39  ;;  %v192_v46 = vld [vmem:[#allocation6 + $0x380] sm:$0xff]  ;;  %v194_v48 = vld [vmem:[#allocation6 + $0x390] sm:$0xff] }
  0x72   :  { %v196_v47 = vld [vmem:[#allocation6 + $0x3a0] sm:$0xff]  ;;  %v4791_v49 = vpack.c.bf16 %v199_v42, %v195_v41  ;;  %v198_v50 = vld [vmem:[#allocation6 + $0x3b0] sm:$0xff]  ;;  %v201_v51 = vld [vmem:[#allocation6 + $0x3c8] sm:$0xff] }
  0x73   :  { %4710 = vmatpush1.bf16.msra.mxu0 %v4709_v58  ;;  %v205_v52 = vld [vmem:[#allocation6 + $0x3e8] sm:$0xff]  ;;  %v203_v53 = vld [vmem:[#allocation6 + $0x3d8] sm:$0xff]  ;;  %v4729_v55 = vpack.c.bf16 %v196_v47, %v192_v46  ;;  %v4793_v56 = vpack.c.bf16 %v198_v50, %v194_v48  ;;  %v200_v58 = vld [vmem:[#allocation6 + $0x3c0] sm:$0xff] }
  0x74   :  { %4774 = vmatpush1.bf16.msra.mxu1 %v4773_v59  ;;  %4712 = vmatprep.subr.bf16.mxu0 %v4711_v60  ;;  %v207_v54 = vld [vmem:[#allocation6 + $0x3f8] sm:$0xff]  ;;  %v4731_v57 = vpack.c.bf16 %v205_v52, %v201_v51  ;;  %v204_v59 = vld [vmem:[#allocation6 + $0x3e0] sm:$0xff]  ;;  %v202_v60 = vld [vmem:[#allocation6 + $0x3d0] sm:$0xff] }
  0x75   :  { %4776 = vmatprep.subr.bf16.mxu1 %v4775_v0  ;;  %v4795_v61 = vpack.c.bf16 %v207_v54, %v203_v53  ;;  %v206_v62 = vld [vmem:[#allocation6 + $0x3f0] sm:$0xff]  ;;  %v643_v63 = vld [vmem:[#allocation7 + $0x8] sm:$0xff]  ;;  %v645_v1 = vld [vmem:[#allocation7 + $0x18] sm:$0xff]  ;;  %v4733_v3 = vpack.c.bf16 %v204_v59, %v200_v58 }
  0x76   :  { %v647_v0 = vld [vmem:[#allocation7 + $0x28] sm:$0xff]  ;;  %v649_v2 = vld [vmem:[#allocation7 + $0x38] sm:$0xff]  ;;  %v4797_v4 = vpack.c.bf16 %v206_v62, %v202_v60  ;;  %v646_v7 = vld [vmem:[#allocation7 + $0x20] sm:$0xff] }
  0x77   :  { %4714 = vmatpush1.bf16.msra.mxu0 %v4713_v6  ;;  %v4799_v5 = vpack.c.bf16 %v647_v0, %v643_v63  ;;  %v642_v6 = vld [vmem:[#allocation7] sm:$0xff]  ;;  %v648_v10 = vld [vmem:[#allocation7 + $0x30] sm:$0xff]  ;;  %v651_v11 = vld [vmem:[#allocation7 + $0x48] sm:$0xff] }
  0x78   :  { %4778 = vmatpush1.bf16.msra.mxu1 %v4777_v8  ;;  %4716 = vmatprep.subr.bf16.mxu0 %v4715_v9  ;;  %v644_v8 = vld [vmem:[#allocation7 + $0x10] sm:$0xff]  ;;  %v5055_v9 = vpack.c.bf16 %v649_v2, %v645_v1  ;;  %v655_v12 = vld [vmem:[#allocation7 + $0x68] sm:$0xff]  ;;  %v657_v14 = vld [vmem:[#allocation7 + $0x78] sm:$0xff]  ;;  %v4801_v16 = vpack.c.bf16 %v646_v7, %v642_v6 }
  0x79   :  { %4780 = vmatprep.subr.bf16.mxu1 %v4779_v13  ;;  %v653_v13 = vld [vmem:[#allocation7 + $0x58] sm:$0xff]  ;;  %v72_v15 = vld [vmem:[#allocation2] sm:$0xff]  ;;  %v5057_v17 = vpack.c.bf16 %v648_v10, %v644_v8  ;;  %v4803_v18 = vpack.c.bf16 %v655_v12, %v651_v11  ;;  %v656_v23 = vld [vmem:[#allocation7 + $0x70] sm:$0xff] }
  0x7a   :  { %v5059_v22 = vpack.c.bf16 %v657_v14, %v653_v13  ;;  %v659_v24 = vld [vmem:[#allocation7 + $0x88] sm:$0xff]  ;;  %v661_v26 = vld [vmem:[#allocation7 + $0x98] sm:$0xff]  ;;  %v664_v35 = vld [vmem:[#allocation7 + $0xb0] sm:$0xff] }
  0x7b   :  { %4718 = vmatpush1.bf16.msra.mxu0 %v4717_v19  ;;  %v650_v19 = vld [vmem:[#allocation7 + $0x40] sm:$0xff]  ;;  %v665_v27 = vld [vmem:[#allocation7 + $0xb8] sm:$0xff]  ;;  %v667_v36 = vld [vmem:[#allocation7 + $0xc8] sm:$0xff] }
  0x7c   :  { %4782 = vmatpush1.bf16.msra.mxu1 %v4781_v20  ;;  %4720 = vmatprep.subr.bf16.mxu0 %v4719_v21  ;;  %v654_v20 = vld [vmem:[#allocation7 + $0x60] sm:$0xff]  ;;  %v652_v21 = vld [vmem:[#allocation7 + $0x50] sm:$0xff]  ;;  %v5063_v34 = vpack.c.bf16 %v665_v27, %v661_v26  ;;  %v669_v38 = vld [vmem:[#allocation7 + $0xd8] sm:$0xff] }
  0x7d   :  { %4784 = vmatprep.subr.bf16.mxu1 %v4783_v25  ;;  %v663_v25 = vld [vmem:[#allocation7 + $0xa8] sm:$0xff]  ;;  %v4805_v28 = vpack.c.bf16 %v654_v20, %v650_v19  ;;  %v5061_v29 = vpack.c.bf16 %v656_v23, %v652_v21  ;;  %v673_v39 = vld [vmem:[#allocation7 + $0xf8] sm:$0xff]  ;;  %v672_v47 = vld [vmem:[#allocation7 + $0xf0] sm:$0xff] }
  0x7e   :  { %v4807_v30 = vpack.c.bf16 %v663_v25, %v659_v24  ;;  %v5067_v46 = vpack.c.bf16 %v673_v39, %v669_v38  ;;  %v675_v48 = vld [vmem:[#allocation7 + $0x108] sm:$0xff]  ;;  %v677_v50 = vld [vmem:[#allocation7 + $0x118] sm:$0xff]  ;;  %v674_v53 = vld [vmem:[#allocation7 + $0x100] sm:$0xff] }
  0x7f   :  { %4722 = vmatpush1.bf16.msra.mxu0 %v4721_v31  ;;  %v658_v31 = vld [vmem:[#allocation7 + $0x80] sm:$0xff]  ;;  %v681_v51 = vld [vmem:[#allocation7 + $0x138] sm:$0xff]  ;;  %v680_v58 = vld [vmem:[#allocation7 + $0x130] sm:$0xff] }
  0x80   :  { %4786 = vmatpush1.bf16.msra.mxu1 %v4785_v32  ;;  %4724 = vmatprep.subr.bf16.mxu0 %v4723_v33  ;;  %v662_v32 = vld [vmem:[#allocation7 + $0xa0] sm:$0xff]  ;;  %v660_v33 = vld [vmem:[#allocation7 + $0x90] sm:$0xff]  ;;  %v683_v59 = vld [vmem:[#allocation7 + $0x148] sm:$0xff]  ;;  %v5071_v60 = vpack.c.bf16 %v681_v51, %v677_v50 }
  0x81   :  { %4788 = vmatprep.subr.bf16.mxu1 %v4787_v37  ;;  %v671_v37 = vld [vmem:[#allocation7 + $0xe8] sm:$0xff]  ;;  %v4809_v40 = vpack.c.bf16 %v662_v32, %v658_v31  ;;  %v5065_v41 = vpack.c.bf16 %v664_v35, %v660_v33  ;;  %v678_v54 = vld [vmem:[#allocation7 + $0x120] sm:$0xff]  ;;  %v75_v62 = vld [vmem:[#allocation2 + $0x18] sm:$0xff] }
  0x82   :  { %v4811_v42 = vpack.c.bf16 %v671_v37, %v667_v36  ;;  %v74_v63 = vld [vmem:[#allocation2 + $0x10] sm:$0xff]  ;;  %v685_v0 = vld [vmem:[#allocation7 + $0x158] sm:$0xff]  ;;  %v4817_v2 = vpack.c.bf16 %v678_v54, %v674_v53  ;;  %v77_v8 = vld [vmem:[#allocation2 + $0x28] sm:$0xff] }
  0x83   :  { %4726 = vmatpush1.bf16.msra.mxu0 %v4725_v43  ;;  %v666_v43 = vld [vmem:[#allocation7 + $0xc0] sm:$0xff]  ;;  %v689_v1 = vld [vmem:[#allocation7 + $0x178] sm:$0xff]  ;;  %v684_v7 = vld [vmem:[#allocation7 + $0x150] sm:$0xff] }
  0x84   :  { %4790 = vmatpush1.bf16.msra.mxu1 %v4789_v44  ;;  %4728 = vmatprep.subr.bf16.mxu0 %v4727_v45  ;;  %v670_v44 = vld [vmem:[#allocation7 + $0xe0] sm:$0xff]  ;;  %v668_v45 = vld [vmem:[#allocation7 + $0xd0] sm:$0xff]  ;;  %v5075_v10 = vpack.c.bf16 %v689_v1, %v685_v0  ;;  %v691_v12 = vld [vmem:[#allocation7 + $0x188] sm:$0xff] }
  0x85   :  { %4792 = vmatprep.subr.bf16.mxu1 %v4791_v49  ;;  %v679_v49 = vld [vmem:[#allocation7 + $0x128] sm:$0xff]  ;;  %v4813_v52 = vpack.c.bf16 %v670_v44, %v666_v43  ;;  %v688_v11 = vld [vmem:[#allocation7 + $0x170] sm:$0xff]  ;;  %v693_v14 = vld [vmem:[#allocation7 + $0x198] sm:$0xff] }
  0x86   :  { %v695_v13 = vld [vmem:[#allocation7 + $0x1a8] sm:$0xff]  ;;  %v5077_v19 = vpack.c.bf16 %v688_v11, %v684_v7  ;;  %v694_v21 = vld [vmem:[#allocation7 + $0x1a0] sm:$0xff]  ;;  %v78_v23 = vld [vmem:[#allocation2 + $0x30] sm:$0xff] }
  0x87   :  { %4730 = vmatpush1.bf16.msra.mxu0 %v4729_v55  ;;  %v5069_v55 = vpack.c.bf16 %v672_v47, %v668_v45  ;;  %v4823_v20 = vpack.c.bf16 %v695_v13, %v691_v12  ;;  %v696_v25 = vld [vmem:[#allocation7 + $0x1b0] sm:$0xff]  ;;  %v699_v26 = vld [vmem:[#allocation7 + $0x1c8] sm:$0xff]  ;;  %v702_v35 = vld [vmem:[#allocation7 + $0x1e0] sm:$0xff] }
  0x88   :  { %4794 = vmatpush1.bf16.msra.mxu1 %v4793_v56  ;;  %4732 = vmatprep.subr.bf16.mxu0 %v4731_v57  ;;  %v4815_v56 = vpack.c.bf16 %v679_v49, %v675_v48  ;;  %v676_v57 = vld [vmem:[#allocation7 + $0x110] sm:$0xff]  ;;  %v703_v27 = vld [vmem:[#allocation7 + $0x1e8] sm:$0xff]  ;;  %v710_v47 = vld [vmem:[#allocation7 + $0x220] sm:$0xff] }
  0x89   :  { %4796 = vmatprep.subr.bf16.mxu1 %v4795_v61  ;;  %v687_v61 = vld [vmem:[#allocation7 + $0x168] sm:$0xff]  ;;  %v4827_v33 = vpack.c.bf16 %v703_v27, %v699_v26  ;;  %v700_v36 = vld [vmem:[#allocation7 + $0x1d0] sm:$0xff]  ;;  %v717_v53 = vld [vmem:[#allocation7 + $0x258] sm:$0xff] }
  0x8a   :  { %v4819_v6 = vpack.c.bf16 %v687_v61, %v683_v59  ;;  %v387_v31 = vld [vmem:[#allocation4 + $0x8] sm:$0xff]  ;;  %v704_v38 = vld [vmem:[#allocation7 + $0x1f0] sm:$0xff]  ;;  %v721_v54 = vld [vmem:[#allocation7 + $0x278] sm:$0xff] }
  0x8b   :  { %4734 = vmatpush1.bf16.msra.mxu0 %v4733_v3  ;;  %v682_v3 = vld [vmem:[#allocation7 + $0x140] sm:$0xff]  ;;  %v707_v39 = vld [vmem:[#allocation7 + $0x208] sm:$0xff]  ;;  %v5085_v44 = vpack.c.bf16 %v704_v38, %v700_v36  ;;  %v708_v48 = vld [vmem:[#allocation7 + $0x210] sm:$0xff]  ;;  %v5091_v61 = vpack.c.bf16 %v721_v54, %v717_v53 }
  0x8c   :  { %4798 = vmatpush1.bf16.msra.mxu1 %v4797_v4  ;;  %4800 = vmatprep.subr.bf16.mxu0 %v4799_v5  ;;  %v686_v4 = vld [vmem:[#allocation7 + $0x160] sm:$0xff]  ;;  %v5073_v5 = vpack.c.bf16 %v680_v58, %v676_v57  ;;  %v712_v50 = vld [vmem:[#allocation7 + $0x230] sm:$0xff]  ;;  %v715_v51 = vld [vmem:[#allocation7 + $0x248] sm:$0xff] }
  0x8d   :  { %5056 = vmatprep.subr.bf16.mxu1 %v5055_v9  ;;  %v76_v9 = vld [vmem:[#allocation2 + $0x20] sm:$0xff]  ;;  %v727_v0 = vld [vmem:[#allocation7 + $0x2a8] sm:$0xff]  ;;  %v725_v1 = vld [vmem:[#allocation7 + $0x298] sm:$0xff] }
  0x8e   :  { %273 = vmatmul.mubr.f32.vlgmr.msra.gmra.mrb[0].mxu0 %v72_v15  ;;  %v714_v58 = vld [vmem:[#allocation7 + $0x240] sm:$0xff]  ;;  %v731_v11 = vld [vmem:[#allocation7 + $0x2c8] sm:$0xff]  ;;  %v733_v13 = vld [vmem:[#allocation7 + $0x2d8] sm:$0xff] }
  0x8f   :  { %362 = vmatmul.mubr.f32.vlgmr.msra.gmra.mrb[0].mxu1 %v72_v15  ;;  %4802 = vmatpush1.bf16.msra.mxu0 %v4801_v16  ;;  %v697_v15 = vld [vmem:[#allocation7 + $0x1b8] sm:$0xff]  ;;  %v4821_v16 = vpack.c.bf16 %v686_v4, %v682_v3  ;;  %v718_v59 = vld [vmem:[#allocation7 + $0x260] sm:$0xff]  ;;  %v735_v12 = vld [vmem:[#allocation7 + $0x2e8] sm:$0xff] }
  0x90   :  { %5058 = vmatpush1.bf16.msra.mxu1 %v5057_v17  ;;  %4804 = vmatprep.subr.bf16.mxu0 %v4803_v18  ;;  %v690_v17 = vld [vmem:[#allocation7 + $0x180] sm:$0xff]  ;;  %v79_v18 = vld [vmem:[#allocation2 + $0x38] sm:$0xff]  ;;  %v5079_v24 = vpack.c.bf16 %v697_v15, %v693_v14  ;;  %v4837_v3 = vpack.c.bf16 %v718_v59, %v714_v58  ;;  %v751_v36 = vld [vmem:[#allocation7 + $0x368] sm:$0xff] }
  0x91   :  { %5060 = vmatprep.subr.bf16.mxu1 %v5059_v22  ;;  %278 = vmatprep.mubr.f32.mxu0 %v75_v62  ;;  %v692_v22 = vld [vmem:[#allocation7 + $0x190] sm:$0xff]  ;;  %v726_v7 = vld [vmem:[#allocation7 + $0x2a0] sm:$0xff]  ;;  %v737_v14 = vld [vmem:[#allocation7 + $0x2f8] sm:$0xff] }
  0x92   :  { %367 = vmatprep.mubr.f32.mxu1 %v75_v62  ;;  %279 = vmatmul.mubr.f32.gmra.mrb[2].mxu0 %v74_v63  ;;  %v5081_v32 = vpack.c.bf16 %v696_v25, %v692_v22  ;;  %v720_v62 = vld [vmem:[#allocation7 + $0x270] sm:$0xff]  ;;  %v741_v25 = vld [vmem:[#allocation7 + $0x318] sm:$0xff]  ;;  %v754_v54 = vld [vmem:[#allocation7 + $0x380] sm:$0xff] }
  0x93   :  { %4806 = vmatpush1.bf16.msra.mxu0 %v4805_v28  ;;  %368 = vmatmul.mubr.f32.gmra.mrb[2].mxu1 %v74_v63  ;;  %v701_v28 = vld [vmem:[#allocation7 + $0x1d8] sm:$0xff]  ;;  %v723_v63 = vld [vmem:[#allocation7 + $0x288] sm:$0xff]  ;;  %v736_v22 = vld [vmem:[#allocation7 + $0x2f0] sm:$0xff] }
  0x94   :  { %5062 = vmatpush1.bf16.msra.mxu1 %v5061_v29  ;;  %4808 = vmatprep.subr.bf16.mxu0 %v4807_v30  ;;  %v705_v29 = vld [vmem:[#allocation7 + $0x1f8] sm:$0xff]  ;;  %v4825_v30 = vpack.c.bf16 %v694_v21, %v690_v17  ;;  %v4843_v17 = vpack.c.bf16 %v735_v12, %v731_v11  ;;  %v5099_v21 = vpack.c.bf16 %v737_v14, %v733_v13  ;;  %v760_v58 = vld [vmem:[#allocation7 + $0x3b0] sm:$0xff]  ;;  %v763_v59 = vld [vmem:[#allocation7 + $0x3c8] sm:$0xff] }
  0x95   :  { %5064 = vmatprep.subr.bf16.mxu1 %v5063_v34  ;;  %284 = vmatprep.mubr.f32.mxu0 %v77_v8  ;;  %v698_v34 = vld [vmem:[#allocation7 + $0x1c0] sm:$0xff]  ;;  %v5083_v37 = vpack.c.bf16 %v705_v29, %v701_v28  ;;  %v745_v26 = vld [vmem:[#allocation7 + $0x338] sm:$0xff] }
  0x96   :  { %373 = vmatprep.mubr.f32.mxu1 %v77_v8  ;;  %285 = vmatmul.mubr.f32.gmra.mrb[4].mxu0 %v76_v9  ;;  %v4829_v43 = vpack.c.bf16 %v702_v35, %v698_v34  ;;  %v724_v8 = vld [vmem:[#allocation7 + $0x290] sm:$0xff]  ;;  %v747_v35 = vld [vmem:[#allocation7 + $0x348] sm:$0xff]  ;;  %v753_v38 = vld [vmem:[#allocation7 + $0x378] sm:$0xff] }
  0x97   :  { %4810 = vmatpush1.bf16.msra.mxu0 %v4809_v40  ;;  %374 = vmatmul.mubr.f32.gmra.mrb[4].mxu1 %v76_v9  ;;  %v711_v40 = vld [vmem:[#allocation7 + $0x228] sm:$0xff]  ;;  %v744_v34 = vld [vmem:[#allocation7 + $0x330] sm:$0xff]  ;;  %v770_v14 = vld [vmem:[#allocation7 + $0x400] sm:$0xff] }
  0x98   :  { %5066 = vmatpush1.bf16.msra.mxu1 %v5065_v41  ;;  %4812 = vmatprep.subr.bf16.mxu0 %v4811_v42  ;;  %v709_v41 = vld [vmem:[#allocation7 + $0x218] sm:$0xff]  ;;  %v4831_v45 = vpack.c.bf16 %v711_v40, %v707_v39 }
  0x99   :  { %5068 = vmatprep.subr.bf16.mxu1 %v5067_v46  ;;  %290 = vmatprep.mubr.f32.mxu0 %v79_v18  ;;  %v713_v42 = vld [vmem:[#allocation7 + $0x238] sm:$0xff]  ;;  %v706_v46 = vld [vmem:[#allocation7 + $0x200] sm:$0xff] }
  0x9a   :  { %379 = vmatprep.mubr.f32.mxu1 %v79_v18  ;;  %291 = vmatmul.mubr.f32.gmra.mrb[6].mxu0 %v78_v23  ;;  %v5087_v49 = vpack.c.bf16 %v713_v42, %v709_v41  ;;  %v730_v18 = vld [vmem:[#allocation7 + $0x2c0] sm:$0xff]  ;;  %v4851_v41 = vpack.c.bf16 %v751_v36, %v747_v35  ;;  %v789_v36 = vld [vmem:[#allocation7 + $0x498] sm:$0xff] }
  0x9b   :  { %4814 = vmatpush1.bf16.msra.mxu0 %v4813_v52  ;;  %380 = vmatmul.mubr.f32.gmra.mrb[6].mxu1 %v78_v23  ;;  %v719_v52 = vld [vmem:[#allocation7 + $0x268] sm:$0xff]  ;;  %v746_v42 = vld [vmem:[#allocation7 + $0x340] sm:$0xff] }
  0x9c   :  { %5070 = vmatpush1.bf16.msra.mxu1 %v5069_v55  ;;  %4816 = vmatprep.subr.bf16.mxu0 %v4815_v56  ;;  %v4833_v55 = vpack.c.bf16 %v710_v47, %v706_v46  ;;  %v5089_v56 = vpack.c.bf16 %v712_v50, %v708_v48  ;;  %v4835_v57 = vpack.c.bf16 %v719_v52, %v715_v51  ;;  %v739_v23 = vld [vmem:[#allocation7 + $0x308] sm:$0xff]  ;;  %v752_v46 = vld [vmem:[#allocation7 + $0x370] sm:$0xff]  ;;  %v761_v50 = vld [vmem:[#allocation7 + $0x3b8] sm:$0xff] }
  0x9d   :  { %5072 = vmatprep.subr.bf16.mxu1 %v5071_v60  ;;  %1218 = vmatprep.mubr.f32.mxu0 %v387_v31  ;;  %v716_v60 = vld [vmem:[#allocation7 + $0x250] sm:$0xff]  ;;  %v755_v47 = vld [vmem:[#allocation7 + $0x388] sm:$0xff]  ;;  %v394_v35 = vld [vmem:[#allocation4 + $0x40] sm:$0xff] }
  0x9e   :  { %2246 = vmatprep.mubr.f32.mxu1 %v387_v31  ;;  %v5093_v4 = vpack.c.bf16 %v720_v62, %v716_v60  ;;  %v742_v31 = vld [vmem:[#allocation7 + $0x320] sm:$0xff]  ;;  %v759_v48 = vld [vmem:[#allocation7 + $0x3a8] sm:$0xff]  ;;  %v769_v62 = vld [vmem:[#allocation7 + $0x3f8] sm:$0xff] }
  0x9f   :  { %4818 = vmatpush1.bf16.msra.mxu0 %v4817_v2  ;;  %v729_v2 = vld [vmem:[#allocation7 + $0x2b8] sm:$0xff]  ;;  %v4855_v53 = vpack.c.bf16 %v759_v48, %v755_v47  ;;  %v767_v60 = vld [vmem:[#allocation7 + $0x3e8] sm:$0xff] }
  0xa0   :  { %5074 = vmatpush1.bf16.msra.mxu1 %v5073_v5  ;;  %4820 = vmatprep.subr.bf16.mxu0 %v4819_v6  ;;  %v4839_v5 = vpack.c.bf16 %v727_v0, %v723_v63  ;;  %v722_v6 = vld [vmem:[#allocation7 + $0x280] sm:$0xff]  ;;  %v5095_v9 = vpack.c.bf16 %v729_v2, %v725_v1  ;;  %v4859_v1 = vpack.c.bf16 %v767_v60, %v763_v59  ;;  %v795_v47 = vld [vmem:[#allocation7 + $0x4c8] sm:$0xff]  ;;  %v800_v60 = vld [vmem:[#allocation7 + $0x4f0] sm:$0xff] }
  0xa1   :  { %5076 = vmatprep.subr.bf16.mxu1 %v5075_v10  ;;  %v728_v10 = vld [vmem:[#allocation7 + $0x2b0] sm:$0xff]  ;;  %v4841_v15 = vpack.c.bf16 %v726_v7, %v722_v6  ;;  %v762_v2 = vld [vmem:[#allocation7 + $0x3c0] sm:$0xff]  ;;  %v771_v7 = vld [vmem:[#allocation7 + $0x408] sm:$0xff] }
  0xa2   :  { %v768_v6 = vld [vmem:[#allocation7 + $0x3f0] sm:$0xff]  ;;  %v799_v48 = vld [vmem:[#allocation7 + $0x4e8] sm:$0xff] }
  0xa3   :  { %4822 = vmatpush1.bf16.msra.mxu0 %v4821_v16  ;;  %v5097_v16 = vpack.c.bf16 %v728_v10, %v724_v8  ;;  %v775_v8 = vld [vmem:[#allocation7 + $0x428] sm:$0xff]  ;;  %v777_v10 = vld [vmem:[#allocation7 + $0x438] sm:$0xff] }
  0xa4   :  { %5078 = vmatpush1.bf16.msra.mxu1 %v5077_v19  ;;  %4824 = vmatprep.subr.bf16.mxu0 %v4823_v20  ;;  %v734_v19 = vld [vmem:[#allocation7 + $0x2e0] sm:$0xff]  ;;  %v732_v20 = vld [vmem:[#allocation7 + $0x2d0] sm:$0xff]  ;;  %v4863_v13 = vpack.c.bf16 %v775_v8, %v771_v7 }
  0xa5   :  { %5080 = vmatprep.subr.bf16.mxu1 %v5079_v24  ;;  %v743_v24 = vld [vmem:[#allocation7 + $0x328] sm:$0xff]  ;;  %v4845_v27 = vpack.c.bf16 %v734_v19, %v730_v18  ;;  %v5101_v28 = vpack.c.bf16 %v736_v22, %v732_v20  ;;  %v776_v18 = vld [vmem:[#allocation7 + $0x430] sm:$0xff]  ;;  %v806_v7 = vld [vmem:[#allocation7 + $0x520] sm:$0xff] }
  0xa6   :  { %v4847_v29 = vpack.c.bf16 %v743_v24, %v739_v23  ;;  %v779_v19 = vld [vmem:[#allocation7 + $0x448] sm:$0xff]  ;;  %v781_v23 = vld [vmem:[#allocation7 + $0x458] sm:$0xff]  ;;  %v804_v8 = vld [vmem:[#allocation7 + $0x510] sm:$0xff] }
  0xa7   :  { %4826 = vmatpush1.bf16.msra.mxu0 %v4825_v30  ;;  %v738_v30 = vld [vmem:[#allocation7 + $0x300] sm:$0xff]  ;;  %v783_v20 = vld [vmem:[#allocation7 + $0x468] sm:$0xff]  ;;  %v785_v24 = vld [vmem:[#allocation7 + $0x478] sm:$0xff] }
  0xa8   :  { %5082 = vmatpush1.bf16.msra.mxu1 %v5081_v32  ;;  %4828 = vmatprep.subr.bf16.mxu0 %v4827_v33  ;;  %v740_v32 = vld [vmem:[#allocation7 + $0x310] sm:$0xff]  ;;  %v5103_v33 = vpack.c.bf16 %v745_v26, %v741_v25  ;;  %v4849_v39 = vpack.c.bf16 %v742_v31, %v738_v30  ;;  %v395_v25 = vld [vmem:[#allocation4 + $0x48] sm:$0xff]  ;;  %v5123_v31 = vpack.c.bf16 %v785_v24, %v781_v23 }
  0xa9   :  { %5084 = vmatprep.subr.bf16.mxu1 %v5083_v37  ;;  %v749_v37 = vld [vmem:[#allocation7 + $0x358] sm:$0xff]  ;;  %v5105_v40 = vpack.c.bf16 %v744_v34, %v740_v32  ;;  %v780_v30 = vld [vmem:[#allocation7 + $0x450] sm:$0xff]  ;;  %v791_v34 = vld [vmem:[#allocation7 + $0x4a8] sm:$0xff] }
  0xaa   :  { %v784_v32 = vld [vmem:[#allocation7 + $0x470] sm:$0xff] }
  0xab   :  { %4830 = vmatpush1.bf16.msra.mxu0 %v4829_v43  ;;  %v750_v43 = vld [vmem:[#allocation7 + $0x360] sm:$0xff]  ;;  %v816_v24 = vld [vmem:[#allocation7 + $0x570] sm:$0xff] }
  0xac   :  { %5086 = vmatpush1.bf16.msra.mxu1 %v5085_v44  ;;  %4832 = vmatprep.subr.bf16.mxu0 %v4831_v45  ;;  %v748_v44 = vld [vmem:[#allocation7 + $0x350] sm:$0xff]  ;;  %v5107_v45 = vpack.c.bf16 %v753_v38, %v749_v37  ;;  %v4853_v51 = vpack.c.bf16 %v750_v43, %v746_v42  ;;  %v793_v37 = vld [vmem:[#allocation7 + $0x4b8] sm:$0xff]  ;;  %v403_v38 = vld [vmem:[#allocation4 + $0x88] sm:$0xff] }
  0xad   :  { %5088 = vmatprep.subr.bf16.mxu1 %v5087_v49  ;;  %v757_v49 = vld [vmem:[#allocation7 + $0x398] sm:$0xff]  ;;  %v5109_v52 = vpack.c.bf16 %v752_v46, %v748_v44  ;;  %v786_v42 = vld [vmem:[#allocation7 + $0x480] sm:$0xff]  ;;  %v788_v44 = vld [vmem:[#allocation7 + $0x490] sm:$0xff] }
  0xae   :  { %v790_v43 = vld [vmem:[#allocation7 + $0x4a0] sm:$0xff]  ;;  %v792_v46 = vld [vmem:[#allocation7 + $0x4b0] sm:$0xff] }
  0xaf   :  { %4834 = vmatpush1.bf16.msra.mxu0 %v4833_v55  ;;  %v758_v55 = vld [vmem:[#allocation7 + $0x3a0] sm:$0xff] }
  0xb0   :  { %5090 = vmatpush1.bf16.msra.mxu1 %v5089_v56  ;;  %4836 = vmatprep.subr.bf16.mxu0 %v4835_v57  ;;  %v756_v56 = vld [vmem:[#allocation7 + $0x390] sm:$0xff]  ;;  %v5111_v57 = vpack.c.bf16 %v761_v50, %v757_v49  ;;  %v4857_v63 = vpack.c.bf16 %v758_v55, %v754_v54  ;;  %v402_v49 = vld [vmem:[#allocation4 + $0x80] sm:$0xff]  ;;  %v797_v50 = vld [vmem:[#allocation7 + $0x4d8] sm:$0xff]  ;;  %v5129_v54 = vpack.c.bf16 %v792_v46, %v788_v44 }
  0xb1   :  { %5092 = vmatprep.subr.bf16.mxu1 %v5091_v61  ;;  %v765_v61 = vld [vmem:[#allocation7 + $0x3d8] sm:$0xff]  ;;  %v5113_v0 = vpack.c.bf16 %v760_v58, %v756_v56  ;;  %v4875_v55 = vpack.c.bf16 %v799_v48, %v795_v47  ;;  %v794_v56 = vld [vmem:[#allocation7 + $0x4c0] sm:$0xff]  ;;  %v796_v58 = vld [vmem:[#allocation7 + $0x4d0] sm:$0xff] }
  0xb2   :  { %v443_v44 = vld [vmem:[#allocation4 + $0x1c8] sm:$0xff]  ;;  %v826_v48 = vld [vmem:[#allocation7 + $0x5c0] sm:$0xff] }
  0xb3   :  { %4838 = vmatpush1.bf16.msra.mxu0 %v4837_v3  ;;  %v766_v3 = vld [vmem:[#allocation7 + $0x3e0] sm:$0xff] }
  0xb4   :  { %5094 = vmatpush1.bf16.msra.mxu1 %v5093_v4  ;;  %4840 = vmatprep.subr.bf16.mxu0 %v4839_v5  ;;  %v764_v4 = vld [vmem:[#allocation7 + $0x3d0] sm:$0xff]  ;;  %v5115_v5 = vpack.c.bf16 %v769_v62, %v765_v61  ;;  %v4861_v11 = vpack.c.bf16 %v766_v3, %v762_v2  ;;  %v803_v61 = vld [vmem:[#allocation7 + $0x508] sm:$0xff] }
  0xb5   :  { %5096 = vmatprep.subr.bf16.mxu1 %v5095_v9  ;;  %v773_v9 = vld [vmem:[#allocation7 + $0x418] sm:$0xff]  ;;  %v5117_v12 = vpack.c.bf16 %v768_v6, %v764_v4  ;;  %v807_v62 = vld [vmem:[#allocation7 + $0x528] sm:$0xff]  ;;  %v5133_v4 = vpack.c.bf16 %v800_v60, %v796_v58  ;;  %v802_v6 = vld [vmem:[#allocation7 + $0x500] sm:$0xff] }
  0xb6   :  { %v419_v2 = vld [vmem:[#allocation4 + $0x108] sm:$0xff] }
  0xb7   :  { %4842 = vmatpush1.bf16.msra.mxu0 %v4841_v15  ;;  %v774_v15 = vld [vmem:[#allocation7 + $0x420] sm:$0xff]  ;;  %v451_v58 = vld [vmem:[#allocation4 + $0x208] sm:$0xff] }
  0xb8   :  { %5098 = vmatpush1.bf16.msra.mxu1 %v5097_v16  ;;  %4844 = vmatprep.subr.bf16.mxu0 %v4843_v17  ;;  %v5119_v16 = vpack.c.bf16 %v777_v10, %v773_v9  ;;  %v772_v17 = vld [vmem:[#allocation7 + $0x410] sm:$0xff]  ;;  %v4865_v22 = vpack.c.bf16 %v774_v15, %v770_v14  ;;  %v813_v14 = vld [vmem:[#allocation7 + $0x558] sm:$0xff] }
  0xb9   :  { %5100 = vmatprep.subr.bf16.mxu1 %v5099_v21  ;;  %v386_v21 = vld [vmem:[#allocation4] sm:$0xff]  ;;  %v5121_v26 = vpack.c.bf16 %v776_v18, %v772_v17  ;;  %v808_v10 = vld [vmem:[#allocation7 + $0x530] sm:$0xff]  ;;  %v817_v15 = vld [vmem:[#allocation7 + $0x578] sm:$0xff]  ;;  %v4881_v17 = vpack.c.bf16 %v806_v7, %v802_v6 }
  0xba   :  { %v5137_v18 = vpack.c.bf16 %v808_v10, %v804_v8  ;;  %v5139_v23 = vpack.c.bf16 %v817_v15, %v813_v14  ;;  %v845_v6 = vld [vmem:[#allocation7 + $0x658] sm:$0xff]  ;;  %v459_v8 = vld [vmem:[#allocation4 + $0x248] sm:$0xff]  ;;  %v844_v14 = vld [vmem:[#allocation7 + $0x650] sm:$0xff] }
  0xbb   :  { %4846 = vmatpush1.bf16.msra.mxu0 %v4845_v27  ;;  %v4867_v27 = vpack.c.bf16 %v783_v20, %v779_v19  ;;  %v810_v20 = vld [vmem:[#allocation7 + $0x540] sm:$0xff]  ;;  %v849_v7 = vld [vmem:[#allocation7 + $0x678] sm:$0xff] }
  0xbc   :  { %5102 = vmatpush1.bf16.msra.mxu1 %v5101_v28  ;;  %4848 = vmatprep.subr.bf16.mxu0 %v4847_v29  ;;  %v778_v28 = vld [vmem:[#allocation7 + $0x440] sm:$0xff]  ;;  %v5155_v15 = vpack.c.bf16 %v849_v7, %v845_v6  ;;  %v876_v6 = vld [vmem:[#allocation7 + $0x750] sm:$0xff] }
  0xbd   :  { %5104 = vmatprep.subr.bf16.mxu1 %v5103_v33  ;;  %v782_v29 = vld [vmem:[#allocation7 + $0x460] sm:$0xff]  ;;  %v787_v33 = vld [vmem:[#allocation7 + $0x488] sm:$0xff] }
  0xbf   :  { %4850 = vmatpush1.bf16.msra.mxu0 %v4849_v39  ;;  %v4869_v39 = vpack.c.bf16 %v782_v29, %v778_v28  ;;  %v821_v28 = vld [vmem:[#allocation7 + $0x598] sm:$0xff] }
  0xc0   :  { %5106 = vmatpush1.bf16.msra.mxu1 %v5105_v40  ;;  %4852 = vmatprep.subr.bf16.mxu0 %v4851_v41  ;;  %v5125_v40 = vpack.c.bf16 %v784_v32, %v780_v30  ;;  %v4871_v41 = vpack.c.bf16 %v791_v34, %v787_v33  ;;  %v825_v29 = vld [vmem:[#allocation7 + $0x5b8] sm:$0xff]  ;;  %v435_v30 = vld [vmem:[#allocation4 + $0x188] sm:$0xff]  ;;  %v818_v34 = vld [vmem:[#allocation7 + $0x580] sm:$0xff] }
  0xc1   :  { %5108 = vmatprep.subr.bf16.mxu1 %v5107_v45  ;;  %v5127_v45 = vpack.c.bf16 %v793_v37, %v789_v36  ;;  %v820_v36 = vld [vmem:[#allocation7 + $0x590] sm:$0xff]  ;;  %v5143_v37 = vpack.c.bf16 %v825_v29, %v821_v28 }
  0xc2   :  { %v852_v28 = vld [vmem:[#allocation7 + $0x690] sm:$0xff] }
  0xc3   :  { %4854 = vmatpush1.bf16.msra.mxu0 %v4853_v51  ;;  %v801_v51 = vld [vmem:[#allocation7 + $0x4f8] sm:$0xff] }
  0xc4   :  { %5110 = vmatpush1.bf16.msra.mxu1 %v5109_v52  ;;  %4856 = vmatprep.subr.bf16.mxu0 %v4855_v53  ;;  %v411_v52 = vld [vmem:[#allocation4 + $0xc8] sm:$0xff]  ;;  %v4873_v53 = vpack.c.bf16 %v790_v43, %v786_v42  ;;  %v5131_v59 = vpack.c.bf16 %v801_v51, %v797_v50  ;;  %v829_v42 = vld [vmem:[#allocation7 + $0x5d8] sm:$0xff]  ;;  %v828_v50 = vld [vmem:[#allocation7 + $0x5d0] sm:$0xff] }
  0xc5   :  { %5112 = vmatprep.subr.bf16.mxu1 %v5111_v57  ;;  %v798_v57 = vld [vmem:[#allocation7 + $0x4e0] sm:$0xff]  ;;  %v833_v43 = vld [vmem:[#allocation7 + $0x5f8] sm:$0xff] }
  0xc6   :  { %v4877_v3 = vpack.c.bf16 %v798_v57, %v794_v56  ;;  %v5147_v51 = vpack.c.bf16 %v833_v43, %v829_v42  ;;  %v837_v56 = vld [vmem:[#allocation7 + $0x618] sm:$0xff]  ;;  %v860_v42 = vld [vmem:[#allocation7 + $0x6d0] sm:$0xff] }
  0xc7   :  { %4858 = vmatpush1.bf16.msra.mxu0 %v4857_v63  ;;  %v410_v63 = vld [vmem:[#allocation4 + $0xc0] sm:$0xff]  ;;  %v841_v57 = vld [vmem:[#allocation7 + $0x638] sm:$0xff] }
  0xc8   :  { %5114 = vmatpush1.bf16.msra.mxu1 %v5113_v0  ;;  %4860 = vmatprep.subr.bf16.mxu0 %v4859_v1  ;;  %v805_v0 = vld [vmem:[#allocation7 + $0x518] sm:$0xff] }
  0xc9   :  { %5116 = vmatprep.subr.bf16.mxu1 %v5115_v5  ;;  %v809_v1 = vld [vmem:[#allocation7 + $0x538] sm:$0xff]  ;;  %v4879_v5 = vpack.c.bf16 %v807_v62, %v803_v61  ;;  %v834_v62 = vld [vmem:[#allocation7 + $0x600] sm:$0xff] }
  0xca   :  { %v5135_v9 = vpack.c.bf16 %v809_v1, %v805_v0  ;;  %v836_v0 = vld [vmem:[#allocation7 + $0x610] sm:$0xff]  ;;  %v5151_v1 = vpack.c.bf16 %v841_v57, %v837_v56 }
  0xcb   :  { %4862 = vmatpush1.bf16.msra.mxu0 %v4861_v11  ;;  %v811_v11 = vld [vmem:[#allocation7 + $0x548] sm:$0xff]  ;;  %v868_v56 = vld [vmem:[#allocation7 + $0x710] sm:$0xff] }
  0xcc   :  { %5118 = vmatpush1.bf16.msra.mxu1 %v5117_v12  ;;  %4864 = vmatprep.subr.bf16.mxu0 %v4863_v13  ;;  %v815_v12 = vld [vmem:[#allocation7 + $0x568] sm:$0xff]  ;;  %v418_v13 = vld [vmem:[#allocation4 + $0x100] sm:$0xff] }
  0xcd   :  { %5120 = vmatprep.subr.bf16.mxu1 %v5119_v16  ;;  %v427_v16 = vld [vmem:[#allocation4 + $0x148] sm:$0xff]  ;;  %v4883_v19 = vpack.c.bf16 %v815_v12, %v811_v11  ;;  %v842_v12 = vld [vmem:[#allocation7 + $0x640] sm:$0xff] }
  0xce   :  { %1219 = vmatmul.mubr.f32.vlgmr.msra.gmra.mrb[8].mxu0 %v386_v21 }
  0xcf   :  { %2247 = vmatmul.mubr.f32.vlgmr.msra.gmra.mrb[8].mxu1 %v386_v21  ;;  %4866 = vmatpush1.bf16.msra.mxu0 %v4865_v22  ;;  %v814_v21 = vld [vmem:[#allocation7 + $0x560] sm:$0xff]  ;;  %v812_v22 = vld [vmem:[#allocation7 + $0x550] sm:$0xff] }
  0xd0   :  { %1224 = vmatprep.mubr.f32.mxu0 %v395_v25  ;;  %2252 = vmatprep.mubr.f32.mxu1 %v395_v25  ;;  %v819_v25 = vld [vmem:[#allocation7 + $0x588] sm:$0xff]  ;;  %v5141_v32 = vpack.c.bf16 %v816_v24, %v812_v22 }
  0xd1   :  { %5122 = vmatpush1.bf16.msra.mxu1 %v5121_v26  ;;  %4868 = vmatprep.subr.bf16.mxu0 %v4867_v27  ;;  %v823_v26 = vld [vmem:[#allocation7 + $0x5a8] sm:$0xff]  ;;  %v426_v27 = vld [vmem:[#allocation4 + $0x140] sm:$0xff] }
  0xd2   :  { %1225 = vmatmul.mubr.f32.gmra.mrb[10].mxu0 %v394_v35  ;;  %5124 = vmatprep.subr.bf16.mxu1 %v5123_v31  ;;  %v4885_v31 = vpack.c.bf16 %v814_v21, %v810_v20  ;;  %v4887_v33 = vpack.c.bf16 %v823_v26, %v819_v25  ;;  %v853_v20 = vld [vmem:[#allocation7 + $0x698] sm:$0xff]  ;;  %v467_v22 = vld [vmem:[#allocation4 + $0x288] sm:$0xff]  ;;  %v850_v26 = vld [vmem:[#allocation7 + $0x680] sm:$0xff] }
  0xd3   :  { %2253 = vmatmul.mubr.f32.gmra.mrb[10].mxu1 %v394_v35  ;;  %1230 = vmatprep.mubr.f32.mxu0 %v403_v38  ;;  %v822_v35 = vld [vmem:[#allocation7 + $0x5a0] sm:$0xff]  ;;  %v857_v21 = vld [vmem:[#allocation7 + $0x6b8] sm:$0xff] }
  0xd4   :  { %2258 = vmatprep.mubr.f32.mxu1 %v403_v38  ;;  %4870 = vmatpush1.bf16.msra.mxu0 %v4869_v39  ;;  %v824_v38 = vld [vmem:[#allocation7 + $0x5b0] sm:$0xff]  ;;  %v827_v39 = vld [vmem:[#allocation7 + $0x5c8] sm:$0xff]  ;;  %v5159_v29 = vpack.c.bf16 %v857_v21, %v853_v20 }
  0xd5   :  { %5126 = vmatpush1.bf16.msra.mxu1 %v5125_v40  ;;  %4872 = vmatprep.subr.bf16.mxu0 %v4871_v41  ;;  %v831_v40 = vld [vmem:[#allocation7 + $0x5e8] sm:$0xff]  ;;  %v434_v41 = vld [vmem:[#allocation4 + $0x180] sm:$0xff]  ;;  %v5145_v46 = vpack.c.bf16 %v824_v38, %v820_v36  ;;  %v884_v20 = vld [vmem:[#allocation7 + $0x790] sm:$0xff] }
  0xd6   :  { %1231 = vmatmul.mubr.f32.gmra.mrb[12].mxu0 %v402_v49  ;;  %5128 = vmatprep.subr.bf16.mxu1 %v5127_v45  ;;  %v4889_v45 = vpack.c.bf16 %v822_v35, %v818_v34  ;;  %v4891_v47 = vpack.c.bf16 %v831_v40, %v827_v39  ;;  %v861_v34 = vld [vmem:[#allocation7 + $0x6d8] sm:$0xff]  ;;  %v475_v36 = vld [vmem:[#allocation4 + $0x2c8] sm:$0xff]  ;;  %v858_v40 = vld [vmem:[#allocation7 + $0x6c0] sm:$0xff] }
  0xd7   :  { %2259 = vmatmul.mubr.f32.gmra.mrb[12].mxu1 %v402_v49  ;;  %1236 = vmatprep.mubr.f32.mxu0 %v411_v52  ;;  %v830_v49 = vld [vmem:[#allocation7 + $0x5e0] sm:$0xff]  ;;  %v865_v35 = vld [vmem:[#allocation7 + $0x6f8] sm:$0xff] }
  0xd8   :  { %2264 = vmatprep.mubr.f32.mxu1 %v411_v52  ;;  %4874 = vmatpush1.bf16.msra.mxu0 %v4873_v53  ;;  %v832_v52 = vld [vmem:[#allocation7 + $0x5f0] sm:$0xff]  ;;  %v835_v53 = vld [vmem:[#allocation7 + $0x608] sm:$0xff]  ;;  %v5163_v43 = vpack.c.bf16 %v865_v35, %v861_v34 }
  0xd9   :  { %5130 = vmatpush1.bf16.msra.mxu1 %v5129_v54  ;;  %4876 = vmatprep.subr.bf16.mxu0 %v4875_v55  ;;  %v839_v54 = vld [vmem:[#allocation7 + $0x628] sm:$0xff]  ;;  %v442_v55 = vld [vmem:[#allocation4 + $0x1c0] sm:$0xff]  ;;  %v5149_v60 = vpack.c.bf16 %v832_v52, %v828_v50  ;;  %v892_v34 = vld [vmem:[#allocation7 + $0x7d0] sm:$0xff] }
  0xda   :  { %1237 = vmatmul.mubr.f32.gmra.mrb[14].mxu0 %v410_v63  ;;  %5132 = vmatprep.subr.bf16.mxu1 %v5131_v59  ;;  %v4893_v59 = vpack.c.bf16 %v830_v49, %v826_v48  ;;  %v4895_v61 = vpack.c.bf16 %v839_v54, %v835_v53  ;;  %v869_v48 = vld [vmem:[#allocation7 + $0x718] sm:$0xff]  ;;  %v483_v50 = vld [vmem:[#allocation4 + $0x308] sm:$0xff]  ;;  %v866_v54 = vld [vmem:[#allocation7 + $0x700] sm:$0xff] }
  0xdb   :  { %2265 = vmatmul.mubr.f32.gmra.mrb[14].mxu1 %v410_v63  ;;  %1242 = vmatprep.mubr.f32.mxu0 %v419_v2  ;;  %v838_v63 = vld [vmem:[#allocation7 + $0x620] sm:$0xff]  ;;  %v873_v49 = vld [vmem:[#allocation7 + $0x738] sm:$0xff] }
  0xdc   :  { %2270 = vmatprep.mubr.f32.mxu1 %v419_v2  ;;  %4878 = vmatpush1.bf16.msra.mxu0 %v4877_v3  ;;  %v840_v2 = vld [vmem:[#allocation7 + $0x630] sm:$0xff]  ;;  %v843_v3 = vld [vmem:[#allocation7 + $0x648] sm:$0xff]  ;;  %v5167_v57 = vpack.c.bf16 %v873_v49, %v869_v48  ;;  %v522_v49 = vld [vmem:[#allocation4 + $0x440] sm:$0xff] }
  0xdd   :  { %5134 = vmatpush1.bf16.msra.mxu1 %v5133_v4  ;;  %4880 = vmatprep.subr.bf16.mxu0 %v4879_v5  ;;  %v847_v4 = vld [vmem:[#allocation7 + $0x668] sm:$0xff]  ;;  %v450_v5 = vld [vmem:[#allocation4 + $0x200] sm:$0xff]  ;;  %v5153_v10 = vpack.c.bf16 %v840_v2, %v836_v0 }
  0xde   :  { %1243 = vmatmul.mubr.f32.gmra.mrb[16].mxu0 %v418_v13  ;;  %5136 = vmatprep.subr.bf16.mxu1 %v5135_v9  ;;  %v4897_v9 = vpack.c.bf16 %v838_v63, %v834_v62  ;;  %v4899_v11 = vpack.c.bf16 %v847_v4, %v843_v3  ;;  %v877_v62 = vld [vmem:[#allocation7 + $0x758] sm:$0xff]  ;;  %v491_v0 = vld [vmem:[#allocation4 + $0x348] sm:$0xff]  ;;  %v874_v4 = vld [vmem:[#allocation7 + $0x740] sm:$0xff] }
  0xdf   :  { %2271 = vmatmul.mubr.f32.gmra.mrb[16].mxu1 %v418_v13  ;;  %1248 = vmatprep.mubr.f32.mxu0 %v427_v16  ;;  %v846_v13 = vld [vmem:[#allocation7 + $0x660] sm:$0xff]  ;;  %v881_v63 = vld [vmem:[#allocation7 + $0x778] sm:$0xff]  ;;  %v523_v48 = vld [vmem:[#allocation4 + $0x448] sm:$0xff] }
  0xe0   :  { %2276 = vmatprep.mubr.f32.mxu1 %v427_v16  ;;  %4882 = vmatpush1.bf16.msra.mxu0 %v4881_v17  ;;  %v848_v16 = vld [vmem:[#allocation7 + $0x670] sm:$0xff]  ;;  %v851_v17 = vld [vmem:[#allocation7 + $0x688] sm:$0xff]  ;;  %v5171_v7 = vpack.c.bf16 %v881_v63, %v877_v62  ;;  %v578_v63 = vld [vmem:[#allocation4 + $0x600] sm:$0xff] }
  0xe1   :  { %5138 = vmatpush1.bf16.msra.mxu1 %v5137_v18  ;;  %4884 = vmatprep.subr.bf16.mxu0 %v4883_v19  ;;  %v855_v18 = vld [vmem:[#allocation7 + $0x6a8] sm:$0xff]  ;;  %v458_v19 = vld [vmem:[#allocation4 + $0x240] sm:$0xff]  ;;  %v5157_v24 = vpack.c.bf16 %v848_v16, %v844_v14 }
  0xe2   :  { %1249 = vmatmul.mubr.f32.gmra.mrb[18].mxu0 %v426_v27  ;;  %5140 = vmatprep.subr.bf16.mxu1 %v5139_v23  ;;  %v4901_v23 = vpack.c.bf16 %v846_v13, %v842_v12  ;;  %v4903_v25 = vpack.c.bf16 %v855_v18, %v851_v17  ;;  %v885_v12 = vld [vmem:[#allocation7 + $0x798] sm:$0xff]  ;;  %v499_v14 = vld [vmem:[#allocation4 + $0x388] sm:$0xff]  ;;  %v882_v18 = vld [vmem:[#allocation7 + $0x780] sm:$0xff] }
  0xe3   :  { %2277 = vmatmul.mubr.f32.gmra.mrb[18].mxu1 %v426_v27  ;;  %1254 = vmatprep.mubr.f32.mxu0 %v435_v30  ;;  %v854_v27 = vld [vmem:[#allocation7 + $0x6a0] sm:$0xff]  ;;  %v889_v13 = vld [vmem:[#allocation7 + $0x7b8] sm:$0xff]  ;;  %v579_v62 = vld [vmem:[#allocation4 + $0x608] sm:$0xff] }
  0xe4   :  { %2282 = vmatprep.mubr.f32.mxu1 %v435_v30  ;;  %4886 = vmatpush1.bf16.msra.mxu0 %v4885_v31  ;;  %v856_v30 = vld [vmem:[#allocation7 + $0x6b0] sm:$0xff]  ;;  %v859_v31 = vld [vmem:[#allocation7 + $0x6c8] sm:$0xff]  ;;  %v5175_v21 = vpack.c.bf16 %v889_v13, %v885_v12  ;;  %v634_v13 = vld [vmem:[#allocation4 + $0x7c0] sm:$0xff] }
  0xe5   :  { %5142 = vmatpush1.bf16.msra.mxu1 %v5141_v32  ;;  %4888 = vmatprep.subr.bf16.mxu0 %v4887_v33  ;;  %v863_v32 = vld [vmem:[#allocation7 + $0x6e8] sm:$0xff]  ;;  %v466_v33 = vld [vmem:[#allocation4 + $0x280] sm:$0xff]  ;;  %v5161_v38 = vpack.c.bf16 %v856_v30, %v852_v28 }
  0xe6   :  { %1255 = vmatmul.mubr.f32.gmra.mrb[20].mxu0 %v434_v41  ;;  %5144 = vmatprep.subr.bf16.mxu1 %v5143_v37  ;;  %v4905_v37 = vpack.c.bf16 %v854_v27, %v850_v26  ;;  %v4907_v39 = vpack.c.bf16 %v863_v32, %v859_v31  ;;  %v893_v26 = vld [vmem:[#allocation7 + $0x7d8] sm:$0xff]  ;;  %v507_v28 = vld [vmem:[#allocation4 + $0x3c8] sm:$0xff]  ;;  %v890_v32 = vld [vmem:[#allocation7 + $0x7c0] sm:$0xff] }
  0xe7   :  { %2283 = vmatmul.mubr.f32.gmra.mrb[20].mxu1 %v434_v41  ;;  %1260 = vmatprep.mubr.f32.mxu0 %v443_v44  ;;  %v862_v41 = vld [vmem:[#allocation7 + $0x6e0] sm:$0xff]  ;;  %v897_v27 = vld [vmem:[#allocation7 + $0x7f8] sm:$0xff]  ;;  %v635_v12 = vld [vmem:[#allocation4 + $0x7c8] sm:$0xff] }
  0xe8   :  { %2288 = vmatprep.mubr.f32.mxu1 %v443_v44  ;;  %4890 = vmatpush1.bf16.msra.mxu0 %v4889_v45  ;;  %v864_v44 = vld [vmem:[#allocation7 + $0x6f0] sm:$0xff]  ;;  %v867_v45 = vld [vmem:[#allocation7 + $0x708] sm:$0xff]  ;;  %v5179_v35 = vpack.c.bf16 %v897_v27, %v893_v26 }
  0xe9   :  { %5146 = vmatpush1.bf16.msra.mxu1 %v5145_v46  ;;  %4892 = vmatprep.subr.bf16.mxu0 %v4891_v47  ;;  %v871_v46 = vld [vmem:[#allocation7 + $0x728] sm:$0xff]  ;;  %v474_v47 = vld [vmem:[#allocation4 + $0x2c0] sm:$0xff]  ;;  %v5165_v52 = vpack.c.bf16 %v864_v44, %v860_v42 }
  0xea   :  { %1261 = vmatmul.mubr.f32.gmra.mrb[22].mxu0 %v442_v55  ;;  %5148 = vmatprep.subr.bf16.mxu1 %v5147_v51  ;;  %v4909_v51 = vpack.c.bf16 %v862_v41, %v858_v40  ;;  %v4911_v53 = vpack.c.bf16 %v871_v46, %v867_v45  ;;  %v901_v40 = vld [vmem:[#allocation7 + $0x818] sm:$0xff]  ;;  %v515_v42 = vld [vmem:[#allocation4 + $0x408] sm:$0xff] }
  0xeb   :  { %2289 = vmatmul.mubr.f32.gmra.mrb[22].mxu1 %v442_v55  ;;  %1266 = vmatprep.mubr.f32.mxu0 %v451_v58  ;;  %v870_v55 = vld [vmem:[#allocation7 + $0x720] sm:$0xff]  ;;  %v905_v41 = vld [vmem:[#allocation7 + $0x838] sm:$0xff] }
  0xec   :  { %2294 = vmatprep.mubr.f32.mxu1 %v451_v58  ;;  %4894 = vmatpush1.bf16.msra.mxu0 %v4893_v59  ;;  %v872_v58 = vld [vmem:[#allocation7 + $0x730] sm:$0xff]  ;;  %v875_v59 = vld [vmem:[#allocation7 + $0x748] sm:$0xff]  ;;  %v5183_v46 = vpack.c.bf16 %v905_v41, %v901_v40 }
  0xed   :  { %5150 = vmatpush1.bf16.msra.mxu1 %v5149_v60  ;;  %4896 = vmatprep.subr.bf16.mxu0 %v4895_v61  ;;  %v879_v60 = vld [vmem:[#allocation7 + $0x768] sm:$0xff]  ;;  %v482_v61 = vld [vmem:[#allocation4 + $0x300] sm:$0xff]  ;;  %v5169_v2 = vpack.c.bf16 %v872_v58, %v868_v56 }
  0xee   :  { %1267 = vmatmul.mubr.f32.gmra.mrb[24].mxu0 %v450_v5  ;;  %5152 = vmatprep.subr.bf16.mxu1 %v5151_v1  ;;  %v4913_v1 = vpack.c.bf16 %v870_v55, %v866_v54  ;;  %v4915_v3 = vpack.c.bf16 %v879_v60, %v875_v59  ;;  %v547_v54 = vld [vmem:[#allocation4 + $0x508] sm:$0xff]  ;;  %v546_v55 = vld [vmem:[#allocation4 + $0x500] sm:$0xff] }
  0xef   :  { %2295 = vmatmul.mubr.f32.gmra.mrb[24].mxu1 %v450_v5  ;;  %1272 = vmatprep.mubr.f32.mxu0 %v459_v8  ;;  %v878_v5 = vld [vmem:[#allocation7 + $0x760] sm:$0xff]  ;;  %v555_v56 = vld [vmem:[#allocation4 + $0x548] sm:$0xff] }
  0xf0   :  { %2300 = vmatprep.mubr.f32.mxu1 %v459_v8  ;;  %4898 = vmatpush1.bf16.msra.mxu0 %v4897_v9  ;;  %v880_v8 = vld [vmem:[#allocation7 + $0x770] sm:$0xff]  ;;  %v883_v9 = vld [vmem:[#allocation7 + $0x788] sm:$0xff]  ;;  %v562_v59 = vld [vmem:[#allocation4 + $0x580] sm:$0xff] }
  0xf1   :  { %5154 = vmatpush1.bf16.msra.mxu1 %v5153_v10  ;;  %4900 = vmatprep.subr.bf16.mxu0 %v4899_v11  ;;  %v887_v10 = vld [vmem:[#allocation7 + $0x7a8] sm:$0xff]  ;;  %v490_v11 = vld [vmem:[#allocation4 + $0x340] sm:$0xff]  ;;  %v5173_v16 = vpack.c.bf16 %v880_v8, %v876_v6 }
  0xf2   :  { %1273 = vmatmul.mubr.f32.gmra.mrb[26].mxu0 %v458_v19  ;;  %5156 = vmatprep.subr.bf16.mxu1 %v5155_v15  ;;  %v4917_v15 = vpack.c.bf16 %v878_v5, %v874_v4  ;;  %v4919_v17 = vpack.c.bf16 %v887_v10, %v883_v9  ;;  %v563_v58 = vld [vmem:[#allocation4 + $0x588] sm:$0xff]  ;;  %v602_v5 = vld [vmem:[#allocation4 + $0x6c0] sm:$0xff] }
  0xf3   :  { %2301 = vmatmul.mubr.f32.gmra.mrb[26].mxu1 %v458_v19  ;;  %1278 = vmatprep.mubr.f32.mxu0 %v467_v22  ;;  %v886_v19 = vld [vmem:[#allocation7 + $0x7a0] sm:$0xff]  ;;  %v571_v60 = vld [vmem:[#allocation4 + $0x5c8] sm:$0xff] }
  0xf4   :  { %2306 = vmatprep.mubr.f32.mxu1 %v467_v22  ;;  %4902 = vmatpush1.bf16.msra.mxu0 %v4901_v23  ;;  %v888_v22 = vld [vmem:[#allocation7 + $0x7b0] sm:$0xff]  ;;  %v891_v23 = vld [vmem:[#allocation7 + $0x7c8] sm:$0xff]  ;;  %v618_v9 = vld [vmem:[#allocation4 + $0x740] sm:$0xff] }
  0xf5   :  { %5158 = vmatpush1.bf16.msra.mxu1 %v5157_v24  ;;  %4904 = vmatprep.subr.bf16.mxu0 %v4903_v25  ;;  %v895_v24 = vld [vmem:[#allocation7 + $0x7e8] sm:$0xff]  ;;  %v498_v25 = vld [vmem:[#allocation4 + $0x380] sm:$0xff]  ;;  %v5177_v30 = vpack.c.bf16 %v888_v22, %v884_v20 }
  0xf6   :  { %1279 = vmatmul.mubr.f32.gmra.mrb[28].mxu0 %v466_v33  ;;  %5160 = vmatprep.subr.bf16.mxu1 %v5159_v29  ;;  %v4921_v29 = vpack.c.bf16 %v886_v19, %v882_v18  ;;  %v4923_v31 = vpack.c.bf16 %v895_v24, %v891_v23  ;;  %v603_v4 = vld [vmem:[#allocation4 + $0x6c8] sm:$0xff]  ;;  %v904_v18 = vld [vmem:[#allocation7 + $0x830] sm:$0xff]  ;;  %v909_v23 = vld [vmem:[#allocation7 + $0x858] sm:$0xff] }
  0xf7   :  { %2307 = vmatmul.mubr.f32.gmra.mrb[28].mxu1 %v466_v33  ;;  %1284 = vmatprep.mubr.f32.mxu0 %v475_v36  ;;  %v894_v33 = vld [vmem:[#allocation7 + $0x7e0] sm:$0xff]  ;;  %v611_v6 = vld [vmem:[#allocation4 + $0x708] sm:$0xff]  ;;  %v913_v24 = vld [vmem:[#allocation7 + $0x878] sm:$0xff] }
  0xf8   :  { %2312 = vmatprep.mubr.f32.mxu1 %v475_v36  ;;  %4906 = vmatpush1.bf16.msra.mxu0 %v4905_v37  ;;  %v896_v36 = vld [vmem:[#allocation7 + $0x7f0] sm:$0xff]  ;;  %v899_v37 = vld [vmem:[#allocation7 + $0x808] sm:$0xff] }
  0xf9   :  { %5162 = vmatpush1.bf16.msra.mxu1 %v5161_v38  ;;  %4908 = vmatprep.subr.bf16.mxu0 %v4907_v39  ;;  %v903_v38 = vld [vmem:[#allocation7 + $0x828] sm:$0xff]  ;;  %v506_v39 = vld [vmem:[#allocation4 + $0x3c0] sm:$0xff]  ;;  %v5181_v44 = vpack.c.bf16 %v896_v36, %v892_v34  ;;  %v917_v36 = vld [vmem:[#allocation7 + $0x898] sm:$0xff] }
  0xfa   :  { %1285 = vmatmul.mubr.f32.gmra.mrb[30].mxu0 %v474_v47  ;;  %5164 = vmatprep.subr.bf16.mxu1 %v5163_v43  ;;  %v4925_v43 = vpack.c.bf16 %v894_v33, %v890_v32  ;;  %v4927_v45 = vpack.c.bf16 %v903_v38, %v899_v37  ;;  %v619_v8 = vld [vmem:[#allocation4 + $0x748] sm:$0xff]  ;;  %v912_v32 = vld [vmem:[#allocation7 + $0x870] sm:$0xff]  ;;  %v921_v37 = vld [vmem:[#allocation7 + $0x8b8] sm:$0xff] }
  0xfb   :  { %2313 = vmatmul.mubr.f32.gmra.mrb[30].mxu1 %v474_v47  ;;  %1290 = vmatprep.mubr.f32.mxu0 %v483_v50  ;;  %v514_v47 = vld [vmem:[#allocation4 + $0x400] sm:$0xff]  ;;  %v627_v10 = vld [vmem:[#allocation4 + $0x788] sm:$0xff]  ;;  %v405_v38 = vld [vmem:[#allocation4 + $0x98] sm:$0xff] }
  0xfc   :  { %2318 = vmatprep.mubr.f32.mxu1 %v483_v50  ;;  %4910 = vmatpush1.bf16.msra.mxu0 %v4909_v51  ;;  %v531_v50 = vld [vmem:[#allocation4 + $0x488] sm:$0xff]  ;;  %v530_v51 = vld [vmem:[#allocation4 + $0x480] sm:$0xff] }
  0xfd   :  { %5166 = vmatpush1.bf16.msra.mxu1 %v5165_v52  ;;  %4912 = vmatprep.subr.bf16.mxu0 %v4911_v53  ;;  %v539_v52 = vld [vmem:[#allocation4 + $0x4c8] sm:$0xff]  ;;  %v538_v53 = vld [vmem:[#allocation4 + $0x4c0] sm:$0xff] }
  0xfe   :  { %1291 = vmatmul.mubr.f32.gmra.mrb[32].mxu0 %v482_v61  ;;  %5168 = vmatprep.subr.bf16.mxu1 %v5167_v57  ;;  %v554_v57 = vld [vmem:[#allocation4 + $0x540] sm:$0xff]  ;;  %v907_v19 = vld [vmem:[#allocation7 + $0x848] sm:$0xff] }
  0xff   :  { %2319 = vmatmul.mubr.f32.gmra.mrb[32].mxu1 %v482_v61  ;;  %1296 = vmatprep.mubr.f32.mxu0 %v491_v0  ;;  %v570_v61 = vld [vmem:[#allocation4 + $0x5c0] sm:$0xff]  ;;  %v911_v20 = vld [vmem:[#allocation7 + $0x868] sm:$0xff] }
 0x100   :  { %2324 = vmatprep.mubr.f32.mxu1 %v491_v0  ;;  %4914 = vmatpush1.bf16.msra.mxu0 %v4913_v1  ;;  %v587_v0 = vld [vmem:[#allocation4 + $0x648] sm:$0xff]  ;;  %v586_v1 = vld [vmem:[#allocation4 + $0x640] sm:$0xff]  ;;  %v4931_v27 = vpack.c.bf16 %v911_v20, %v907_v19  ;;  %v429_v19 = vld [vmem:[#allocation4 + $0x158] sm:$0xff] }
 0x101   :  { %5170 = vmatpush1.bf16.msra.mxu1 %v5169_v2  ;;  %4916 = vmatprep.subr.bf16.mxu0 %v4915_v3  ;;  %v595_v2 = vld [vmem:[#allocation4 + $0x688] sm:$0xff]  ;;  %v594_v3 = vld [vmem:[#allocation4 + $0x680] sm:$0xff] }
 0x102   :  { %1297 = vmatmul.mubr.f32.gmra.mrb[34].mxu0 %v490_v11  ;;  %5172 = vmatprep.subr.bf16.mxu1 %v5171_v7  ;;  %v610_v7 = vld [vmem:[#allocation4 + $0x700] sm:$0xff]  ;;  %v915_v33 = vld [vmem:[#allocation7 + $0x888] sm:$0xff] }
 0x103   :  { %2325 = vmatmul.mubr.f32.gmra.mrb[34].mxu1 %v490_v11  ;;  %1302 = vmatprep.mubr.f32.mxu0 %v499_v14  ;;  %v626_v11 = vld [vmem:[#allocation4 + $0x780] sm:$0xff]  ;;  %v919_v34 = vld [vmem:[#allocation7 + $0x8a8] sm:$0xff] }
 0x104   :  { %2330 = vmatprep.mubr.f32.mxu1 %v499_v14  ;;  %4918 = vmatpush1.bf16.msra.mxu0 %v4917_v15  ;;  %v389_v14 = vld [vmem:[#allocation4 + $0x18] sm:$0xff]  ;;  %v898_v15 = vld [vmem:[#allocation7 + $0x800] sm:$0xff]  ;;  %v4935_v41 = vpack.c.bf16 %v919_v34, %v915_v33 }
 0x105   :  { %5174 = vmatpush1.bf16.msra.mxu1 %v5173_v16  ;;  %4920 = vmatprep.subr.bf16.mxu0 %v4919_v17  ;;  %v902_v16 = vld [vmem:[#allocation7 + $0x820] sm:$0xff]  ;;  %v900_v17 = vld [vmem:[#allocation7 + $0x810] sm:$0xff]  ;;  %v949_v33 = vld [vmem:[#allocation7 + $0x998] sm:$0xff] }
 0x106   :  { %1303 = vmatmul.mubr.f32.gmra.mrb[36].mxu0 %v498_v25  ;;  %5176 = vmatprep.subr.bf16.mxu1 %v5175_v21  ;;  %v388_v21 = vld [vmem:[#allocation4 + $0x10] sm:$0xff]  ;;  %v4929_v22 = vpack.c.bf16 %v902_v16, %v898_v15  ;;  %v5185_v26 = vpack.c.bf16 %v904_v18, %v900_v17  ;;  %v943_v15 = vld [vmem:[#allocation7 + $0x968] sm:$0xff]  ;;  %v941_v17 = vld [vmem:[#allocation7 + $0x958] sm:$0xff] }
 0x107   :  { %2331 = vmatmul.mubr.f32.gmra.mrb[36].mxu1 %v498_v25  ;;  %1308 = vmatprep.mubr.f32.mxu0 %v507_v28  ;;  %v397_v25 = vld [vmem:[#allocation4 + $0x58] sm:$0xff]  ;;  %v420_v16 = vld [vmem:[#allocation4 + $0x110] sm:$0xff] }
 0x108   :  { %2336 = vmatprep.mubr.f32.mxu1 %v507_v28  ;;  %4922 = vmatpush1.bf16.msra.mxu0 %v4921_v29  ;;  %v906_v28 = vld [vmem:[#allocation7 + $0x840] sm:$0xff]  ;;  %v945_v18 = vld [vmem:[#allocation7 + $0x978] sm:$0xff] }
 0x109   :  { %5178 = vmatpush1.bf16.msra.mxu1 %v5177_v30  ;;  %4924 = vmatprep.subr.bf16.mxu0 %v4923_v31  ;;  %v910_v29 = vld [vmem:[#allocation7 + $0x860] sm:$0xff]  ;;  %v908_v30 = vld [vmem:[#allocation7 + $0x850] sm:$0xff]  ;;  %v5187_v31 = vpack.c.bf16 %v913_v24, %v909_v23  ;;  %v953_v34 = vld [vmem:[#allocation7 + $0x9b8] sm:$0xff] }
 0x10a   :  { %1309 = vmatmul.mubr.f32.gmra.mrb[38].mxu0 %v506_v39  ;;  %5180 = vmatprep.subr.bf16.mxu1 %v5179_v35  ;;  %v396_v35 = vld [vmem:[#allocation4 + $0x50] sm:$0xff]  ;;  %v5189_v40 = vpack.c.bf16 %v912_v32, %v908_v30  ;;  %v947_v30 = vld [vmem:[#allocation7 + $0x988] sm:$0xff] }
 0x10b   :  { %2337 = vmatmul.mubr.f32.gmra.mrb[38].mxu1 %v506_v39  ;;  %1314 = vmatprep.mubr.f32.mxu0 %v515_v42  ;;  %v4933_v39 = vpack.c.bf16 %v910_v29, %v906_v28  ;;  %v5203_v28 = vpack.c.bf16 %v945_v18, %v941_v17  ;;  %v944_v29 = vld [vmem:[#allocation7 + $0x970] sm:$0xff]  ;;  %v962_v17 = vld [vmem:[#allocation7 + $0xa00] sm:$0xff] }
 0x10c   :  { %2342 = vmatprep.mubr.f32.mxu1 %v515_v42  ;;  %4926 = vmatpush1.bf16.msra.mxu0 %v4925_v43  ;;  %v914_v42 = vld [vmem:[#allocation7 + $0x880] sm:$0xff]  ;;  %v428_v32 = vld [vmem:[#allocation4 + $0x150] sm:$0xff] }
 0x10d   :  { %5182 = vmatpush1.bf16.msra.mxu1 %v5181_v44  ;;  %4928 = vmatprep.subr.bf16.mxu0 %v4927_v45  ;;  %v918_v43 = vld [vmem:[#allocation7 + $0x8a0] sm:$0xff]  ;;  %v916_v44 = vld [vmem:[#allocation7 + $0x890] sm:$0xff]  ;;  %v5191_v45 = vpack.c.bf16 %v921_v37, %v917_v36 }
 0x10e   :  { %1315 = vmatmul.mubr.f32.gmra.mrb[40].mxu0 %v514_v47  ;;  %5184 = vmatprep.subr.bf16.mxu1 %v5183_v46  ;;  %v920_v46 = vld [vmem:[#allocation7 + $0x8b0] sm:$0xff] }
 0x10f   :  { %2343 = vmatmul.mubr.f32.gmra.mrb[40].mxu1 %v514_v47  ;;  %1320 = vmatprep.mubr.f32.mxu0 %v523_v48  ;;  %v923_v47 = vld [vmem:[#allocation7 + $0x8c8] sm:$0xff] }
 0x110   :  { %2348 = vmatprep.mubr.f32.mxu1 %v523_v48  ;;  %v927_v48 = vld [vmem:[#allocation7 + $0x8e8] sm:$0xff] }
 0x112   :  { %1321 = vmatmul.mubr.f32.gmra.mrb[42].mxu0 %v522_v49 }
 0x113   :  { %2349 = vmatmul.mubr.f32.gmra.mrb[42].mxu1 %v522_v49  ;;  %1326 = vmatprep.mubr.f32.mxu0 %v531_v50  ;;  %v404_v49 = vld [vmem:[#allocation4 + $0x90] sm:$0xff] }
 0x114   :  { %2354 = vmatprep.mubr.f32.mxu1 %v531_v50  ;;  %v925_v50 = vld [vmem:[#allocation7 + $0x8d8] sm:$0xff] }
 0x116   :  { %1327 = vmatmul.mubr.f32.gmra.mrb[44].mxu0 %v530_v51 }
 0x117   :  { %2355 = vmatmul.mubr.f32.gmra.mrb[44].mxu1 %v530_v51  ;;  %1332 = vmatprep.mubr.f32.mxu0 %v539_v52  ;;  %v929_v51 = vld [vmem:[#allocation7 + $0x8f8] sm:$0xff] }
 0x118   :  { %2360 = vmatprep.mubr.f32.mxu1 %v539_v52  ;;  %v413_v52 = vld [vmem:[#allocation4 + $0xd8] sm:$0xff] }
 0x11a   :  { %1333 = vmatmul.mubr.f32.gmra.mrb[46].mxu0 %v538_v53 }
 0x11b   :  { %2361 = vmatmul.mubr.f32.gmra.mrb[46].mxu1 %v538_v53  ;;  %1338 = vmatprep.mubr.f32.mxu0 %v547_v54  ;;  %v4937_v53 = vpack.c.bf16 %v918_v43, %v914_v42  ;;  %v950_v42 = vld [vmem:[#allocation7 + $0x9a0] sm:$0xff] }
 0x11c   :  { %2366 = vmatprep.mubr.f32.mxu1 %v547_v54  ;;  %v5193_v54 = vpack.c.bf16 %v920_v46, %v916_v44  ;;  %v948_v46 = vld [vmem:[#allocation7 + $0x990] sm:$0xff] }
 0x11e   :  { %1339 = vmatmul.mubr.f32.gmra.mrb[48].mxu0 %v546_v55 }
 0x11f   :  { %2367 = vmatmul.mubr.f32.gmra.mrb[48].mxu1 %v546_v55  ;;  %1344 = vmatprep.mubr.f32.mxu0 %v555_v56  ;;  %v4939_v55 = vpack.c.bf16 %v927_v48, %v923_v47  ;;  %v952_v47 = vld [vmem:[#allocation7 + $0x9b0] sm:$0xff] }
 0x120   :  { %2372 = vmatprep.mubr.f32.mxu1 %v555_v56  ;;  %v922_v56 = vld [vmem:[#allocation7 + $0x8c0] sm:$0xff] }
 0x122   :  { %1345 = vmatmul.mubr.f32.gmra.mrb[50].mxu0 %v554_v57 }
 0x123   :  { %2373 = vmatmul.mubr.f32.gmra.mrb[50].mxu1 %v554_v57  ;;  %1350 = vmatprep.mubr.f32.mxu0 %v563_v58  ;;  %v926_v57 = vld [vmem:[#allocation7 + $0x8e0] sm:$0xff] }
 0x124   :  { %2378 = vmatprep.mubr.f32.mxu1 %v563_v58  ;;  %v924_v58 = vld [vmem:[#allocation7 + $0x8d0] sm:$0xff] }
 0x126   :  { %1351 = vmatmul.mubr.f32.gmra.mrb[52].mxu0 %v562_v59 }
 0x127   :  { %2379 = vmatmul.mubr.f32.gmra.mrb[52].mxu1 %v562_v59  ;;  %1356 = vmatprep.mubr.f32.mxu0 %v571_v60  ;;  %v5195_v59 = vpack.c.bf16 %v929_v51, %v925_v50  ;;  %v436_v51 = vld [vmem:[#allocation4 + $0x190] sm:$0xff] }
 0x128   :  { %2384 = vmatprep.mubr.f32.mxu1 %v571_v60  ;;  %v928_v60 = vld [vmem:[#allocation7 + $0x8f0] sm:$0xff] }
 0x12a   :  { %1357 = vmatmul.mubr.f32.gmra.mrb[54].mxu0 %v570_v61 }
 0x12b   :  { %2385 = vmatmul.mubr.f32.gmra.mrb[54].mxu1 %v570_v61  ;;  %1362 = vmatprep.mubr.f32.mxu0 %v579_v62  ;;  %v931_v61 = vld [vmem:[#allocation7 + $0x908] sm:$0xff] }
 0x12c   :  { %2390 = vmatprep.mubr.f32.mxu1 %v579_v62  ;;  %v935_v62 = vld [vmem:[#allocation7 + $0x928] sm:$0xff] }
 0x12e   :  { %1363 = vmatmul.mubr.f32.gmra.mrb[56].mxu0 %v578_v63 }
 0x12f   :  { %2391 = vmatmul.mubr.f32.gmra.mrb[56].mxu1 %v578_v63  ;;  %1368 = vmatprep.mubr.f32.mxu0 %v587_v0  ;;  %v412_v63 = vld [vmem:[#allocation4 + $0xd0] sm:$0xff] }
 0x130   :  { %2396 = vmatprep.mubr.f32.mxu1 %v587_v0  ;;  %v933_v0 = vld [vmem:[#allocation7 + $0x918] sm:$0xff] }
 0x132   :  { %1369 = vmatmul.mubr.f32.gmra.mrb[58].mxu0 %v586_v1 }
 0x133   :  { %2397 = vmatmul.mubr.f32.gmra.mrb[58].mxu1 %v586_v1  ;;  %1374 = vmatprep.mubr.f32.mxu0 %v595_v2  ;;  %v937_v1 = vld [vmem:[#allocation7 + $0x938] sm:$0xff] }
 0x134   :  { %2402 = vmatprep.mubr.f32.mxu1 %v595_v2  ;;  %v421_v2 = vld [vmem:[#allocation4 + $0x118] sm:$0xff] }
 0x136   :  { %1375 = vmatmul.mubr.f32.gmra.mrb[60].mxu0 %v594_v3 }
 0x137   :  { %2403 = vmatmul.mubr.f32.gmra.mrb[60].mxu1 %v594_v3  ;;  %1380 = vmatprep.mubr.f32.mxu0 %v603_v4  ;;  %v4941_v3 = vpack.c.bf16 %v926_v57, %v922_v56  ;;  %v955_v56 = vld [vmem:[#allocation7 + $0x9c8] sm:$0xff] }
 0x138   :  { %2408 = vmatprep.mubr.f32.mxu1 %v603_v4  ;;  %v5874_v4 = vmov 1966171168   ;;  %v959_v57 = vld [vmem:[#allocation7 + $0x9e8] sm:$0xff] }
 0x13a   :  { %1381 = vmatmul.mubr.f32.gmra.mrb[62].mxu0 %v602_v5 }
 0x13b   :  { %2409 = vmatmul.mubr.f32.gmra.mrb[62].mxu1 %v602_v5  ;;  %1386 = vmatprep.mubr.f32.mxu0 %v611_v6  ;;  %v3231_v5 = vunpack.c.l.s4 %v5874_v4  ;;  %v4955_v4 = vpack.c.bf16 %v959_v57, %v955_v56  ;;  %v983_v57 = vld [vmem:[#allocation7 + $0xaa8] sm:$0xff] }
 0x13c   :  { %2414 = vmatprep.mubr.f32.mxu1 %v611_v6  ;;  %v3233_v6 = vlaneseq }
 0x13e   :  { %1387 = vmatmul.mubr.f32.gmra.mrb[64].mxu0 %v610_v7 }
 0x13f   :  { %2415 = vmatmul.mubr.f32.gmra.mrb[64].mxu1 %v610_v7  ;;  %1392 = vmatprep.mubr.f32.mxu0 %v619_v8  ;;  %v5197_v7 = vpack.c.bf16 %v928_v60, %v924_v58  ;;  %v5209_v60 = vpack.c.bf16 %v952_v47, %v948_v46  ;;  %v5974_v46 = vld [vmem:[#allocation7 + $0xa50] sm:$0xff] }
 0x140   :  { %2420 = vmatprep.mubr.f32.mxu1 %v619_v8  ;;  %v4943_v8 = vpack.c.bf16 %v935_v62, %v931_v61  ;;  %v954_v61 = vld [vmem:[#allocation7 + $0x9c0] sm:$0xff]  ;;  %v5976_v47 = vld [vmem:[#allocation7 + $0xa70] sm:$0xff] }
 0x142   :  { %1393 = vmatmul.mubr.f32.gmra.mrb[66].mxu0 %v618_v9 }
 0x143   :  { %2421 = vmatmul.mubr.f32.gmra.mrb[66].mxu1 %v618_v9  ;;  %1398 = vmatprep.mubr.f32.mxu0 %v627_v10  ;;  %v930_v9 = vld [vmem:[#allocation7 + $0x900] sm:$0xff] }
 0x144   :  { %2426 = vmatprep.mubr.f32.mxu1 %v627_v10  ;;  %v934_v10 = vld [vmem:[#allocation7 + $0x920] sm:$0xff] }
 0x145   :  { %v4945_v20 = vpack.c.bf16 %v934_v10, %v930_v9 }
 0x146   :  { %1399 = vmatmul.mubr.f32.gmra.mrb[68].mxu0 %v626_v11 }
 0x147   :  { %2427 = vmatmul.mubr.f32.gmra.mrb[68].mxu1 %v626_v11  ;;  %1404 = vmatprep.mubr.f32.mxu0 %v635_v12  ;;  %v932_v11 = vld [vmem:[#allocation7 + $0x910] sm:$0xff] }
 0x148   :  { %2432 = vmatprep.mubr.f32.mxu1 %v635_v12  ;;  %v5199_v12 = vpack.c.bf16 %v937_v1, %v933_v0  ;;  %v958_v0 = vld [vmem:[#allocation7 + $0x9e0] sm:$0xff]  ;;  %v957_v1 = vld [vmem:[#allocation7 + $0x9d8] sm:$0xff] }
 0x14a   :  { %1405 = vmatmul.mubr.f32.gmra.mrb[70].mxu0 %v634_v13 }
 0x14b   :  { %2433 = vmatmul.mubr.f32.gmra.mrb[70].mxu1 %v634_v13  ;;  %1475 = vmatprep.mubr.f32.mxu0 %v389_v14  ;;  %v936_v13 = vld [vmem:[#allocation7 + $0x930] sm:$0xff] }
 0x14c   :  { %2503 = vmatprep.mubr.f32.mxu1 %v389_v14  ;;  %v939_v14 = vld [vmem:[#allocation7 + $0x948] sm:$0xff]  ;;  %v5201_v23 = vpack.c.bf16 %v936_v13, %v932_v11  ;;  %v4957_v13 = vpack.c.bf16 %v958_v0, %v954_v61  ;;  %v5985_v61 = vld [vmem:[#allocation7 + $0xaa0] sm:$0xff]  ;;  %v477_v0 = vld [vmem:[#allocation4 + $0x2d8] sm:$0xff] }
 0x14d   :  { %v4947_v24 = vpack.c.bf16 %v943_v15, %v939_v14  ;;  %v963_v15 = vld [vmem:[#allocation7 + $0xa08] sm:$0xff] }
 0x14e   :  { %1476 = vmatmul.mubr.f32.vlgmr.msra.gmra.mrb[8].mxu0 %v388_v21 }
 0x14f   :  { %2504 = vmatmul.mubr.f32.vlgmr.msra.gmra.mrb[8].mxu1 %v388_v21  ;;  %4930 = vmatpush1.bf16.msra.mxu0 %v4929_v22  ;;  %v3232_v21 = vunpack.c.0.s8 %v3231_v5  ;;  %v5949_v22 = vshrl.u32 %v3233_v6, 7  ;;  %v956_v5 = vld [vmem:[#allocation7 + $0x9d0] sm:$0xff] }
 0x150   :  { %1481 = vmatprep.mubr.f32.mxu0 %v397_v25  ;;  %2509 = vmatprep.mubr.f32.mxu1 %v397_v25  ;;  %v938_v25 = vld [vmem:[#allocation7 + $0x940] sm:$0xff] }
 0x151   :  { %5186 = vmatpush1.bf16.msra.mxu1 %v5185_v26  ;;  %4932 = vmatprep.subr.bf16.mxu0 %v4931_v27  ;;  %v942_v26 = vld [vmem:[#allocation7 + $0x960] sm:$0xff]  ;;  %v940_v27 = vld [vmem:[#allocation7 + $0x950] sm:$0xff] }
 0x152   :  { %1482 = vmatmul.mubr.f32.gmra.mrb[10].mxu0 %v396_v35  ;;  %5188 = vmatprep.subr.bf16.mxu1 %v5187_v31  ;;  %v951_v31 = vld [vmem:[#allocation7 + $0x9a8] sm:$0xff]  ;;  %v4949_v36 = vpack.c.bf16 %v942_v26, %v938_v25  ;;  %v968_v25 = vld [vmem:[#allocation7 + $0xa30] sm:$0xff]  ;;  %v461_v26 = vld [vmem:[#allocation4 + $0x258] sm:$0xff] }
 0x153   :  { %2510 = vmatmul.mubr.f32.gmra.mrb[10].mxu1 %v396_v35  ;;  %1487 = vmatprep.mubr.f32.mxu0 %v405_v38  ;;  %v437_v35 = vld [vmem:[#allocation4 + $0x198] sm:$0xff] }
 0x154   :  { %2515 = vmatprep.mubr.f32.mxu1 %v405_v38  ;;  %4934 = vmatpush1.bf16.msra.mxu0 %v4933_v39  ;;  %v5952_v38 = vsub.s32 %v3232_v21, %v5949_v22  ;;  %v5205_v39 = vpack.c.bf16 %v944_v29, %v940_v27  ;;  %v969_v21 = vld [vmem:[#allocation7 + $0xa38] sm:$0xff] }
 0x155   :  { %5190 = vmatpush1.bf16.msra.mxu1 %v5189_v40  ;;  %4936 = vmatprep.subr.bf16.mxu0 %v4935_v41  ;;  %v4951_v40 = vpack.c.bf16 %v951_v31, %v947_v30  ;;  %v946_v41 = vld [vmem:[#allocation7 + $0x980] sm:$0xff]  ;;  %v971_v30 = vld [vmem:[#allocation7 + $0xa48] sm:$0xff] }
 0x156   :  { %1488 = vmatmul.mubr.f32.gmra.mrb[12].mxu0 %v404_v49  ;;  %5192 = vmatprep.subr.bf16.mxu1 %v5191_v45  ;;  %v5207_v45 = vpack.c.bf16 %v953_v34, %v949_v33  ;;  %v975_v31 = vld [vmem:[#allocation7 + $0xa68] sm:$0xff] }
 0x157   :  { %2516 = vmatmul.mubr.f32.gmra.mrb[12].mxu1 %v404_v49  ;;  %1493 = vmatprep.mubr.f32.mxu0 %v413_v52 }
 0x158   :  { %2521 = vmatprep.mubr.f32.mxu1 %v413_v52  ;;  %4938 = vmatpush1.bf16.msra.mxu0 %v4937_v53 }
 0x159   :  { %5194 = vmatpush1.bf16.msra.mxu1 %v5193_v54  ;;  %4940 = vmatprep.subr.bf16.mxu0 %v4939_v55  ;;  %v445_v54 = vld [vmem:[#allocation4 + $0x1d8] sm:$0xff]  ;;  %v4953_v55 = vpack.c.bf16 %v950_v42, %v946_v41 }
 0x15a   :  { %1494 = vmatmul.mubr.f32.gmra.mrb[14].mxu0 %v412_v63  ;;  %5196 = vmatprep.subr.bf16.mxu1 %v5195_v59  ;;  %v469_v41 = vld [vmem:[#allocation4 + $0x298] sm:$0xff] }
 0x15b   :  { %2522 = vmatmul.mubr.f32.gmra.mrb[14].mxu1 %v412_v63  ;;  %1499 = vmatprep.mubr.f32.mxu0 %v421_v2 }
 0x15c   :  { %2527 = vmatprep.mubr.f32.mxu1 %v421_v2  ;;  %4942 = vmatpush1.bf16.msra.mxu0 %v4941_v3  ;;  %v961_v2 = vld [vmem:[#allocation7 + $0x9f8] sm:$0xff]  ;;  %v444_v3 = vld [vmem:[#allocation4 + $0x1d0] sm:$0xff] }
 0x15d   :  { %5198 = vmatpush1.bf16.msra.mxu1 %v5197_v7  ;;  %4944 = vmatprep.subr.bf16.mxu0 %v4943_v8  ;;  %v960_v7 = vld [vmem:[#allocation7 + $0x9f0] sm:$0xff]  ;;  %v5211_v14 = vpack.c.bf16 %v961_v2, %v957_v1 }
 0x15e   :  { %1500 = vmatmul.mubr.f32.gmra.mrb[16].mxu0 %v420_v16  ;;  %5200 = vmatprep.subr.bf16.mxu1 %v5199_v12  ;;  %v453_v12 = vld [vmem:[#allocation4 + $0x218] sm:$0xff]  ;;  %v5213_v18 = vpack.c.bf16 %v960_v7, %v956_v5 }
 0x15f   :  { %2528 = vmatmul.mubr.f32.gmra.mrb[16].mxu1 %v420_v16  ;;  %1505 = vmatprep.mubr.f32.mxu0 %v429_v19  ;;  %v967_v16 = vld [vmem:[#allocation7 + $0xa28] sm:$0xff]  ;;  %v5994_v5 = vld [vmem:[#allocation7 + $0xab8] sm:$0xff] }
 0x160   :  { %2533 = vmatprep.mubr.f32.mxu1 %v429_v19  ;;  %4946 = vmatpush1.bf16.msra.mxu0 %v4945_v20  ;;  %v966_v19 = vld [vmem:[#allocation7 + $0xa20] sm:$0xff]  ;;  %v965_v20 = vld [vmem:[#allocation7 + $0xa18] sm:$0xff]  ;;  %v4959_v27 = vpack.c.bf16 %v967_v16, %v963_v15  ;;  %v6002_v15 = vld [vmem:[#allocation7 + $0xa90] sm:$0xff] }
 0x161   :  { %v274_v37 = vpop.f32.mrb[0].mxu0  ;;  %5202 = vmatpush1.bf16.msra.mxu1 %v5201_v23  ;;  %4948 = vmatprep.subr.bf16.mxu0 %v4947_v24  ;;  %v452_v23 = vld [vmem:[#allocation4 + $0x210] sm:$0xff]  ;;  %v5215_v29 = vpack.c.bf16 %v969_v21, %v965_v20 }
 0x162   :  { %v363_v43 = vpop.f32.mrb[0].mxu1  ;;  %v276_v44 = vpop.f32.mrb[1].mxu0  ;;  %1506 = vmatmul.mubr.f32.gmra.mrb[18].mxu0 %v428_v32  ;;  %5204 = vmatprep.subr.bf16.mxu1 %v5203_v28  ;;  %v964_v24 = vld [vmem:[#allocation7 + $0xa10] sm:$0xff]  ;;  %v4961_v28 = vpack.c.bf16 %v966_v19, %v962_v17  ;;  %v6006_v17 = vld [vmem:[#allocation7 + $0xac8] sm:$0xff] }
 0x163   :  { %v3226_v48 = vcombine.low %v274_v37, %v276_v44  ;;  %v3227_v49 = vcombine.high %v274_v37, %v276_v44  ;;  %v365_v50 = vpop.f32.mrb[1].mxu1  ;;  %2534 = vmatmul.mubr.f32.gmra.mrb[18].mxu1 %v428_v32  ;;  %1511 = vmatprep.mubr.f32.mxu0 %v437_v35  ;;  %v970_v32 = vld [vmem:[#allocation7 + $0xa40] sm:$0xff]  ;;  %v5217_v33 = vpack.c.bf16 %v968_v25, %v964_v24  ;;  %v977_v37 = vld [vmem:[#allocation7 + $0xa78] sm:$0xff]  ;;  %v6004_v16 = vld [vmem:[#allocation7 + $0xab0] sm:$0xff] }
 0x164   :  { %v3228_v52 = vcombine.low %v363_v43, %v365_v50  ;;  %v3229_v53 = vcombine.high %v363_v43, %v365_v50  ;;  %2539 = vmatprep.mubr.f32.mxu1 %v437_v35  ;;  %4950 = vmatpush1.bf16.msra.mxu0 %v4949_v36  ;;  %v974_v35 = vld [vmem:[#allocation7 + $0xa60] sm:$0xff]  ;;  %v973_v36 = vld [vmem:[#allocation7 + $0xa58] sm:$0xff] }
 0x165   :  { %v5955_v58 = vrot.slane %v3226_v48, %v5952_v38  ;;  %v5958_v59 = vrot.slane %v3227_v49, %v5952_v38  ;;  %5206 = vmatpush1.bf16.msra.mxu1 %v5205_v39  ;;  %4952 = vmatprep.subr.bf16.mxu0 %v4951_v40  ;;  %v460_v39 = vld [vmem:[#allocation4 + $0x250] sm:$0xff]  ;;  %v280_v42 = vpop.f32.mrb[2].mxu0  ;;  %v4965_v50 = vpack.c.bf16 %v974_v35, %v970_v32  ;;  %v6013_v24 = vld [vmem:[#allocation7 + $0xad8] sm:$0xff] }
 0x166   :  { %v5961_v62 = vrot.slane %v3228_v52, %v5952_v38  ;;  %v5964_v63 = vrot.slane %v3229_v53, %v5952_v38  ;;  %1512 = vmatmul.mubr.f32.gmra.mrb[20].mxu0 %v436_v51  ;;  %5208 = vmatprep.subr.bf16.mxu1 %v5207_v45  ;;  %v369_v34 = vpop.f32.mrb[2].mxu1  ;;  %v4963_v45 = vpack.c.bf16 %v975_v31, %v971_v30  ;;  %v468_v48 = vld [vmem:[#allocation4 + $0x290] sm:$0xff]  ;;  %v282_v49 = vpop.f32.mrb[3].mxu0  ;;  %v5978_v52 = vld [vmem:[#allocation7 + $0xa88] sm:$0xff]  ;;  %v6015_v25 = vld [vmem:[#allocation7 + $0xaf8] sm:$0xff] }
 0x167   :  { %2540 = vmatmul.mubr.f32.gmra.mrb[20].mxu1 %v436_v51  ;;  %1517 = vmatprep.mubr.f32.mxu0 %v445_v54  ;;  %v371_v40 = vpop.f32.mrb[3].mxu1  ;;  %v5219_v51 = vpack.c.bf16 %v977_v37, %v973_v36  ;;  %v3294_v53 = vcombine.low %v280_v42, %v282_v49  ;;  %v4967_v20 = vpack.c.bf16 %v983_v57, %v5978_v52  ;;  %v476_v31 = vld [vmem:[#allocation4 + $0x2d0] sm:$0xff]  ;;  %v485_v36 = vld [vmem:[#allocation4 + $0x318] sm:$0xff] }
 0x168   :  { %v3258_v8 = vcombine.low %v5955_v58, %v5961_v62  ;;  %v3259_v9 = vcombine.high %v5955_v58, %v5961_v62  ;;  %v3260_v10 = vcombine.low %v5958_v59, %v5964_v63  ;;  %v3261_v11 = vcombine.high %v5958_v59, %v5964_v63  ;;  %2545 = vmatprep.mubr.f32.mxu1 %v445_v54 }
 0x169   :  { %4954 = vmatpush1.bf16.msra.mxu0 %v4953_v55  ;;  %5210 = vmatpush1.bf16.msra.mxu1 %v5209_v60  ;;  %v3296_v43 = vcombine.low %v369_v34, %v371_v40  ;;  %v3297_v44 = vcombine.high %v369_v34, %v371_v40  ;;  %v3295_v54 = vcombine.high %v280_v42, %v282_v49  ;;  %v5983_v60 = vld [vmem:[#allocation7 + $0xa80] sm:$0xff] }
 0x16a   :  { %1518 = vmatmul.mubr.f32.gmra.mrb[22].mxu0 %v444_v3  ;;  %4956 = vmatprep.subr.bf16.mxu0 %v4955_v4  ;;  %v375_v56 = vpop.f32.mrb[4].mxu1  ;;  %v5992_v4 = vld [vmem:[#allocation7 + $0xa98] sm:$0xff]  ;;  %v5997_v7 = vrot.slane %v3294_v53, %v5952_v38  ;;  %v4969_v21 = vpack.c.bf16 %v5985_v61, %v5983_v60  ;;  %v5225_v40 = vpack.c.bf16 %v6004_v16, %v6002_v15  ;;  %v988_v15 = vld [vmem:[#allocation7 + $0xad0] sm:$0xff] }
 0x16b   :  { %2546 = vmatmul.mubr.f32.gmra.mrb[22].mxu1 %v444_v3  ;;  %1523 = vmatprep.mubr.f32.mxu0 %v453_v12  ;;  %v5981_v55 = vrot.slane %v3296_v43, %v5952_v38  ;;  %v5988_v1 = vrot.slane %v3297_v44, %v5952_v38  ;;  %v377_v2 = vpop.f32.mrb[5].mxu1  ;;  %v5221_v3 = vpack.c.bf16 %v5976_v47, %v5974_v46  ;;  %v992_v16 = vld [vmem:[#allocation7 + $0xaf0] sm:$0xff] }
 0x16c   :  { %2551 = vmatprep.mubr.f32.mxu1 %v453_v12  ;;  %5212 = vmatprep.subr.bf16.mxu1 %v5211_v14  ;;  %v6000_v12 = vrot.slane %v3295_v54, %v5952_v38  ;;  %v3364_v14 = vcombine.low %v375_v56, %v377_v2  ;;  %v3365_v19 = vcombine.high %v375_v56, %v377_v2  ;;  %v493_v56 = vld [vmem:[#allocation4 + $0x358] sm:$0xff]  ;;  %v986_v2 = vld [vmem:[#allocation7 + $0xac0] sm:$0xff] }
 0x16d   :  { %4958 = vmatpush1.bf16.msra.mxu0 %v4957_v13  ;;  %5214 = vmatpush1.bf16.msra.mxu1 %v5213_v18  ;;  %v286_v13 = vpop.f32.mrb[4].mxu0  ;;  %v5227_v42 = vpack.c.bf16 %v6015_v25, %v6013_v24  ;;  %v492_v24 = vld [vmem:[#allocation4 + $0x350] sm:$0xff] }
 0x16e   :  { %1524 = vmatmul.mubr.f32.gmra.mrb[24].mxu0 %v452_v23  ;;  %4960 = vmatprep.subr.bf16.mxu0 %v4959_v27  ;;  %v288_v18 = vpop.f32.mrb[5].mxu0  ;;  %v3327_v27 = vcombine.high %v5997_v7, %v5981_v55  ;;  %v381_v30 = vpop.f32.mrb[6].mxu1  ;;  %v3386_v34 = vrot.slane %v3364_v14, %v5952_v38 }
 0x16f   :  { %2552 = vmatmul.mubr.f32.gmra.mrb[24].mxu1 %v452_v23  ;;  %1529 = vmatprep.mubr.f32.mxu0 %v461_v26  ;;  %v6011_v23 = vld [vmem:[#allocation7 + $0xae8] sm:$0xff]  ;;  %v3362_v32 = vcombine.low %v286_v13, %v288_v18  ;;  %v383_v35 = vpop.f32.mrb[7].mxu1  ;;  %v292_v37 = vpop.f32.mrb[6].mxu0 }
 0x170   :  { %2557 = vmatprep.mubr.f32.mxu1 %v461_v26  ;;  %5216 = vmatprep.subr.bf16.mxu1 %v5215_v29  ;;  %v3326_v26 = vcombine.low %v5997_v7, %v5981_v55  ;;  %v3329_v29 = vcombine.high %v6000_v12, %v5988_v1  ;;  %v294_v46 = vpop.f32.mrb[7].mxu0  ;;  %v3432_v47 = vcombine.low %v381_v30, %v383_v35 }
 0x171   :  { %4962 = vmatpush1.bf16.msra.mxu0 %v4961_v28  ;;  %5218 = vmatpush1.bf16.msra.mxu1 %v5217_v33  ;;  %v3328_v28 = vcombine.low %v6000_v12, %v5988_v1  ;;  %v3363_v33 = vcombine.high %v286_v13, %v288_v18  ;;  %v3372_v43 = vrot.slane %v3362_v32, %v5952_v38  ;;  %v997_v32 = vld [vmem:[#allocation7 + $0xb18] sm:$0xff] }
 0x172   :  { %1530 = vmatmul.mubr.f32.gmra.mrb[26].mxu0 %v460_v39  ;;  %4964 = vmatprep.subr.bf16.mxu0 %v4963_v45  ;;  %v3393_v45 = vrot.slane %v3365_v19, %v5952_v38  ;;  %v3431_v49 = vcombine.high %v292_v37, %v294_v46 }
 0x173   :  { %2558 = vmatmul.mubr.f32.gmra.mrb[26].mxu1 %v460_v39  ;;  %1535 = vmatprep.mubr.f32.mxu0 %v469_v41  ;;  %v5223_v39 = vpack.c.bf16 %v5994_v5, %v5992_v4  ;;  %v3379_v44 = vrot.slane %v3363_v33, %v5952_v38  ;;  %v3394_v52 = vcombine.low %v3372_v43, %v3386_v34  ;;  %v1001_v33 = vld [vmem:[#allocation7 + $0xb38] sm:$0xff] }
 0x174   :  { %2563 = vmatprep.mubr.f32.mxu1 %v469_v41  ;;  %5220 = vmatprep.subr.bf16.mxu1 %v5219_v51  ;;  %v4971_v41 = vpack.c.bf16 %v6011_v23, %v6006_v17  ;;  %v484_v51 = vld [vmem:[#allocation4 + $0x310] sm:$0xff]  ;;  %v3395_v53 = vcombine.high %v3372_v43, %v3386_v34  ;;  %v3447_v61 = vrot.slane %v3431_v49, %v5952_v38  ;;  %v999_v23 = vld [vmem:[#allocation7 + $0xb28] sm:$0xff] }
 0x175   :  { %4966 = vmatpush1.bf16.msra.mxu0 %v4965_v50  ;;  %5222 = vmatpush1.bf16.msra.mxu1 %v5221_v3  ;;  %v3433_v50 = vcombine.high %v381_v30, %v383_v35  ;;  %v3396_v54 = vcombine.low %v3379_v44, %v3393_v45  ;;  %v3397_v57 = vcombine.high %v3379_v44, %v3393_v45  ;;  %v990_v3 = vld [vmem:[#allocation7 + $0xae0] sm:$0xff]  ;;  %v1003_v49 = vld [vmem:[#allocation7 + $0xb48] sm:$0xff] }
 0x176   :  { %1536 = vmatmul.mubr.f32.gmra.mrb[28].mxu0 %v468_v48  ;;  %4968 = vmatprep.subr.bf16.mxu0 %v4967_v20  ;;  %v6041_v4 = vrot.slane %v3394_v52, %v5952_v38  ;;  %v6047_v13 = vrot.slane %v3395_v53, %v5952_v38  ;;  %v995_v20 = vld [vmem:[#allocation7 + $0xb08] sm:$0xff]  ;;  %v994_v44 = vld [vmem:[#allocation7 + $0xb00] sm:$0xff]  ;;  %v1009_v52 = vld [vmem:[#allocation7 + $0xb78] sm:$0xff] }
 0x177   :  { %2564 = vmatmul.mubr.f32.gmra.mrb[28].mxu1 %v468_v48  ;;  %1541 = vmatprep.mubr.f32.mxu0 %v477_v0  ;;  %v3430_v48 = vcombine.low %v292_v37, %v294_v46  ;;  %v6044_v5 = vrot.slane %v3396_v54, %v5952_v38  ;;  %v3461_v14 = vrot.slane %v3433_v50, %v5952_v38  ;;  %v998_v45 = vld [vmem:[#allocation7 + $0xb20] sm:$0xff]  ;;  %v996_v46 = vld [vmem:[#allocation7 + $0xb10] sm:$0xff]  ;;  %v1007_v50 = vld [vmem:[#allocation7 + $0xb68] sm:$0xff] }
 0x178   :  { %2569 = vmatprep.mubr.f32.mxu1 %v477_v0  ;;  %v3454_v0 = vrot.slane %v3432_v47, %v5952_v38  ;;  %v6051_v17 = vrot.slane %v3397_v57, %v5952_v38  ;;  %5224 = vmatprep.subr.bf16.mxu1 %v5223_v39  ;;  %v4975_v43 = vpack.c.bf16 %v999_v23, %v995_v20  ;;  %v509_v53 = vld [vmem:[#allocation4 + $0x3d8] sm:$0xff]  ;;  %v1006_v57 = vld [vmem:[#allocation7 + $0xb60] sm:$0xff] }
 0x179   :  { %v3440_v60 = vrot.slane %v3430_v48, %v5952_v38  ;;  %4970 = vmatpush1.bf16.msra.mxu0 %v4969_v21  ;;  %v3464_v25 = vcombine.low %v3447_v61, %v3461_v14  ;;  %v3465_v30 = vcombine.high %v3447_v61, %v3461_v14  ;;  %v501_v21 = vld [vmem:[#allocation4 + $0x398] sm:$0xff]  ;;  %5226 = vmatpush1.bf16.msra.mxu1 %v5225_v40  ;;  %v1000_v48 = vld [vmem:[#allocation7 + $0xb30] sm:$0xff] }
 0x17a   :  { %1542 = vmatmul.mubr.f32.gmra.mrb[30].mxu0 %v476_v31  ;;  %4972 = vmatprep.subr.bf16.mxu0 %v4971_v41  ;;  %v5231_v47 = vpack.c.bf16 %v1001_v33, %v997_v32  ;;  %v500_v40 = vld [vmem:[#allocation4 + $0x390] sm:$0xff]  ;;  %v4977_v54 = vpack.c.bf16 %v998_v45, %v994_v44  ;;  %v5233_v41 = vpack.c.bf16 %v1000_v48, %v996_v46  ;;  %v1019_v33 = vld [vmem:[#allocation7 + $0xbc8] sm:$0xff]  ;;  %v1025_v44 = vld [vmem:[#allocation7 + $0xbf8] sm:$0xff] }
 0x17b   :  { %2570 = vmatmul.mubr.f32.gmra.mrb[30].mxu1 %v476_v31  ;;  %1547 = vmatprep.mubr.f32.mxu0 %v485_v36  ;;  %v3462_v18 = vcombine.low %v3440_v60, %v3454_v0  ;;  %v3463_v19 = vcombine.high %v3440_v60, %v3454_v0  ;;  %v4973_v31 = vpack.c.bf16 %v990_v3, %v986_v2  ;;  %v1004_v60 = vld [vmem:[#allocation7 + $0xb50] sm:$0xff]  ;;  %v1011_v2 = vld [vmem:[#allocation7 + $0xb88] sm:$0xff]  ;;  %v525_v45 = vld [vmem:[#allocation4 + $0x458] sm:$0xff] }
 0x17c   :  { %2575 = vmatprep.mubr.f32.mxu1 %v485_v36  ;;  %v5229_v36 = vpack.c.bf16 %v992_v16, %v988_v15  ;;  %v6060_v37 = vrot.slane %v3464_v25, %v5952_v38  ;;  %v6063_v39 = vrot.slane %v3465_v30, %v5952_v38  ;;  %5228 = vmatprep.subr.bf16.mxu1 %v5227_v42  ;;  %v1008_v0 = vld [vmem:[#allocation7 + $0xb70] sm:$0xff]  ;;  %v1015_v3 = vld [vmem:[#allocation7 + $0xba8] sm:$0xff]  ;;  %v1013_v15 = vld [vmem:[#allocation7 + $0xb98] sm:$0xff] }
 0x17d   :  { %v6054_v34 = vrot.slane %v3462_v18, %v5952_v38  ;;  %v6057_v35 = vrot.slane %v3463_v19, %v5952_v38  ;;  %4974 = vmatpush1.bf16.msra.mxu0 %v4973_v31  ;;  %v4979_v42 = vpack.c.bf16 %v1007_v50, %v1003_v49  ;;  %v508_v14 = vld [vmem:[#allocation4 + $0x3d0] sm:$0xff]  ;;  %v1017_v16 = vld [vmem:[#allocation7 + $0xbb8] sm:$0xff]  ;;  %v5237_v20 = vpack.c.bf16 %v1008_v0, %v1004_v60  ;;  %v1014_v25 = vld [vmem:[#allocation7 + $0xba0] sm:$0xff] }
 0x17e   :  { %1548 = vmatmul.mubr.f32.gmra.mrb[32].mxu0 %v484_v51  ;;  %5230 = vmatpush1.bf16.msra.mxu1 %v5229_v36  ;;  %v517_v18 = vld [vmem:[#allocation4 + $0x418] sm:$0xff]  ;;  %v4983_v23 = vpack.c.bf16 %v1015_v3, %v1011_v2  ;;  %v1012_v30 = vld [vmem:[#allocation7 + $0xb90] sm:$0xff]  ;;  %v5239_v31 = vpack.c.bf16 %v1017_v16, %v1013_v15  ;;  %v1018_v49 = vld [vmem:[#allocation7 + $0xbc0] sm:$0xff] }
 0x17f   :  { %2576 = vmatmul.mubr.f32.gmra.mrb[32].mxu1 %v484_v51  ;;  %1553 = vmatprep.mubr.f32.mxu0 %v493_v56  ;;  %v1005_v51 = vld [vmem:[#allocation7 + $0xb58] sm:$0xff]  ;;  %v1016_v32 = vld [vmem:[#allocation7 + $0xbb0] sm:$0xff]  ;;  %v1022_v50 = vld [vmem:[#allocation7 + $0xbe0] sm:$0xff] }
 0x180   :  { %2581 = vmatprep.mubr.f32.mxu1 %v493_v56  ;;  %4976 = vmatprep.subr.bf16.mxu0 %v4975_v43  ;;  %v1002_v56 = vld [vmem:[#allocation7 + $0xb40] sm:$0xff]  ;;  %v5235_v61 = vpack.c.bf16 %v1009_v52, %v1005_v51  ;;  %v516_v36 = vld [vmem:[#allocation4 + $0x410] sm:$0xff]  ;;  %v1021_v43 = vld [vmem:[#allocation7 + $0xbd8] sm:$0xff]  ;;  %v4989_v60 = vpack.c.bf16 %v1022_v50, %v1018_v49 }
 0x181   :  { %5232 = vmatprep.subr.bf16.mxu1 %v5231_v47  ;;  %4978 = vmatpush1.bf16.msra.mxu0 %v4977_v54  ;;  %v4981_v19 = vpack.c.bf16 %v1006_v57, %v1002_v56  ;;  %v5241_v47 = vpack.c.bf16 %v1016_v32, %v1012_v30  ;;  %v5243_v51 = vpack.c.bf16 %v1025_v44, %v1021_v43  ;;  %v1024_v52 = vld [vmem:[#allocation7 + $0xbf0] sm:$0xff]  ;;  %v1031_v54 = vld [vmem:[#allocation7 + $0xc28] sm:$0xff]  ;;  %v1033_v56 = vld [vmem:[#allocation7 + $0xc38] sm:$0xff] }
 0x182   :  { %1554 = vmatmul.mubr.f32.gmra.mrb[34].mxu0 %v492_v24  ;;  %5234 = vmatpush1.bf16.msra.mxu1 %v5233_v41  ;;  %v524_v41 = vld [vmem:[#allocation4 + $0x450] sm:$0xff]  ;;  %v533_v57 = vld [vmem:[#allocation4 + $0x498] sm:$0xff] }
 0x183   :  { %2582 = vmatmul.mubr.f32.gmra.mrb[34].mxu1 %v492_v24  ;;  %1559 = vmatprep.mubr.f32.mxu0 %v501_v21  ;;  %v1010_v24 = vld [vmem:[#allocation7 + $0xb80] sm:$0xff]  ;;  %v532_v3 = vld [vmem:[#allocation4 + $0x490] sm:$0xff]  ;;  %v549_v16 = vld [vmem:[#allocation4 + $0x518] sm:$0xff] }
 0x184   :  { %2587 = vmatprep.mubr.f32.mxu1 %v501_v21  ;;  %4980 = vmatprep.subr.bf16.mxu0 %v4979_v42  ;;  %v1023_v21 = vld [vmem:[#allocation7 + $0xbe8] sm:$0xff]  ;;  %v4985_v46 = vpack.c.bf16 %v1014_v25, %v1010_v24  ;;  %v1029_v42 = vld [vmem:[#allocation7 + $0xc18] sm:$0xff]  ;;  %v540_v15 = vld [vmem:[#allocation4 + $0x4d0] sm:$0xff] }
 0x185   :  { %5236 = vmatprep.subr.bf16.mxu1 %v5235_v61  ;;  %4982 = vmatpush1.bf16.msra.mxu0 %v4981_v19  ;;  %v4987_v48 = vpack.c.bf16 %v1023_v21, %v1019_v33  ;;  %v5247_v2 = vpack.c.bf16 %v1033_v56, %v1029_v42  ;;  %v557_v19 = vld [vmem:[#allocation4 + $0x558] sm:$0xff]  ;;  %v564_v24 = vld [vmem:[#allocation4 + $0x590] sm:$0xff] }
 0x186   :  { %1560 = vmatmul.mubr.f32.gmra.mrb[36].mxu0 %v500_v40  ;;  %5238 = vmatpush1.bf16.msra.mxu1 %v5237_v20  ;;  %v556_v20 = vld [vmem:[#allocation4 + $0x550] sm:$0xff]  ;;  %v573_v25 = vld [vmem:[#allocation4 + $0x5d8] sm:$0xff] }
 0x187   :  { %2588 = vmatmul.mubr.f32.gmra.mrb[36].mxu1 %v500_v40  ;;  %1565 = vmatprep.mubr.f32.mxu0 %v509_v53  ;;  %v1020_v40 = vld [vmem:[#allocation7 + $0xbd0] sm:$0xff]  ;;  %v589_v33 = vld [vmem:[#allocation4 + $0x658] sm:$0xff] }
 0x188   :  { %2593 = vmatprep.mubr.f32.mxu1 %v509_v53  ;;  %4984 = vmatprep.subr.bf16.mxu0 %v4983_v23  ;;  %v1027_v53 = vld [vmem:[#allocation7 + $0xc08] sm:$0xff]  ;;  %v5245_v61 = vpack.c.bf16 %v1024_v52, %v1020_v40  ;;  %v565_v23 = vld [vmem:[#allocation4 + $0x598] sm:$0xff]  ;;  %v572_v30 = vld [vmem:[#allocation4 + $0x5d0] sm:$0xff] }
 0x189   :  { %5240 = vmatprep.subr.bf16.mxu1 %v5239_v31  ;;  %4986 = vmatpush1.bf16.msra.mxu0 %v4985_v46  ;;  %v4991_v0 = vpack.c.bf16 %v1031_v54, %v1027_v53  ;;  %v581_v31 = vld [vmem:[#allocation4 + $0x618] sm:$0xff]  ;;  %v580_v32 = vld [vmem:[#allocation4 + $0x610] sm:$0xff]  ;;  %v391_v53 = vld [vmem:[#allocation4 + $0x28] sm:$0xff] }
 0x18a   :  { %1566 = vmatmul.mubr.f32.gmra.mrb[38].mxu0 %v508_v14  ;;  %5242 = vmatpush1.bf16.msra.mxu1 %v5241_v47  ;;  %v588_v21 = vld [vmem:[#allocation4 + $0x650] sm:$0xff]  ;;  %v605_v44 = vld [vmem:[#allocation4 + $0x6d8] sm:$0xff]  ;;  %v1026_v54 = vld [vmem:[#allocation7 + $0xc00] sm:$0xff] }
 0x18b   :  { %2594 = vmatmul.mubr.f32.gmra.mrb[38].mxu1 %v508_v14  ;;  %1571 = vmatprep.mubr.f32.mxu0 %v517_v18  ;;  %v541_v14 = vld [vmem:[#allocation4 + $0x4d8] sm:$0xff]  ;;  %v596_v43 = vld [vmem:[#allocation4 + $0x690] sm:$0xff] }
 0x18c   :  { %2599 = vmatprep.mubr.f32.mxu1 %v517_v18  ;;  %4988 = vmatprep.subr.bf16.mxu0 %v4987_v48  ;;  %v548_v18 = vld [vmem:[#allocation4 + $0x510] sm:$0xff]  ;;  %v613_v46 = vld [vmem:[#allocation4 + $0x718] sm:$0xff] }
 0x18d   :  { %5244 = vmatprep.subr.bf16.mxu1 %v5243_v51  ;;  %4990 = vmatpush1.bf16.msra.mxu0 %v4989_v60  ;;  %v612_v47 = vld [vmem:[#allocation4 + $0x710] sm:$0xff]  ;;  %v621_v48 = vld [vmem:[#allocation4 + $0x758] sm:$0xff]  ;;  %v1039_v60 = vld [vmem:[#allocation7 + $0xc68] sm:$0xff] }
 0x18e   :  { %1572 = vmatmul.mubr.f32.gmra.mrb[40].mxu0 %v516_v36  ;;  %5246 = vmatpush1.bf16.msra.mxu1 %v5245_v61  ;;  %v620_v49 = vld [vmem:[#allocation4 + $0x750] sm:$0xff]  ;;  %v629_v50 = vld [vmem:[#allocation4 + $0x798] sm:$0xff]  ;;  %v390_v61 = vld [vmem:[#allocation4 + $0x20] sm:$0xff] }
 0x18f   :  { %2600 = vmatmul.mubr.f32.gmra.mrb[40].mxu1 %v516_v36  ;;  %1577 = vmatprep.mubr.f32.mxu0 %v525_v45  ;;  %v597_v36 = vld [vmem:[#allocation4 + $0x698] sm:$0xff]  ;;  %v628_v40 = vld [vmem:[#allocation4 + $0x790] sm:$0xff] }
 0x190   :  { %2605 = vmatprep.mubr.f32.mxu1 %v525_v45  ;;  %4992 = vmatprep.subr.bf16.mxu0 %v4991_v0  ;;  %v604_v45 = vld [vmem:[#allocation4 + $0x6d0] sm:$0xff]  ;;  %v637_v51 = vld [vmem:[#allocation4 + $0x7d8] sm:$0xff] }
 0x191   :  { %5248 = vmatprep.subr.bf16.mxu1 %v5247_v2  ;;  %v636_v52 = vld [vmem:[#allocation4 + $0x7d0] sm:$0xff]  ;;  %v1037_v2 = vld [vmem:[#allocation7 + $0xc58] sm:$0xff] }
 0x192   :  { %1578 = vmatmul.mubr.f32.gmra.mrb[42].mxu0 %v524_v41  ;;  %v1028_v42 = vld [vmem:[#allocation7 + $0xc10] sm:$0xff] }
 0x193   :  { %2606 = vmatmul.mubr.f32.gmra.mrb[42].mxu1 %v524_v41  ;;  %1583 = vmatprep.mubr.f32.mxu0 %v533_v57  ;;  %v1030_v41 = vld [vmem:[#allocation7 + $0xc20] sm:$0xff]  ;;  %v1032_v56 = vld [vmem:[#allocation7 + $0xc30] sm:$0xff] }
 0x194   :  { %2611 = vmatprep.mubr.f32.mxu1 %v533_v57  ;;  %v1035_v57 = vld [vmem:[#allocation7 + $0xc48] sm:$0xff]  ;;  %v4993_v0 = vpack.c.bf16 %v1030_v41, %v1026_v54 }
 0x195   :  { %v415_v54 = vld [vmem:[#allocation4 + $0xe8] sm:$0xff] }
 0x196   :  { %1584 = vmatmul.mubr.f32.gmra.mrb[44].mxu0 %v532_v3 }
 0x197   :  { %2612 = vmatmul.mubr.f32.gmra.mrb[44].mxu1 %v532_v3  ;;  %1589 = vmatprep.mubr.f32.mxu0 %v541_v14  ;;  %v1041_v3 = vld [vmem:[#allocation7 + $0xc78] sm:$0xff] }
 0x198   :  { %2617 = vmatprep.mubr.f32.mxu1 %v541_v14  ;;  %v399_v14 = vld [vmem:[#allocation4 + $0x68] sm:$0xff] }
 0x19a   :  { %1590 = vmatmul.mubr.f32.gmra.mrb[46].mxu0 %v540_v15 }
 0x19b   :  { %2618 = vmatmul.mubr.f32.gmra.mrb[46].mxu1 %v540_v15  ;;  %1595 = vmatprep.mubr.f32.mxu0 %v549_v16  ;;  %v5249_v15 = vpack.c.bf16 %v1032_v56, %v1028_v42 }
 0x19c   :  { %2623 = vmatprep.mubr.f32.mxu1 %v549_v16  ;;  %v4995_v16 = vpack.c.bf16 %v1039_v60, %v1035_v57  ;;  %v1050_v57 = vld [vmem:[#allocation7 + $0xcc0] sm:$0xff] }
 0x19d   :  { %v1054_v60 = vld [vmem:[#allocation7 + $0xce0] sm:$0xff] }
 0x19e   :  { %1596 = vmatmul.mubr.f32.gmra.mrb[48].mxu0 %v548_v18 }
 0x19f   :  { %2624 = vmatmul.mubr.f32.gmra.mrb[48].mxu1 %v548_v18  ;;  %1601 = vmatprep.mubr.f32.mxu0 %v557_v19  ;;  %v1034_v18 = vld [vmem:[#allocation7 + $0xc40] sm:$0xff] }
 0x1a0   :  { %2629 = vmatprep.mubr.f32.mxu1 %v557_v19  ;;  %v1038_v19 = vld [vmem:[#allocation7 + $0xc60] sm:$0xff] }
 0x1a2   :  { %1602 = vmatmul.mubr.f32.gmra.mrb[50].mxu0 %v556_v20 }
 0x1a3   :  { %2630 = vmatmul.mubr.f32.gmra.mrb[50].mxu1 %v556_v20  ;;  %1607 = vmatprep.mubr.f32.mxu0 %v565_v23  ;;  %v1036_v20 = vld [vmem:[#allocation7 + $0xc50] sm:$0xff] }
 0x1a4   :  { %2635 = vmatprep.mubr.f32.mxu1 %v565_v23  ;;  %v5251_v23 = vpack.c.bf16 %v1041_v3, %v1037_v2  ;;  %v1056_v2 = vld [vmem:[#allocation7 + $0xcf0] sm:$0xff]  ;;  %v1059_v3 = vld [vmem:[#allocation7 + $0xd08] sm:$0xff] }
 0x1a6   :  { %1608 = vmatmul.mubr.f32.gmra.mrb[52].mxu0 %v564_v24 }
 0x1a7   :  { %2636 = vmatmul.mubr.f32.gmra.mrb[52].mxu1 %v564_v24  ;;  %1613 = vmatprep.mubr.f32.mxu0 %v573_v25  ;;  %v1040_v24 = vld [vmem:[#allocation7 + $0xc70] sm:$0xff] }
 0x1a8   :  { %2641 = vmatprep.mubr.f32.mxu1 %v573_v25  ;;  %v1043_v25 = vld [vmem:[#allocation7 + $0xc88] sm:$0xff] }
 0x1aa   :  { %1614 = vmatmul.mubr.f32.gmra.mrb[54].mxu0 %v572_v30 }
 0x1ab   :  { %2642 = vmatmul.mubr.f32.gmra.mrb[54].mxu1 %v572_v30  ;;  %1619 = vmatprep.mubr.f32.mxu0 %v581_v31  ;;  %v1047_v30 = vld [vmem:[#allocation7 + $0xca8] sm:$0xff] }
 0x1ac   :  { %2647 = vmatprep.mubr.f32.mxu1 %v581_v31  ;;  %v398_v31 = vld [vmem:[#allocation4 + $0x60] sm:$0xff] }
 0x1ae   :  { %1620 = vmatmul.mubr.f32.gmra.mrb[56].mxu0 %v580_v32 }
 0x1af   :  { %2648 = vmatmul.mubr.f32.gmra.mrb[56].mxu1 %v580_v32  ;;  %1625 = vmatprep.mubr.f32.mxu0 %v589_v33  ;;  %v1045_v32 = vld [vmem:[#allocation7 + $0xc98] sm:$0xff] }
 0x1b0   :  { %2653 = vmatprep.mubr.f32.mxu1 %v589_v33  ;;  %v1049_v33 = vld [vmem:[#allocation7 + $0xcb8] sm:$0xff] }
 0x1b2   :  { %1626 = vmatmul.mubr.f32.gmra.mrb[58].mxu0 %v588_v21 }
 0x1b3   :  { %2654 = vmatmul.mubr.f32.gmra.mrb[58].mxu1 %v588_v21  ;;  %1631 = vmatprep.mubr.f32.mxu0 %v597_v36  ;;  %v407_v21 = vld [vmem:[#allocation4 + $0xa8] sm:$0xff] }
 0x1b4   :  { %2659 = vmatprep.mubr.f32.mxu1 %v597_v36  ;;  %v4997_v36 = vpack.c.bf16 %v1038_v19, %v1034_v18  ;;  %v1065_v18 = vld [vmem:[#allocation7 + $0xd38] sm:$0xff]  ;;  %v423_v19 = vld [vmem:[#allocation4 + $0x128] sm:$0xff] }
 0x1b6   :  { %1632 = vmatmul.mubr.f32.gmra.mrb[60].mxu0 %v596_v43 }
 0x1b7   :  { %2660 = vmatmul.mubr.f32.gmra.mrb[60].mxu1 %v596_v43  ;;  %1637 = vmatprep.mubr.f32.mxu0 %v605_v44  ;;  %v5253_v43 = vpack.c.bf16 %v1040_v24, %v1036_v20  ;;  %v5005_v20 = vpack.c.bf16 %v1054_v60, %v1050_v57  ;;  %v1081_v57 = vld [vmem:[#allocation7 + $0xdb8] sm:$0xff]  ;;  %v439_v60 = vld [vmem:[#allocation4 + $0x1a8] sm:$0xff] }
 0x1b8   :  { %2665 = vmatprep.mubr.f32.mxu1 %v605_v44  ;;  %v4999_v44 = vpack.c.bf16 %v1047_v30, %v1043_v25  ;;  %v1058_v25 = vld [vmem:[#allocation7 + $0xd00] sm:$0xff] }
 0x1b9   :  { %v1062_v30 = vld [vmem:[#allocation7 + $0xd20] sm:$0xff] }
 0x1ba   :  { %1638 = vmatmul.mubr.f32.gmra.mrb[62].mxu0 %v604_v45 }
 0x1bb   :  { %2666 = vmatmul.mubr.f32.gmra.mrb[62].mxu1 %v604_v45  ;;  %1643 = vmatprep.mubr.f32.mxu0 %v613_v46  ;;  %v1042_v45 = vld [vmem:[#allocation7 + $0xc80] sm:$0xff] }
 0x1bc   :  { %2671 = vmatprep.mubr.f32.mxu1 %v613_v46  ;;  %v1046_v46 = vld [vmem:[#allocation7 + $0xca0] sm:$0xff] }
 0x1bd   :  { %v5001_v41 = vpack.c.bf16 %v1046_v46, %v1042_v45  ;;  %v1073_v45 = vld [vmem:[#allocation7 + $0xd78] sm:$0xff]  ;;  %v431_v46 = vld [vmem:[#allocation4 + $0x168] sm:$0xff] }
 0x1be   :  { %1644 = vmatmul.mubr.f32.gmra.mrb[64].mxu0 %v612_v47 }
 0x1bf   :  { %2672 = vmatmul.mubr.f32.gmra.mrb[64].mxu1 %v612_v47  ;;  %1649 = vmatprep.mubr.f32.mxu0 %v621_v48  ;;  %v1044_v47 = vld [vmem:[#allocation7 + $0xc90] sm:$0xff] }
 0x1c0   :  { %2677 = vmatprep.mubr.f32.mxu1 %v621_v48  ;;  %v5255_v48 = vpack.c.bf16 %v1049_v33, %v1045_v32  ;;  %v1064_v33 = vld [vmem:[#allocation7 + $0xd30] sm:$0xff] }
 0x1c2   :  { %1650 = vmatmul.mubr.f32.gmra.mrb[66].mxu0 %v620_v49 }
 0x1c3   :  { %2678 = vmatmul.mubr.f32.gmra.mrb[66].mxu1 %v620_v49  ;;  %1655 = vmatprep.mubr.f32.mxu0 %v629_v50  ;;  %v1048_v49 = vld [vmem:[#allocation7 + $0xcb0] sm:$0xff] }
 0x1c4   :  { %2683 = vmatprep.mubr.f32.mxu1 %v629_v50  ;;  %v1051_v50 = vld [vmem:[#allocation7 + $0xcc8] sm:$0xff]  ;;  %v5257_v42 = vpack.c.bf16 %v1048_v49, %v1044_v47  ;;  %v5009_v47 = vpack.c.bf16 %v1062_v30, %v1058_v25  ;;  %v1089_v25 = vld [vmem:[#allocation7 + $0xdf8] sm:$0xff] }
 0x1c5   :  { %v447_v30 = vld [vmem:[#allocation4 + $0x1e8] sm:$0xff] }
 0x1c6   :  { %1656 = vmatmul.mubr.f32.gmra.mrb[68].mxu0 %v628_v40 }
 0x1c7   :  { %2684 = vmatmul.mubr.f32.gmra.mrb[68].mxu1 %v628_v40  ;;  %1661 = vmatprep.mubr.f32.mxu0 %v637_v51  ;;  %v1055_v40 = vld [vmem:[#allocation7 + $0xce8] sm:$0xff] }
 0x1c8   :  { %2689 = vmatprep.mubr.f32.mxu1 %v637_v51  ;;  %v406_v51 = vld [vmem:[#allocation4 + $0xa0] sm:$0xff]  ;;  %v5003_v56 = vpack.c.bf16 %v1055_v40, %v1051_v50 }
 0x1c9   :  { %v1066_v50 = vld [vmem:[#allocation7 + $0xd40] sm:$0xff] }
 0x1ca   :  { %1662 = vmatmul.mubr.f32.gmra.mrb[70].mxu0 %v636_v52  ;;  %v1070_v40 = vld [vmem:[#allocation7 + $0xd60] sm:$0xff] }
 0x1cb   :  { %2690 = vmatmul.mubr.f32.gmra.mrb[70].mxu1 %v636_v52  ;;  %1732 = vmatprep.mubr.f32.mxu0 %v391_v53  ;;  %v1053_v52 = vld [vmem:[#allocation7 + $0xcd8] sm:$0xff] }
 0x1cc   :  { %2760 = vmatprep.mubr.f32.mxu1 %v391_v53  ;;  %v1057_v53 = vld [vmem:[#allocation7 + $0xcf8] sm:$0xff] }
 0x1ce   :  { %1733 = vmatmul.mubr.f32.vlgmr.msra.gmra.mrb[8].mxu0 %v390_v61 }
 0x1cf   :  { %2761 = vmatmul.mubr.f32.vlgmr.msra.gmra.mrb[8].mxu1 %v390_v61  ;;  %4994 = vmatpush1.bf16.msra.mxu0 %v4993_v0  ;;  %v1052_v61 = vld [vmem:[#allocation7 + $0xcd0] sm:$0xff]  ;;  %v5259_v0 = vpack.c.bf16 %v1057_v53, %v1053_v52 }
 0x1d0   :  { %1738 = vmatprep.mubr.f32.mxu0 %v399_v14  ;;  %2766 = vmatprep.mubr.f32.mxu1 %v399_v14  ;;  %v1063_v14 = vld [vmem:[#allocation7 + $0xd28] sm:$0xff]  ;;  %v1072_v53 = vld [vmem:[#allocation7 + $0xd70] sm:$0xff] }
 0x1d1   :  { %5250 = vmatpush1.bf16.msra.mxu1 %v5249_v15  ;;  %4996 = vmatprep.subr.bf16.mxu0 %v4995_v16  ;;  %v414_v15 = vld [vmem:[#allocation4 + $0xe0] sm:$0xff]  ;;  %v1061_v16 = vld [vmem:[#allocation7 + $0xd18] sm:$0xff]  ;;  %v5007_v24 = vpack.c.bf16 %v1063_v14, %v1059_v3 }
 0x1d2   :  { %1739 = vmatmul.mubr.f32.gmra.mrb[10].mxu0 %v398_v31  ;;  %5252 = vmatprep.subr.bf16.mxu1 %v5251_v23  ;;  %v5261_v23 = vpack.c.bf16 %v1056_v2, %v1052_v61  ;;  %v5263_v32 = vpack.c.bf16 %v1065_v18, %v1061_v16  ;;  %v5013_v61 = vpack.c.bf16 %v1070_v40, %v1066_v50  ;;  %v1074_v3 = vld [vmem:[#allocation7 + $0xd80] sm:$0xff]  ;;  %v1080_v18 = vld [vmem:[#allocation7 + $0xdb0] sm:$0xff]  ;;  %v1097_v50 = vld [vmem:[#allocation7 + $0xe38] sm:$0xff] }
 0x1d3   :  { %2767 = vmatmul.mubr.f32.gmra.mrb[10].mxu1 %v398_v31  ;;  %1744 = vmatprep.mubr.f32.mxu0 %v407_v21  ;;  %v1060_v31 = vld [vmem:[#allocation7 + $0xd10] sm:$0xff]  ;;  %v1078_v14 = vld [vmem:[#allocation7 + $0xda0] sm:$0xff]  ;;  %v455_v40 = vld [vmem:[#allocation4 + $0x228] sm:$0xff] }
 0x1d4   :  { %2772 = vmatprep.mubr.f32.mxu1 %v407_v21  ;;  %4998 = vmatpush1.bf16.msra.mxu0 %v4997_v36  ;;  %v1067_v21 = vld [vmem:[#allocation7 + $0xd48] sm:$0xff] }
 0x1d5   :  { %5254 = vmatpush1.bf16.msra.mxu1 %v5253_v43  ;;  %5000 = vmatprep.subr.bf16.mxu0 %v4999_v44  ;;  %v1071_v36 = vld [vmem:[#allocation7 + $0xd68] sm:$0xff]  ;;  %v422_v43 = vld [vmem:[#allocation4 + $0x120] sm:$0xff]  ;;  %v1069_v44 = vld [vmem:[#allocation7 + $0xd58] sm:$0xff] }
 0x1d6   :  { %1745 = vmatmul.mubr.f32.gmra.mrb[12].mxu0 %v406_v51  ;;  %5256 = vmatprep.subr.bf16.mxu1 %v5255_v48  ;;  %v5265_v48 = vpack.c.bf16 %v1064_v33, %v1060_v31  ;;  %v5011_v49 = vpack.c.bf16 %v1071_v36, %v1067_v21  ;;  %v5267_v52 = vpack.c.bf16 %v1073_v45, %v1069_v44  ;;  %v1082_v21 = vld [vmem:[#allocation7 + $0xdc0] sm:$0xff]  ;;  %v1088_v45 = vld [vmem:[#allocation7 + $0xdf0] sm:$0xff] }
 0x1d7   :  { %2773 = vmatmul.mubr.f32.gmra.mrb[12].mxu1 %v406_v51  ;;  %1750 = vmatprep.mubr.f32.mxu0 %v415_v54  ;;  %v1068_v51 = vld [vmem:[#allocation7 + $0xd50] sm:$0xff]  ;;  %v5017_v31 = vpack.c.bf16 %v1078_v14, %v1074_v3  ;;  %v1086_v36 = vld [vmem:[#allocation7 + $0xde0] sm:$0xff]  ;;  %v1105_v3 = vld [vmem:[#allocation7 + $0xe78] sm:$0xff] }
 0x1d8   :  { %2778 = vmatprep.mubr.f32.mxu1 %v415_v54  ;;  %5002 = vmatpush1.bf16.msra.mxu0 %v5001_v41  ;;  %v1075_v54 = vld [vmem:[#allocation7 + $0xd88] sm:$0xff] }
 0x1d9   :  { %5258 = vmatpush1.bf16.msra.mxu1 %v5257_v42  ;;  %5004 = vmatprep.subr.bf16.mxu0 %v5003_v56  ;;  %v1079_v41 = vld [vmem:[#allocation7 + $0xda8] sm:$0xff]  ;;  %v430_v42 = vld [vmem:[#allocation4 + $0x160] sm:$0xff]  ;;  %v1077_v56 = vld [vmem:[#allocation7 + $0xd98] sm:$0xff] }
 0x1da   :  { %1751 = vmatmul.mubr.f32.gmra.mrb[14].mxu0 %v414_v15  ;;  %5260 = vmatprep.subr.bf16.mxu1 %v5259_v0  ;;  %v5269_v0 = vpack.c.bf16 %v1072_v53, %v1068_v51  ;;  %v5015_v2 = vpack.c.bf16 %v1079_v41, %v1075_v54  ;;  %v5271_v16 = vpack.c.bf16 %v1081_v57, %v1077_v56  ;;  %v1090_v54 = vld [vmem:[#allocation7 + $0xe00] sm:$0xff]  ;;  %v1096_v57 = vld [vmem:[#allocation7 + $0xe30] sm:$0xff]  ;;  %v463_v14 = vld [vmem:[#allocation4 + $0x268] sm:$0xff] }
 0x1db   :  { %2779 = vmatmul.mubr.f32.gmra.mrb[14].mxu1 %v414_v15  ;;  %1756 = vmatprep.mubr.f32.mxu0 %v423_v19  ;;  %v1076_v15 = vld [vmem:[#allocation7 + $0xd90] sm:$0xff]  ;;  %v5021_v51 = vpack.c.bf16 %v1086_v36, %v1082_v21  ;;  %v1094_v41 = vld [vmem:[#allocation7 + $0xe20] sm:$0xff]  ;;  %v1113_v21 = vld [vmem:[#allocation7 + $0xeb8] sm:$0xff] }
 0x1dc   :  { %2784 = vmatprep.mubr.f32.mxu1 %v423_v19  ;;  %5006 = vmatpush1.bf16.msra.mxu0 %v5005_v20  ;;  %v1083_v19 = vld [vmem:[#allocation7 + $0xdc8] sm:$0xff] }
 0x1dd   :  { %5262 = vmatpush1.bf16.msra.mxu1 %v5261_v23  ;;  %5008 = vmatprep.subr.bf16.mxu0 %v5007_v24  ;;  %v1087_v20 = vld [vmem:[#allocation7 + $0xde8] sm:$0xff]  ;;  %v438_v23 = vld [vmem:[#allocation4 + $0x1a0] sm:$0xff]  ;;  %v1085_v24 = vld [vmem:[#allocation7 + $0xdd8] sm:$0xff] }
 0x1de   :  { %1757 = vmatmul.mubr.f32.gmra.mrb[16].mxu0 %v422_v43  ;;  %5264 = vmatprep.subr.bf16.mxu1 %v5263_v32  ;;  %v5273_v32 = vpack.c.bf16 %v1080_v18, %v1076_v15  ;;  %v5019_v33 = vpack.c.bf16 %v1087_v20, %v1083_v19  ;;  %v5275_v44 = vpack.c.bf16 %v1089_v25, %v1085_v24  ;;  %v1098_v19 = vld [vmem:[#allocation7 + $0xe40] sm:$0xff]  ;;  %v1104_v25 = vld [vmem:[#allocation7 + $0xe70] sm:$0xff]  ;;  %v471_v36 = vld [vmem:[#allocation4 + $0x2a8] sm:$0xff] }
 0x1df   :  { %2785 = vmatmul.mubr.f32.gmra.mrb[16].mxu1 %v422_v43  ;;  %1762 = vmatprep.mubr.f32.mxu0 %v431_v46  ;;  %v1084_v43 = vld [vmem:[#allocation7 + $0xdd0] sm:$0xff]  ;;  %v5025_v15 = vpack.c.bf16 %v1094_v41, %v1090_v54  ;;  %v1102_v20 = vld [vmem:[#allocation7 + $0xe60] sm:$0xff]  ;;  %v1121_v54 = vld [vmem:[#allocation7 + $0xef8] sm:$0xff] }
 0x1e0   :  { %2790 = vmatprep.mubr.f32.mxu1 %v431_v46  ;;  %5010 = vmatpush1.bf16.msra.mxu0 %v5009_v47  ;;  %v1091_v46 = vld [vmem:[#allocation7 + $0xe08] sm:$0xff] }
 0x1e1   :  { %5266 = vmatpush1.bf16.msra.mxu1 %v5265_v48  ;;  %5012 = vmatprep.subr.bf16.mxu0 %v5011_v49  ;;  %v1095_v47 = vld [vmem:[#allocation7 + $0xe28] sm:$0xff]  ;;  %v446_v48 = vld [vmem:[#allocation4 + $0x1e0] sm:$0xff]  ;;  %v1093_v49 = vld [vmem:[#allocation7 + $0xe18] sm:$0xff] }
 0x1e2   :  { %1763 = vmatmul.mubr.f32.gmra.mrb[18].mxu0 %v430_v42  ;;  %5268 = vmatprep.subr.bf16.mxu1 %v5267_v52  ;;  %v5277_v52 = vpack.c.bf16 %v1088_v45, %v1084_v43  ;;  %v5023_v53 = vpack.c.bf16 %v1095_v47, %v1091_v46  ;;  %v5279_v56 = vpack.c.bf16 %v1097_v50, %v1093_v49  ;;  %v1106_v46 = vld [vmem:[#allocation7 + $0xe80] sm:$0xff]  ;;  %v1112_v50 = vld [vmem:[#allocation7 + $0xeb0] sm:$0xff]  ;;  %v479_v41 = vld [vmem:[#allocation4 + $0x2e8] sm:$0xff] }
 0x1e3   :  { %2791 = vmatmul.mubr.f32.gmra.mrb[18].mxu1 %v430_v42  ;;  %1768 = vmatprep.mubr.f32.mxu0 %v439_v60  ;;  %v1092_v42 = vld [vmem:[#allocation7 + $0xe10] sm:$0xff]  ;;  %v5029_v43 = vpack.c.bf16 %v1102_v20, %v1098_v19  ;;  %v1110_v47 = vld [vmem:[#allocation7 + $0xea0] sm:$0xff]  ;;  %v1129_v19 = vld [vmem:[#allocation7 + $0xf38] sm:$0xff] }
 0x1e4   :  { %2796 = vmatprep.mubr.f32.mxu1 %v439_v60  ;;  %5014 = vmatpush1.bf16.msra.mxu0 %v5013_v61  ;;  %v1099_v60 = vld [vmem:[#allocation7 + $0xe48] sm:$0xff] }
 0x1e5   :  { %5270 = vmatpush1.bf16.msra.mxu1 %v5269_v0  ;;  %5016 = vmatprep.subr.bf16.mxu0 %v5015_v2  ;;  %v1103_v61 = vld [vmem:[#allocation7 + $0xe68] sm:$0xff]  ;;  %v454_v0 = vld [vmem:[#allocation4 + $0x220] sm:$0xff]  ;;  %v1101_v2 = vld [vmem:[#allocation7 + $0xe58] sm:$0xff] }
 0x1e6   :  { %1769 = vmatmul.mubr.f32.gmra.mrb[20].mxu0 %v438_v23  ;;  %5272 = vmatprep.subr.bf16.mxu1 %v5271_v16  ;;  %v5281_v16 = vpack.c.bf16 %v1096_v57, %v1092_v42  ;;  %v5027_v18 = vpack.c.bf16 %v1103_v61, %v1099_v60  ;;  %v5283_v24 = vpack.c.bf16 %v1105_v3, %v1101_v2  ;;  %v1114_v60 = vld [vmem:[#allocation7 + $0xec0] sm:$0xff]  ;;  %v1120_v3 = vld [vmem:[#allocation7 + $0xef0] sm:$0xff]  ;;  %v487_v20 = vld [vmem:[#allocation4 + $0x328] sm:$0xff] }
 0x1e7   :  { %2797 = vmatmul.mubr.f32.gmra.mrb[20].mxu1 %v438_v23  ;;  %1774 = vmatprep.mubr.f32.mxu0 %v447_v30  ;;  %v1100_v23 = vld [vmem:[#allocation7 + $0xe50] sm:$0xff]  ;;  %v5033_v42 = vpack.c.bf16 %v1110_v47, %v1106_v46  ;;  %v1118_v61 = vld [vmem:[#allocation7 + $0xee0] sm:$0xff]  ;;  %v1137_v46 = vld [vmem:[#allocation7 + $0xf78] sm:$0xff] }
 0x1e8   :  { %2802 = vmatprep.mubr.f32.mxu1 %v447_v30  ;;  %5018 = vmatpush1.bf16.msra.mxu0 %v5017_v31  ;;  %v1107_v30 = vld [vmem:[#allocation7 + $0xe88] sm:$0xff] }
 0x1e9   :  { %5274 = vmatpush1.bf16.msra.mxu1 %v5273_v32  ;;  %5020 = vmatprep.subr.bf16.mxu0 %v5019_v33  ;;  %v1111_v31 = vld [vmem:[#allocation7 + $0xea8] sm:$0xff]  ;;  %v462_v32 = vld [vmem:[#allocation4 + $0x260] sm:$0xff]  ;;  %v1109_v33 = vld [vmem:[#allocation7 + $0xe98] sm:$0xff] }
 0x1ea   :  { %1775 = vmatmul.mubr.f32.gmra.mrb[22].mxu0 %v446_v48  ;;  %5276 = vmatprep.subr.bf16.mxu1 %v5275_v44  ;;  %v5285_v44 = vpack.c.bf16 %v1104_v25, %v1100_v23  ;;  %v5031_v45 = vpack.c.bf16 %v1111_v31, %v1107_v30  ;;  %v5287_v49 = vpack.c.bf16 %v1113_v21, %v1109_v33  ;;  %v1122_v30 = vld [vmem:[#allocation7 + $0xf00] sm:$0xff]  ;;  %v1128_v21 = vld [vmem:[#allocation7 + $0xf30] sm:$0xff]  ;;  %v495_v47 = vld [vmem:[#allocation4 + $0x368] sm:$0xff] }
 0x1eb   :  { %2803 = vmatmul.mubr.f32.gmra.mrb[22].mxu1 %v446_v48  ;;  %1780 = vmatprep.mubr.f32.mxu0 %v455_v40  ;;  %v1108_v48 = vld [vmem:[#allocation7 + $0xe90] sm:$0xff]  ;;  %v5037_v23 = vpack.c.bf16 %v1118_v61, %v1114_v60  ;;  %v1126_v31 = vld [vmem:[#allocation7 + $0xf20] sm:$0xff]  ;;  %v1145_v60 = vld [vmem:[#allocation7 + $0xfb8] sm:$0xff] }
 0x1ec   :  { %2808 = vmatprep.mubr.f32.mxu1 %v455_v40  ;;  %5022 = vmatpush1.bf16.msra.mxu0 %v5021_v51  ;;  %v1115_v40 = vld [vmem:[#allocation7 + $0xec8] sm:$0xff] }
 0x1ed   :  { %5278 = vmatpush1.bf16.msra.mxu1 %v5277_v52  ;;  %5024 = vmatprep.subr.bf16.mxu0 %v5023_v53  ;;  %v1119_v51 = vld [vmem:[#allocation7 + $0xee8] sm:$0xff]  ;;  %v470_v52 = vld [vmem:[#allocation4 + $0x2a0] sm:$0xff]  ;;  %v1117_v53 = vld [vmem:[#allocation7 + $0xed8] sm:$0xff] }
 0x1ee   :  { %1781 = vmatmul.mubr.f32.gmra.mrb[24].mxu0 %v454_v0  ;;  %5280 = vmatprep.subr.bf16.mxu1 %v5279_v56  ;;  %v5289_v56 = vpack.c.bf16 %v1112_v50, %v1108_v48  ;;  %v5035_v57 = vpack.c.bf16 %v1119_v51, %v1115_v40  ;;  %v5291_v2 = vpack.c.bf16 %v1121_v54, %v1117_v53  ;;  %v1130_v40 = vld [vmem:[#allocation7 + $0xf40] sm:$0xff]  ;;  %v1136_v54 = vld [vmem:[#allocation7 + $0xf70] sm:$0xff]  ;;  %v503_v61 = vld [vmem:[#allocation4 + $0x3a8] sm:$0xff] }
 0x1ef   :  { %2809 = vmatmul.mubr.f32.gmra.mrb[24].mxu1 %v454_v0  ;;  %1786 = vmatprep.mubr.f32.mxu0 %v463_v14  ;;  %v1116_v0 = vld [vmem:[#allocation7 + $0xed0] sm:$0xff]  ;;  %v5041_v48 = vpack.c.bf16 %v1126_v31, %v1122_v30  ;;  %v1134_v51 = vld [vmem:[#allocation7 + $0xf60] sm:$0xff]  ;;  %v1153_v30 = vld [vmem:[#allocation7 + $0xff8] sm:$0xff] }
 0x1f0   :  { %2814 = vmatprep.mubr.f32.mxu1 %v463_v14  ;;  %5026 = vmatpush1.bf16.msra.mxu0 %v5025_v15  ;;  %v1123_v14 = vld [vmem:[#allocation7 + $0xf08] sm:$0xff] }
 0x1f1   :  { %5282 = vmatpush1.bf16.msra.mxu1 %v5281_v16  ;;  %5028 = vmatprep.subr.bf16.mxu0 %v5027_v18  ;;  %v1127_v15 = vld [vmem:[#allocation7 + $0xf28] sm:$0xff]  ;;  %v478_v16 = vld [vmem:[#allocation4 + $0x2e0] sm:$0xff]  ;;  %v1125_v18 = vld [vmem:[#allocation7 + $0xf18] sm:$0xff] }
 0x1f2   :  { %1787 = vmatmul.mubr.f32.gmra.mrb[26].mxu0 %v462_v32  ;;  %5284 = vmatprep.subr.bf16.mxu1 %v5283_v24  ;;  %v5293_v24 = vpack.c.bf16 %v1120_v3, %v1116_v0  ;;  %v5039_v25 = vpack.c.bf16 %v1127_v15, %v1123_v14  ;;  %v5295_v33 = vpack.c.bf16 %v1129_v19, %v1125_v18  ;;  %v1138_v14 = vld [vmem:[#allocation7 + $0xf80] sm:$0xff]  ;;  %v1144_v19 = vld [vmem:[#allocation7 + $0xfb0] sm:$0xff]  ;;  %v511_v31 = vld [vmem:[#allocation4 + $0x3e8] sm:$0xff] }
 0x1f3   :  { %2815 = vmatmul.mubr.f32.gmra.mrb[26].mxu1 %v462_v32  ;;  %1792 = vmatprep.mubr.f32.mxu0 %v471_v36  ;;  %v1124_v32 = vld [vmem:[#allocation7 + $0xf10] sm:$0xff]  ;;  %v5045_v0 = vpack.c.bf16 %v1134_v51, %v1130_v40  ;;  %v1142_v15 = vld [vmem:[#allocation7 + $0xfa0] sm:$0xff]  ;;  %v527_v51 = vld [vmem:[#allocation4 + $0x468] sm:$0xff] }
 0x1f4   :  { %2820 = vmatprep.mubr.f32.mxu1 %v471_v36  ;;  %5030 = vmatpush1.bf16.msra.mxu0 %v5029_v43  ;;  %v1131_v36 = vld [vmem:[#allocation7 + $0xf48] sm:$0xff]  ;;  %v518_v40 = vld [vmem:[#allocation4 + $0x420] sm:$0xff] }
 0x1f5   :  { %5286 = vmatpush1.bf16.msra.mxu1 %v5285_v44  ;;  %5032 = vmatprep.subr.bf16.mxu0 %v5031_v45  ;;  %v1135_v43 = vld [vmem:[#allocation7 + $0xf68] sm:$0xff]  ;;  %v486_v44 = vld [vmem:[#allocation4 + $0x320] sm:$0xff]  ;;  %v1133_v45 = vld [vmem:[#allocation7 + $0xf58] sm:$0xff] }
 0x1f6   :  { %1793 = vmatmul.mubr.f32.gmra.mrb[28].mxu0 %v470_v52  ;;  %5288 = vmatprep.subr.bf16.mxu1 %v5287_v49  ;;  %v5297_v49 = vpack.c.bf16 %v1128_v21, %v1124_v32  ;;  %v5043_v50 = vpack.c.bf16 %v1135_v43, %v1131_v36  ;;  %v5299_v53 = vpack.c.bf16 %v1137_v46, %v1133_v45  ;;  %v1146_v36 = vld [vmem:[#allocation7 + $0xfc0] sm:$0xff]  ;;  %v1148_v45 = vld [vmem:[#allocation7 + $0xfd0] sm:$0xff] }
 0x1f7   :  { %2821 = vmatmul.mubr.f32.gmra.mrb[28].mxu1 %v470_v52  ;;  %1798 = vmatprep.mubr.f32.mxu0 %v479_v41  ;;  %v1132_v52 = vld [vmem:[#allocation7 + $0xf50] sm:$0xff]  ;;  %v5049_v32 = vpack.c.bf16 %v1142_v15, %v1138_v14  ;;  %v1150_v43 = vld [vmem:[#allocation7 + $0xfe0] sm:$0xff]  ;;  %v583_v15 = vld [vmem:[#allocation4 + $0x628] sm:$0xff] }
 0x1f8   :  { %2826 = vmatprep.mubr.f32.mxu1 %v479_v41  ;;  %5034 = vmatpush1.bf16.msra.mxu0 %v5033_v42  ;;  %v1139_v41 = vld [vmem:[#allocation7 + $0xf88] sm:$0xff]  ;;  %v1152_v46 = vld [vmem:[#allocation7 + $0xff0] sm:$0xff]  ;;  %v574_v14 = vld [vmem:[#allocation4 + $0x5e0] sm:$0xff] }
 0x1f9   :  { %5290 = vmatpush1.bf16.msra.mxu1 %v5289_v56  ;;  %5036 = vmatprep.subr.bf16.mxu0 %v5035_v57  ;;  %v1143_v42 = vld [vmem:[#allocation7 + $0xfa8] sm:$0xff]  ;;  %v494_v56 = vld [vmem:[#allocation4 + $0x360] sm:$0xff]  ;;  %v1141_v57 = vld [vmem:[#allocation7 + $0xf98] sm:$0xff] }
 0x1fa   :  { %1799 = vmatmul.mubr.f32.gmra.mrb[30].mxu0 %v478_v16  ;;  %5292 = vmatprep.subr.bf16.mxu1 %v5291_v2  ;;  %v5301_v2 = vpack.c.bf16 %v1136_v54, %v1132_v52  ;;  %v5047_v3 = vpack.c.bf16 %v1143_v42, %v1139_v41  ;;  %v5303_v18 = vpack.c.bf16 %v1145_v60, %v1141_v57  ;;  %v526_v52 = vld [vmem:[#allocation4 + $0x460] sm:$0xff]  ;;  %v543_v41 = vld [vmem:[#allocation4 + $0x4e8] sm:$0xff] }
 0x1fb   :  { %2827 = vmatmul.mubr.f32.gmra.mrb[30].mxu1 %v478_v16  ;;  %1804 = vmatprep.mubr.f32.mxu0 %v487_v20  ;;  %v1140_v16 = vld [vmem:[#allocation7 + $0xf90] sm:$0xff]  ;;  %v534_v54 = vld [vmem:[#allocation4 + $0x4a0] sm:$0xff]  ;;  %v559_v60 = vld [vmem:[#allocation4 + $0x568] sm:$0xff] }
 0x1fc   :  { %2832 = vmatprep.mubr.f32.mxu1 %v487_v20  ;;  %5038 = vmatpush1.bf16.msra.mxu0 %v5037_v23  ;;  %v1147_v20 = vld [vmem:[#allocation7 + $0xfc8] sm:$0xff]  ;;  %v542_v42 = vld [vmem:[#allocation4 + $0x4e0] sm:$0xff] }
 0x1fd   :  { %5294 = vmatpush1.bf16.msra.mxu1 %v5293_v24  ;;  %5040 = vmatprep.subr.bf16.mxu0 %v5039_v25  ;;  %v1151_v23 = vld [vmem:[#allocation7 + $0xfe8] sm:$0xff]  ;;  %v502_v24 = vld [vmem:[#allocation4 + $0x3a0] sm:$0xff]  ;;  %v1149_v25 = vld [vmem:[#allocation7 + $0xfd8] sm:$0xff] }
 0x1fe   :  { %1805 = vmatmul.mubr.f32.gmra.mrb[32].mxu0 %v486_v44  ;;  %5296 = vmatprep.subr.bf16.mxu1 %v5295_v33  ;;  %v5305_v33 = vpack.c.bf16 %v1144_v19, %v1140_v16  ;;  %v5051_v21 = vpack.c.bf16 %v1151_v23, %v1147_v20  ;;  %v550_v57 = vld [vmem:[#allocation4 + $0x520] sm:$0xff]  ;;  %v599_v20 = vld [vmem:[#allocation4 + $0x6a8] sm:$0xff] }
 0x1ff   :  { %2833 = vmatmul.mubr.f32.gmra.mrb[32].mxu1 %v486_v44  ;;  %1810 = vmatprep.mubr.f32.mxu0 %v495_v47  ;;  %v5307_v44 = vpack.c.bf16 %v1153_v30, %v1149_v25  ;;  %v582_v16 = vld [vmem:[#allocation4 + $0x620] sm:$0xff]  ;;  %v615_v30 = vld [vmem:[#allocation4 + $0x728] sm:$0xff] }
 0x200   :  { %2838 = vmatprep.mubr.f32.mxu1 %v495_v47  ;;  %5042 = vmatpush1.bf16.msra.mxu0 %v5041_v48  ;;  %v510_v47 = vld [vmem:[#allocation4 + $0x3e0] sm:$0xff]  ;;  %v519_v48 = vld [vmem:[#allocation4 + $0x428] sm:$0xff] }
 0x201   :  { %5298 = vmatpush1.bf16.msra.mxu1 %v5297_v49  ;;  %5044 = vmatprep.subr.bf16.mxu0 %v5043_v50  ;;  %v5053_v49 = vpack.c.bf16 %v1150_v43, %v1146_v36  ;;  %v5309_v50 = vpack.c.bf16 %v1152_v46, %v1148_v45  ;;  %v590_v19 = vld [vmem:[#allocation4 + $0x660] sm:$0xff]  ;;  %v639_v43 = vld [vmem:[#allocation4 + $0x7e8] sm:$0xff]  ;;  %v393_v45 = vld [vmem:[#allocation4 + $0x38] sm:$0xff] }
 0x202   :  { %1811 = vmatmul.mubr.f32.gmra.mrb[34].mxu0 %v494_v56  ;;  %5300 = vmatprep.subr.bf16.mxu1 %v5299_v53  ;;  %v535_v53 = vld [vmem:[#allocation4 + $0x4a8] sm:$0xff]  ;;  %v598_v23 = vld [vmem:[#allocation4 + $0x6a0] sm:$0xff]  ;;  %v392_v46 = vld [vmem:[#allocation4 + $0x30] sm:$0xff] }
 0x203   :  { %2839 = vmatmul.mubr.f32.gmra.mrb[34].mxu1 %v494_v56  ;;  %1816 = vmatprep.mubr.f32.mxu0 %v503_v61  ;;  %v551_v56 = vld [vmem:[#allocation4 + $0x528] sm:$0xff]  ;;  %v606_v25 = vld [vmem:[#allocation4 + $0x6e0] sm:$0xff] }
 0x204   :  { %2844 = vmatprep.mubr.f32.mxu1 %v503_v61  ;;  %5046 = vmatpush1.bf16.msra.mxu0 %v5045_v0  ;;  %v558_v61 = vld [vmem:[#allocation4 + $0x560] sm:$0xff]  ;;  %v567_v0 = vld [vmem:[#allocation4 + $0x5a8] sm:$0xff] }
 0x205   :  { %5302 = vmatpush1.bf16.msra.mxu1 %v5301_v2  ;;  %5048 = vmatprep.subr.bf16.mxu0 %v5047_v3  ;;  %v566_v2 = vld [vmem:[#allocation4 + $0x5a0] sm:$0xff]  ;;  %v575_v3 = vld [vmem:[#allocation4 + $0x5e8] sm:$0xff] }
 0x206   :  { %1817 = vmatmul.mubr.f32.gmra.mrb[36].mxu0 %v502_v24  ;;  %5304 = vmatprep.subr.bf16.mxu1 %v5303_v18  ;;  %v591_v18 = vld [vmem:[#allocation4 + $0x668] sm:$0xff]  ;;  %v630_v36 = vld [vmem:[#allocation4 + $0x7a0] sm:$0xff] }
 0x207   :  { %2845 = vmatmul.mubr.f32.gmra.mrb[36].mxu1 %v502_v24  ;;  %1822 = vmatprep.mubr.f32.mxu0 %v511_v31  ;;  %v607_v24 = vld [vmem:[#allocation4 + $0x6e8] sm:$0xff] }
 0x208   :  { %2850 = vmatprep.mubr.f32.mxu1 %v511_v31  ;;  %5050 = vmatpush1.bf16.msra.mxu0 %v5049_v32  ;;  %v614_v31 = vld [vmem:[#allocation4 + $0x720] sm:$0xff]  ;;  %v623_v32 = vld [vmem:[#allocation4 + $0x768] sm:$0xff] }
 0x209   :  { %5306 = vmatpush1.bf16.msra.mxu1 %v5305_v33  ;;  %5052 = vmatprep.subr.bf16.mxu0 %v5051_v21  ;;  %v622_v33 = vld [vmem:[#allocation4 + $0x760] sm:$0xff]  ;;  %v631_v21 = vld [vmem:[#allocation4 + $0x7a8] sm:$0xff] }
 0x20a   :  { %1823 = vmatmul.mubr.f32.gmra.mrb[38].mxu0 %v510_v47  ;;  %5308 = vmatprep.subr.bf16.mxu1 %v5307_v44  ;;  %v638_v44 = vld [vmem:[#allocation4 + $0x7e0] sm:$0xff] }
 0x20b   :  { %2851 = vmatmul.mubr.f32.gmra.mrb[38].mxu1 %v510_v47  ;;  %1828 = vmatprep.mubr.f32.mxu0 %v519_v48  ;;  %v401_v47 = vld [vmem:[#allocation4 + $0x78] sm:$0xff] }
 0x20c   :  { %2856 = vmatprep.mubr.f32.mxu1 %v519_v48  ;;  %5054 = vmatpush1.bf16.msra.mxu0 %v5053_v49  ;;  %v400_v48 = vld [vmem:[#allocation4 + $0x70] sm:$0xff]  ;;  %v409_v49 = vld [vmem:[#allocation4 + $0xb8] sm:$0xff] }
 0x20d   :  { %5310 = vmatpush1.bf16.msra.mxu1 %v5309_v50  ;;  %v408_v50 = vld [vmem:[#allocation4 + $0xb0] sm:$0xff] }
 0x20e   :  { %1829 = vmatmul.mubr.f32.gmra.mrb[40].mxu0 %v518_v40 }
 0x20f   :  { %2857 = vmatmul.mubr.f32.gmra.mrb[40].mxu1 %v518_v40  ;;  %1834 = vmatprep.mubr.f32.mxu0 %v527_v51  ;;  %v417_v40 = vld [vmem:[#allocation4 + $0xf8] sm:$0xff] }
 0x210   :  { %2862 = vmatprep.mubr.f32.mxu1 %v527_v51  ;;  %v416_v51 = vld [vmem:[#allocation4 + $0xf0] sm:$0xff] }
 0x212   :  { %1835 = vmatmul.mubr.f32.gmra.mrb[42].mxu0 %v526_v52 }
 0x213   :  { %2863 = vmatmul.mubr.f32.gmra.mrb[42].mxu1 %v526_v52  ;;  %1840 = vmatprep.mubr.f32.mxu0 %v535_v53  ;;  %v425_v52 = vld [vmem:[#allocation4 + $0x138] sm:$0xff] }
 0x214   :  { %2868 = vmatprep.mubr.f32.mxu1 %v535_v53  ;;  %v424_v53 = vld [vmem:[#allocation4 + $0x130] sm:$0xff] }
 0x216   :  { %1841 = vmatmul.mubr.f32.gmra.mrb[44].mxu0 %v534_v54 }
 0x217   :  { %2869 = vmatmul.mubr.f32.gmra.mrb[44].mxu1 %v534_v54  ;;  %1846 = vmatprep.mubr.f32.mxu0 %v543_v41  ;;  %v433_v54 = vld [vmem:[#allocation4 + $0x178] sm:$0xff] }
 0x218   :  { %2874 = vmatprep.mubr.f32.mxu1 %v543_v41  ;;  %v432_v41 = vld [vmem:[#allocation4 + $0x170] sm:$0xff] }
 0x21a   :  { %1847 = vmatmul.mubr.f32.gmra.mrb[46].mxu0 %v542_v42 }
 0x21b   :  { %2875 = vmatmul.mubr.f32.gmra.mrb[46].mxu1 %v542_v42  ;;  %1852 = vmatprep.mubr.f32.mxu0 %v551_v56  ;;  %v441_v42 = vld [vmem:[#allocation4 + $0x1b8] sm:$0xff] }
 0x21c   :  { %2880 = vmatprep.mubr.f32.mxu1 %v551_v56  ;;  %v440_v56 = vld [vmem:[#allocation4 + $0x1b0] sm:$0xff] }
 0x21e   :  { %1853 = vmatmul.mubr.f32.gmra.mrb[48].mxu0 %v550_v57 }
 0x21f   :  { %2881 = vmatmul.mubr.f32.gmra.mrb[48].mxu1 %v550_v57  ;;  %1858 = vmatprep.mubr.f32.mxu0 %v559_v60  ;;  %v449_v57 = vld [vmem:[#allocation4 + $0x1f8] sm:$0xff] }
 0x220   :  { %2886 = vmatprep.mubr.f32.mxu1 %v559_v60  ;;  %v448_v60 = vld [vmem:[#allocation4 + $0x1f0] sm:$0xff] }
 0x222   :  { %1859 = vmatmul.mubr.f32.gmra.mrb[50].mxu0 %v558_v61 }
 0x223   :  { %2887 = vmatmul.mubr.f32.gmra.mrb[50].mxu1 %v558_v61  ;;  %1864 = vmatprep.mubr.f32.mxu0 %v567_v0  ;;  %v457_v61 = vld [vmem:[#allocation4 + $0x238] sm:$0xff] }
 0x224   :  { %2892 = vmatprep.mubr.f32.mxu1 %v567_v0  ;;  %v456_v0 = vld [vmem:[#allocation4 + $0x230] sm:$0xff] }
 0x226   :  { %1865 = vmatmul.mubr.f32.gmra.mrb[52].mxu0 %v566_v2 }
 0x227   :  { %2893 = vmatmul.mubr.f32.gmra.mrb[52].mxu1 %v566_v2  ;;  %1870 = vmatprep.mubr.f32.mxu0 %v575_v3  ;;  %v465_v2 = vld [vmem:[#allocation4 + $0x278] sm:$0xff] }
 0x228   :  { %2898 = vmatprep.mubr.f32.mxu1 %v575_v3  ;;  %v464_v3 = vld [vmem:[#allocation4 + $0x270] sm:$0xff] }
 0x22a   :  { %1871 = vmatmul.mubr.f32.gmra.mrb[54].mxu0 %v574_v14 }
 0x22b   :  { %2899 = vmatmul.mubr.f32.gmra.mrb[54].mxu1 %v574_v14  ;;  %1876 = vmatprep.mubr.f32.mxu0 %v583_v15  ;;  %v473_v14 = vld [vmem:[#allocation4 + $0x2b8] sm:$0xff] }
 0x22c   :  { %2904 = vmatprep.mubr.f32.mxu1 %v583_v15  ;;  %v472_v15 = vld [vmem:[#allocation4 + $0x2b0] sm:$0xff] }
 0x22e   :  { %1877 = vmatmul.mubr.f32.gmra.mrb[56].mxu0 %v582_v16 }
 0x22f   :  { %2905 = vmatmul.mubr.f32.gmra.mrb[56].mxu1 %v582_v16  ;;  %1882 = vmatprep.mubr.f32.mxu0 %v591_v18  ;;  %v481_v16 = vld [vmem:[#allocation4 + $0x2f8] sm:$0xff] }
 0x230   :  { %2910 = vmatprep.mubr.f32.mxu1 %v591_v18  ;;  %v480_v18 = vld [vmem:[#allocation4 + $0x2f0] sm:$0xff] }
 0x232   :  { %1883 = vmatmul.mubr.f32.gmra.mrb[58].mxu0 %v590_v19 }
 0x233   :  { %2911 = vmatmul.mubr.f32.gmra.mrb[58].mxu1 %v590_v19  ;;  %1888 = vmatprep.mubr.f32.mxu0 %v599_v20  ;;  %v489_v19 = vld [vmem:[#allocation4 + $0x338] sm:$0xff] }
 0x234   :  { %2916 = vmatprep.mubr.f32.mxu1 %v599_v20  ;;  %v488_v20 = vld [vmem:[#allocation4 + $0x330] sm:$0xff] }
 0x236   :  { %1889 = vmatmul.mubr.f32.gmra.mrb[60].mxu0 %v598_v23 }
 0x237   :  { %2917 = vmatmul.mubr.f32.gmra.mrb[60].mxu1 %v598_v23  ;;  %1894 = vmatprep.mubr.f32.mxu0 %v607_v24  ;;  %v497_v23 = vld [vmem:[#allocation4 + $0x378] sm:$0xff] }
 0x238   :  { %2922 = vmatprep.mubr.f32.mxu1 %v607_v24  ;;  %v496_v24 = vld [vmem:[#allocation4 + $0x370] sm:$0xff] }
 0x23a   :  { %1895 = vmatmul.mubr.f32.gmra.mrb[62].mxu0 %v606_v25 }
 0x23b   :  { %2923 = vmatmul.mubr.f32.gmra.mrb[62].mxu1 %v606_v25  ;;  %1900 = vmatprep.mubr.f32.mxu0 %v615_v30  ;;  %v505_v25 = vld [vmem:[#allocation4 + $0x3b8] sm:$0xff] }
 0x23c   :  { %2928 = vmatprep.mubr.f32.mxu1 %v615_v30  ;;  %v504_v30 = vld [vmem:[#allocation4 + $0x3b0] sm:$0xff] }
 0x23e   :  { %1901 = vmatmul.mubr.f32.gmra.mrb[64].mxu0 %v614_v31 }
 0x23f   :  { %2929 = vmatmul.mubr.f32.gmra.mrb[64].mxu1 %v614_v31  ;;  %1906 = vmatprep.mubr.f32.mxu0 %v623_v32  ;;  %v513_v31 = vld [vmem:[#allocation4 + $0x3f8] sm:$0xff] }
 0x240   :  { %2934 = vmatprep.mubr.f32.mxu1 %v623_v32  ;;  %v512_v32 = vld [vmem:[#allocation4 + $0x3f0] sm:$0xff] }
 0x242   :  { %1907 = vmatmul.mubr.f32.gmra.mrb[66].mxu0 %v622_v33 }
 0x243   :  { %2935 = vmatmul.mubr.f32.gmra.mrb[66].mxu1 %v622_v33  ;;  %1912 = vmatprep.mubr.f32.mxu0 %v631_v21  ;;  %v521_v33 = vld [vmem:[#allocation4 + $0x438] sm:$0xff] }
 0x244   :  { %2940 = vmatprep.mubr.f32.mxu1 %v631_v21  ;;  %v520_v21 = vld [vmem:[#allocation4 + $0x430] sm:$0xff] }
 0x246   :  { %1913 = vmatmul.mubr.f32.gmra.mrb[68].mxu0 %v630_v36 }
 0x247   :  { %2941 = vmatmul.mubr.f32.gmra.mrb[68].mxu1 %v630_v36  ;;  %1918 = vmatprep.mubr.f32.mxu0 %v639_v43  ;;  %v529_v36 = vld [vmem:[#allocation4 + $0x478] sm:$0xff] }
 0x248   :  { %2946 = vmatprep.mubr.f32.mxu1 %v639_v43  ;;  %v528_v43 = vld [vmem:[#allocation4 + $0x470] sm:$0xff] }
 0x24a   :  { %1919 = vmatmul.mubr.f32.gmra.mrb[70].mxu0 %v638_v44 }
 0x24b   :  { %2947 = vmatmul.mubr.f32.gmra.mrb[70].mxu1 %v638_v44  ;;  %1989 = vmatprep.mubr.f32.mxu0 %v393_v45  ;;  %v537_v44 = vld [vmem:[#allocation4 + $0x4b8] sm:$0xff] }
 0x24c   :  { %3017 = vmatprep.mubr.f32.mxu1 %v393_v45  ;;  %v536_v45 = vld [vmem:[#allocation4 + $0x4b0] sm:$0xff] }
 0x24e   :  { %1990 = vmatmul.mubr.f32.vlgmr.msra.gmra.mrb[8].mxu0 %v392_v46 }
 0x24f   :  { %3018 = vmatmul.mubr.f32.vlgmr.msra.gmra.mrb[8].mxu1 %v392_v46  ;;  %1995 = vmatprep.mubr.f32.mxu0 %v401_v47  ;;  %v545_v46 = vld [vmem:[#allocation4 + $0x4f8] sm:$0xff] }
 0x250   :  { %3023 = vmatprep.mubr.f32.mxu1 %v401_v47  ;;  %v544_v47 = vld [vmem:[#allocation4 + $0x4f0] sm:$0xff] }
 0x252   :  { %1996 = vmatmul.mubr.f32.gmra.mrb[10].mxu0 %v400_v48 }
 0x253   :  { %3024 = vmatmul.mubr.f32.gmra.mrb[10].mxu1 %v400_v48  ;;  %2001 = vmatprep.mubr.f32.mxu0 %v409_v49  ;;  %v553_v48 = vld [vmem:[#allocation4 + $0x538] sm:$0xff] }
 0x254   :  { %3029 = vmatprep.mubr.f32.mxu1 %v409_v49  ;;  %v552_v49 = vld [vmem:[#allocation4 + $0x530] sm:$0xff] }
 0x256   :  { %2002 = vmatmul.mubr.f32.gmra.mrb[12].mxu0 %v408_v50 }
 0x257   :  { %3030 = vmatmul.mubr.f32.gmra.mrb[12].mxu1 %v408_v50  ;;  %2007 = vmatprep.mubr.f32.mxu0 %v417_v40  ;;  %v561_v50 = vld [vmem:[#allocation4 + $0x578] sm:$0xff] }
 0x258   :  { %3035 = vmatprep.mubr.f32.mxu1 %v417_v40  ;;  %v560_v40 = vld [vmem:[#allocation4 + $0x570] sm:$0xff] }
 0x25a   :  { %2008 = vmatmul.mubr.f32.gmra.mrb[14].mxu0 %v416_v51 }
 0x25b   :  { %3036 = vmatmul.mubr.f32.gmra.mrb[14].mxu1 %v416_v51  ;;  %2013 = vmatprep.mubr.f32.mxu0 %v425_v52  ;;  %v569_v51 = vld [vmem:[#allocation4 + $0x5b8] sm:$0xff] }
 0x25c   :  { %3041 = vmatprep.mubr.f32.mxu1 %v425_v52  ;;  %v568_v52 = vld [vmem:[#allocation4 + $0x5b0] sm:$0xff] }
 0x25e   :  { %2014 = vmatmul.mubr.f32.gmra.mrb[16].mxu0 %v424_v53 }
 0x25f   :  { %3042 = vmatmul.mubr.f32.gmra.mrb[16].mxu1 %v424_v53  ;;  %2019 = vmatprep.mubr.f32.mxu0 %v433_v54  ;;  %v577_v53 = vld [vmem:[#allocation4 + $0x5f8] sm:$0xff] }
 0x260   :  { %3047 = vmatprep.mubr.f32.mxu1 %v433_v54  ;;  %v576_v54 = vld [vmem:[#allocation4 + $0x5f0] sm:$0xff] }
 0x262   :  { %2020 = vmatmul.mubr.f32.gmra.mrb[18].mxu0 %v432_v41 }
 0x263   :  { %3048 = vmatmul.mubr.f32.gmra.mrb[18].mxu1 %v432_v41  ;;  %2025 = vmatprep.mubr.f32.mxu0 %v441_v42  ;;  %v585_v41 = vld [vmem:[#allocation4 + $0x638] sm:$0xff] }
 0x264   :  { %3053 = vmatprep.mubr.f32.mxu1 %v441_v42  ;;  %v584_v42 = vld [vmem:[#allocation4 + $0x630] sm:$0xff] }
 0x266   :  { %2026 = vmatmul.mubr.f32.gmra.mrb[20].mxu0 %v440_v56 }
 0x267   :  { %3054 = vmatmul.mubr.f32.gmra.mrb[20].mxu1 %v440_v56  ;;  %2031 = vmatprep.mubr.f32.mxu0 %v449_v57  ;;  %v593_v56 = vld [vmem:[#allocation4 + $0x678] sm:$0xff] }
 0x268   :  { %3059 = vmatprep.mubr.f32.mxu1 %v449_v57  ;;  %v592_v57 = vld [vmem:[#allocation4 + $0x670] sm:$0xff] }
 0x26a   :  { %2032 = vmatmul.mubr.f32.gmra.mrb[22].mxu0 %v448_v60 }
 0x26b   :  { %3060 = vmatmul.mubr.f32.gmra.mrb[22].mxu1 %v448_v60  ;;  %2037 = vmatprep.mubr.f32.mxu0 %v457_v61  ;;  %v601_v60 = vld [vmem:[#allocation4 + $0x6b8] sm:$0xff] }
 0x26c   :  { %3065 = vmatprep.mubr.f32.mxu1 %v457_v61  ;;  %v600_v61 = vld [vmem:[#allocation4 + $0x6b0] sm:$0xff] }
 0x26e   :  { %2038 = vmatmul.mubr.f32.gmra.mrb[24].mxu0 %v456_v0 }
 0x26f   :  { %3066 = vmatmul.mubr.f32.gmra.mrb[24].mxu1 %v456_v0  ;;  %2043 = vmatprep.mubr.f32.mxu0 %v465_v2  ;;  %v609_v0 = vld [vmem:[#allocation4 + $0x6f8] sm:$0xff] }
 0x270   :  { %3071 = vmatprep.mubr.f32.mxu1 %v465_v2  ;;  %v608_v2 = vld [vmem:[#allocation4 + $0x6f0] sm:$0xff] }
 0x272   :  { %2044 = vmatmul.mubr.f32.gmra.mrb[26].mxu0 %v464_v3 }
 0x273   :  { %3072 = vmatmul.mubr.f32.gmra.mrb[26].mxu1 %v464_v3  ;;  %2049 = vmatprep.mubr.f32.mxu0 %v473_v14  ;;  %v617_v3 = vld [vmem:[#allocation4 + $0x738] sm:$0xff] }
 0x274   :  { %3077 = vmatprep.mubr.f32.mxu1 %v473_v14  ;;  %v616_v14 = vld [vmem:[#allocation4 + $0x730] sm:$0xff] }
 0x276   :  { %2050 = vmatmul.mubr.f32.gmra.mrb[28].mxu0 %v472_v15 }
 0x277   :  { %3078 = vmatmul.mubr.f32.gmra.mrb[28].mxu1 %v472_v15  ;;  %2055 = vmatprep.mubr.f32.mxu0 %v481_v16  ;;  %v625_v15 = vld [vmem:[#allocation4 + $0x778] sm:$0xff] }
 0x278   :  { %3083 = vmatprep.mubr.f32.mxu1 %v481_v16  ;;  %v624_v16 = vld [vmem:[#allocation4 + $0x770] sm:$0xff] }
 0x27a   :  { %2056 = vmatmul.mubr.f32.gmra.mrb[30].mxu0 %v480_v18 }
 0x27b   :  { %3084 = vmatmul.mubr.f32.gmra.mrb[30].mxu1 %v480_v18  ;;  %2061 = vmatprep.mubr.f32.mxu0 %v489_v19  ;;  %v633_v18 = vld [vmem:[#allocation4 + $0x7b8] sm:$0xff] }
 0x27c   :  { %3089 = vmatprep.mubr.f32.mxu1 %v489_v19  ;;  %v632_v19 = vld [vmem:[#allocation4 + $0x7b0] sm:$0xff] }
 0x27e   :  { %2062 = vmatmul.mubr.f32.gmra.mrb[32].mxu0 %v488_v20 }
 0x27f   :  { %3090 = vmatmul.mubr.f32.gmra.mrb[32].mxu1 %v488_v20  ;;  %2067 = vmatprep.mubr.f32.mxu0 %v497_v23  ;;  %v641_v20 = vld [vmem:[#allocation4 + $0x7f8] sm:$0xff] }
 0x280   :  { %3095 = vmatprep.mubr.f32.mxu1 %v497_v23  ;;  %v640_v23 = vld [vmem:[#allocation4 + $0x7f0] sm:$0xff] }
 0x282   :  { %2068 = vmatmul.mubr.f32.gmra.mrb[34].mxu0 %v496_v24 }
 0x283   :  { %3096 = vmatmul.mubr.f32.gmra.mrb[34].mxu1 %v496_v24  ;;  %2073 = vmatprep.mubr.f32.mxu0 %v505_v25  ;;  %v3268_v24 = vrot.slane %v3258_v8, %v5952_v38 }
 0x284   :  { %3101 = vmatprep.mubr.f32.mxu1 %v505_v25  ;;  %v6070_v25 = vsub.s32 0, %v5949_v22 }
 0x285   :  { %v3290_v58 = vcombine.high %v3268_v24, %v3268_v24 }
 0x286   :  { %2074 = vmatmul.mubr.f32.gmra.mrb[36].mxu0 %v504_v30 }
 0x287   :  { %3102 = vmatmul.mubr.f32.gmra.mrb[36].mxu1 %v504_v30  ;;  %2079 = vmatprep.mubr.f32.mxu0 %v513_v31  ;;  %v6073_v30 = vsub.s32 2, %v5949_v22 }
 0x288   :  { %3107 = vmatprep.mubr.f32.mxu1 %v513_v31  ;;  %v6076_v31 = vsub.s32 1, %v5949_v22 }
 0x28a   :  { %2080 = vmatmul.mubr.f32.gmra.mrb[38].mxu0 %v512_v32 }
 0x28b   :  { %3108 = vmatmul.mubr.f32.gmra.mrb[38].mxu1 %v512_v32  ;;  %2085 = vmatprep.mubr.f32.mxu0 %v521_v33  ;;  %v6079_v32 = vsub.s32 3, %v5949_v22 }
 0x28c   :  { %3113 = vmatprep.mubr.f32.mxu1 %v521_v33  ;;  %v3282_v33 = vrot.slane %v3259_v9, %v5952_v38 }
 0x28e   :  { %2086 = vmatmul.mubr.f32.gmra.mrb[40].mxu0 %v520_v21 }
 0x28f   :  { %3114 = vmatmul.mubr.f32.gmra.mrb[40].mxu1 %v520_v21  ;;  %2091 = vmatprep.mubr.f32.mxu0 %v529_v36  ;;  %v3501_v21 = vrot.slane %v3268_v24, %v6070_v25 }
 0x290   :  { %3119 = vmatprep.mubr.f32.mxu1 %v529_v36  ;;  %v3509_v36 = vrot.slane %v3268_v24, %v6073_v30 }
 0x292   :  { %2092 = vmatmul.mubr.f32.gmra.mrb[42].mxu0 %v528_v43 }
 0x293   :  { %3120 = vmatmul.mubr.f32.gmra.mrb[42].mxu1 %v528_v43  ;;  %2097 = vmatprep.mubr.f32.mxu0 %v537_v44  ;;  %v3505_v43 = vrot.slane %v3268_v24, %v6076_v31 }
 0x294   :  { %3125 = vmatprep.mubr.f32.mxu1 %v537_v44 }
 0x296   :  { %2098 = vmatmul.mubr.f32.gmra.mrb[44].mxu0 %v536_v45 }
 0x297   :  { %3126 = vmatmul.mubr.f32.gmra.mrb[44].mxu1 %v536_v45  ;;  %2103 = vmatprep.mubr.f32.mxu0 %v545_v46 }
 0x298   :  { %3131 = vmatprep.mubr.f32.mxu1 %v545_v46 }
 0x29a   :  { %2104 = vmatmul.mubr.f32.gmra.mrb[46].mxu0 %v544_v47 }
 0x29b   :  { %3132 = vmatmul.mubr.f32.gmra.mrb[46].mxu1 %v544_v47  ;;  %2109 = vmatprep.mubr.f32.mxu0 %v553_v48  ;;  %v3513_v47 = vrot.slane %v3268_v24, %v6079_v32 }
 0x29c   :  { %3137 = vmatprep.mubr.f32.mxu1 %v553_v48 }
 0x29e   :  { %2110 = vmatmul.mubr.f32.gmra.mrb[48].mxu0 %v552_v49 }
 0x29f   :  { %3138 = vmatmul.mubr.f32.gmra.mrb[48].mxu1 %v552_v49  ;;  %2115 = vmatprep.mubr.f32.mxu0 %v561_v50 }
 0x2a0   :  { %3143 = vmatprep.mubr.f32.mxu1 %v561_v50 }
 0x2a2   :  { %2116 = vmatmul.mubr.f32.gmra.mrb[50].mxu0 %v560_v40 }
 0x2a3   :  { %3144 = vmatmul.mubr.f32.gmra.mrb[50].mxu1 %v560_v40  ;;  %2121 = vmatprep.mubr.f32.mxu0 %v569_v51 }
 0x2a4   :  { %3149 = vmatprep.mubr.f32.mxu1 %v569_v51  ;;  %v3517_v51 = vrot.slane %v3282_v33, %v6070_v25 }
 0x2a6   :  { %2122 = vmatmul.mubr.f32.gmra.mrb[52].mxu0 %v568_v52 }
 0x2a7   :  { %3150 = vmatmul.mubr.f32.gmra.mrb[52].mxu1 %v568_v52  ;;  %2127 = vmatprep.mubr.f32.mxu0 %v577_v53  ;;  %v3525_v52 = vrot.slane %v3282_v33, %v6073_v30 }
 0x2a8   :  { %3155 = vmatprep.mubr.f32.mxu1 %v577_v53  ;;  %v3521_v53 = vrot.slane %v3282_v33, %v6076_v31 }
 0x2aa   :  { %2128 = vmatmul.mubr.f32.gmra.mrb[54].mxu0 %v576_v54 }
 0x2ab   :  { %3156 = vmatmul.mubr.f32.gmra.mrb[54].mxu1 %v576_v54  ;;  %2133 = vmatprep.mubr.f32.mxu0 %v585_v41 }
 0x2ac   :  { %3161 = vmatprep.mubr.f32.mxu1 %v585_v41 }
 0x2ae   :  { %2134 = vmatmul.mubr.f32.gmra.mrb[56].mxu0 %v584_v42 }
 0x2af   :  { %3162 = vmatmul.mubr.f32.gmra.mrb[56].mxu1 %v584_v42  ;;  %2139 = vmatprep.mubr.f32.mxu0 %v593_v56 }
 0x2b0   :  { %3167 = vmatprep.mubr.f32.mxu1 %v593_v56  ;;  %v3529_v56 = vrot.slane %v3282_v33, %v6079_v32 }
 0x2b2   :  { %2140 = vmatmul.mubr.f32.gmra.mrb[58].mxu0 %v592_v57 }
 0x2b3   :  { %3168 = vmatmul.mubr.f32.gmra.mrb[58].mxu1 %v592_v57  ;;  %2145 = vmatprep.mubr.f32.mxu0 %v601_v60 }
 0x2b4   :  { %3173 = vmatprep.mubr.f32.mxu1 %v601_v60 }
 0x2b6   :  { %2146 = vmatmul.mubr.f32.gmra.mrb[60].mxu0 %v600_v61 }
 0x2b7   :  { %3174 = vmatmul.mubr.f32.gmra.mrb[60].mxu1 %v600_v61  ;;  %2151 = vmatprep.mubr.f32.mxu0 %v609_v0 }
 0x2b8   :  { %3179 = vmatprep.mubr.f32.mxu1 %v609_v0 }
 0x2ba   :  { %2152 = vmatmul.mubr.f32.gmra.mrb[62].mxu0 %v608_v2 }
 0x2bb   :  { %3180 = vmatmul.mubr.f32.gmra.mrb[62].mxu1 %v608_v2  ;;  %2157 = vmatprep.mubr.f32.mxu0 %v617_v3 }
 0x2bc   :  { %3185 = vmatprep.mubr.f32.mxu1 %v617_v3  ;;  %v3533_v3 = vrot.slane %v3290_v58, %v6070_v25 }
 0x2be   :  { %2158 = vmatmul.mubr.f32.gmra.mrb[64].mxu0 %v616_v14 }
 0x2bf   :  { %3186 = vmatmul.mubr.f32.gmra.mrb[64].mxu1 %v616_v14  ;;  %2163 = vmatprep.mubr.f32.mxu0 %v625_v15  ;;  %v3292_v14 = vcombine.high %v3282_v33, %v3282_v33  ;;  %v3275_v33 = vrot.slane %v3260_v10, %v5952_v38 }
 0x2c0   :  { %3191 = vmatprep.mubr.f32.mxu1 %v625_v15 }
 0x2c2   :  { %2164 = vmatmul.mubr.f32.gmra.mrb[66].mxu0 %v624_v16 }
 0x2c3   :  { %3192 = vmatmul.mubr.f32.gmra.mrb[66].mxu1 %v624_v16  ;;  %2169 = vmatprep.mubr.f32.mxu0 %v633_v18 }
 0x2c4   :  { %3197 = vmatprep.mubr.f32.mxu1 %v633_v18  ;;  %v3541_v18 = vrot.slane %v3290_v58, %v6073_v30 }
 0x2c6   :  { %2170 = vmatmul.mubr.f32.gmra.mrb[68].mxu0 %v632_v19 }
 0x2c7   :  { %3198 = vmatmul.mubr.f32.gmra.mrb[68].mxu1 %v632_v19  ;;  %2175 = vmatprep.mubr.f32.mxu0 %v641_v20  ;;  %v3537_v19 = vrot.slane %v3290_v58, %v6076_v31 }
 0x2c8   :  { %3203 = vmatprep.mubr.f32.mxu1 %v641_v20 }
 0x2ca   :  { %2176 = vmatmul.mubr.f32.gmra.mrb[70].mxu0 %v640_v23 }
 0x2cb   :  { %3204 = vmatmul.mubr.f32.gmra.mrb[70].mxu1 %v640_v23 }
 0x321   :  { %v1991_v8 = vpop.f32.mrb[8].mxu0 }
 0x322   :  { %v4138_v44 = vmul.f32 %v3501_v21, %v1991_v8  ;;  %v3019_v45 = vpop.f32.mrb[8].mxu1  ;;  %v1993_v46 = vpop.f32.mrb[9].mxu0  ;;  %v3545_v8 = vrot.slane %v3290_v58, %v6079_v32 }
 0x323   :  { %v4140_v48 = vmul.f32 %v3509_v36, %v3019_v45  ;;  %v4139_v49 = vmul.f32 %v3505_v43, %v1993_v46  ;;  %v3021_v50 = vpop.f32.mrb[9].mxu1 }
 0x324   :  { %v4141_v40 = vmul.f32 %v3513_v47, %v3021_v50  ;;  %v3549_v47 = vrot.slane %v3292_v14, %v6070_v25  ;;  %v3557_v50 = vrot.slane %v3292_v14, %v6073_v30 }
 0x325   :  { %v4266_v62 = vadd.f32 %v4139_v49, %v4138_v44  ;;  %v1997_v9 = vpop.f32.mrb[10].mxu0 }
 0x326   :  { %v4142_v54 = vmul.f32 %v3517_v51, %v1997_v9  ;;  %v3025_v41 = vpop.f32.mrb[10].mxu1  ;;  %v1999_v42 = vpop.f32.mrb[11].mxu0 }
 0x327   :  { %v4144_v57 = vmul.f32 %v3525_v52, %v3025_v41  ;;  %v4143_v60 = vmul.f32 %v3521_v53, %v1999_v42  ;;  %v3027_v61 = vpop.f32.mrb[11].mxu1  ;;  %v4267_v0 = vadd.f32 %v4266_v62, %v4140_v48  ;;  %v3561_v52 = vrot.slane %v3292_v14, %v6079_v32 }
 0x328   :  { %v4145_v2 = vmul.f32 %v3529_v56, %v3027_v61  ;;  %v3289_v42 = vrot.slane %v3261_v11, %v5952_v38 }
 0x329   :  { %v4271_v15 = vadd.f32 %v4143_v60, %v4142_v54  ;;  %v2003_v16 = vpop.f32.mrb[12].mxu0  ;;  %v4268_v20 = vadd.f32 %v4267_v0, %v4141_v40  ;;  %v3553_v40 = vrot.slane %v3292_v14, %v6076_v31  ;;  %v3573_v0 = vrot.slane %v3275_v33, %v6073_v30 }
 0x32a   :  { %v4146_v23 = vmul.f32 %v3533_v3, %v2003_v16  ;;  %v3031_v24 = vpop.f32.mrb[12].mxu1  ;;  %v2005_v21 = vpop.f32.mrb[13].mxu0  ;;  %v3581_v11 = vrot.slane %v3289_v42, %v6070_v25 }
 0x32b   :  { %v4148_v36 = vmul.f32 %v3541_v18, %v3031_v24  ;;  %v4147_v43 = vmul.f32 %v3537_v19, %v2005_v21  ;;  %v3033_v44 = vpop.f32.mrb[13].mxu1  ;;  %4269 = vadd.xlane.f32.xlu0 %v4268_v20  ;;  %v4272_v45 = vadd.f32 %v4271_v15, %v4144_v57  ;;  %v3565_v57 = vrot.slane %v3275_v33, %v6070_v25 }
 0x32c   :  { %v4149_v46 = vmul.f32 %v3545_v8, %v3033_v44  ;;  %v3577_v18 = vrot.slane %v3275_v33, %v6079_v32  ;;  %v3291_v24 = vcombine.high %v3275_v33, %v3275_v33 }
 0x32d   :  { %v4276_v48 = vadd.f32 %v4147_v43, %v4146_v23  ;;  %v2009_v49 = vpop.f32.mrb[14].mxu0  ;;  %v4273_v51 = vadd.f32 %v4272_v45, %v4145_v2  ;;  %v3569_v2 = vrot.slane %v3275_v33, %v6076_v31  ;;  %v3585_v43 = vrot.slane %v3289_v42, %v6076_v31 }
 0x32e   :  { %v4150_v58 = vmul.f32 %v3549_v47, %v2009_v49  ;;  %v3037_v62 = vpop.f32.mrb[14].mxu1  ;;  %v2011_v9 = vpop.f32.mrb[15].mxu0  ;;  %v3597_v33 = vrot.slane %v3291_v24, %v6070_v25 }
 0x32f   :  { %v4152_v53 = vmul.f32 %v3557_v50, %v3037_v62  ;;  %v4151_v54 = vmul.f32 %v3553_v40, %v2011_v9  ;;  %v3039_v41 = vpop.f32.mrb[15].mxu1  ;;  %4274 = vadd.xlane.f32.xlu0 %v4273_v51  ;;  %v4277_v10 = vadd.f32 %v4276_v48, %v4148_v36  ;;  %v3589_v36 = vrot.slane %v3289_v42, %v6073_v30 }
 0x330   :  { %v4153_v56 = vmul.f32 %v3561_v52, %v3039_v41  ;;  %v3593_v48 = vrot.slane %v3289_v42, %v6079_v32  ;;  %v3293_v62 = vcombine.high %v3289_v42, %v3289_v42  ;;  %v3336_v42 = vrot.slane %v3326_v26, %v5952_v38 }
 0x331   :  { %v4281_v60 = vadd.f32 %v4151_v54, %v4150_v58  ;;  %v2015_v61 = vpop.f32.mrb[16].mxu0  ;;  %v4278_v3 = vadd.f32 %v4277_v10, %v4149_v46  ;;  %v3601_v54 = vrot.slane %v3291_v24, %v6076_v31 }
 0x332   :  { %v4154_v14 = vmul.f32 %v3565_v57, %v2015_v61  ;;  %v3043_v15 = vpop.f32.mrb[16].mxu1  ;;  %v2017_v16 = vpop.f32.mrb[17].mxu0 }
 0x333   :  { %v4156_v19 = vmul.f32 %v3573_v0, %v3043_v15  ;;  %v4155_v20 = vmul.f32 %v3569_v2, %v2017_v16  ;;  %v3045_v23 = vpop.f32.mrb[17].mxu1  ;;  %4279 = vadd.xlane.f32.xlu0 %v4278_v3  ;;  %v4282_v59 = vadd.f32 %v4281_v60, %v4152_v53  ;;  %v3605_v53 = vrot.slane %v3291_v24, %v6073_v30 }
 0x334   :  { %v4157_v63 = vmul.f32 %v3577_v18, %v3045_v23  ;;  %v3609_v60 = vrot.slane %v3291_v24, %v6079_v32  ;;  %v3613_v15 = vrot.slane %v3293_v62, %v6070_v25  ;;  %v3625_v24 = vrot.slane %v3293_v62, %v6079_v32 }
 0x335   :  { %v4286_v21 = vadd.f32 %v4155_v20, %v4154_v14  ;;  %v2021_v8 = vpop.f32.mrb[18].mxu0  ;;  %v4283_v44 = vadd.f32 %v4282_v59, %v4153_v56  ;;  %v3617_v20 = vrot.slane %v3293_v62, %v6076_v31 }
 0x336   :  { %v4158_v45 = vmul.f32 %v3581_v11, %v2021_v8  ;;  %v3049_v46 = vpop.f32.mrb[18].mxu1  ;;  %v2023_v47 = vpop.f32.mrb[19].mxu0 }
 0x337   :  { %v4160_v49 = vmul.f32 %v3589_v36, %v3049_v46  ;;  %v4159_v50 = vmul.f32 %v3585_v43, %v2023_v47  ;;  %v3051_v40 = vpop.f32.mrb[19].mxu1  ;;  %4284 = vadd.xlane.f32.xlu0 %v4283_v44  ;;  %v4287_v51 = vadd.f32 %v4286_v21, %v4156_v19  ;;  %v3621_v19 = vrot.slane %v3293_v62, %v6073_v30 }
 0x338   :  { %v4161_v58 = vmul.f32 %v3593_v48, %v3051_v40  ;;  %v3350_v43 = vrot.slane %v3327_v27, %v5952_v38  ;;  %v3637_v48 = vrot.slane %v3336_v42, %v6073_v30 }
 0x339   :  { %v4291_v9 = vadd.f32 %v4159_v50, %v4158_v45  ;;  %v2027_v52 = vpop.f32.mrb[20].mxu0  ;;  %v4288_v41 = vadd.f32 %v4287_v51, %v4157_v63  ;;  %v3629_v45 = vrot.slane %v3336_v42, %v6070_v25 }
 0x33a   :  { %v4162_v10 = vmul.f32 %v3597_v33, %v2027_v52  ;;  %v3055_v56 = vpop.f32.mrb[20].mxu1  ;;  %v2029_v57 = vpop.f32.mrb[21].mxu0  ;;  %v3641_v33 = vrot.slane %v3336_v42, %v6079_v32  ;;  %v3645_v27 = vrot.slane %v3350_v43, %v6070_v25 }
 0x33b   :  { %v4164_v61 = vmul.f32 %v3605_v53, %v3055_v56  ;;  %v4163_v0 = vmul.f32 %v3601_v54, %v2029_v57  ;;  %v3057_v2 = vpop.f32.mrb[21].mxu1  ;;  %4289 = vadd.xlane.f32.xlu0 %v4288_v41  ;;  %v4292_v3 = vadd.f32 %v4291_v9, %v4160_v49  ;;  %v3633_v49 = vrot.slane %v3336_v42, %v6076_v31 }
 0x33c   :  { %v4165_v14 = vmul.f32 %v3609_v60, %v3057_v2  ;;  %v3358_v53 = vcombine.high %v3336_v42, %v3336_v42  ;;  %v3649_v56 = vrot.slane %v3350_v43, %v6076_v31  ;;  %v3657_v2 = vrot.slane %v3350_v43, %v6079_v32 }
 0x33d   :  { %v4296_v16 = vadd.f32 %v4163_v0, %v4162_v10  ;;  %v2033_v18 = vpop.f32.mrb[22].mxu0  ;;  %v4293_v23 = vadd.f32 %v4292_v3, %v4161_v58  ;;  %v3653_v10 = vrot.slane %v3350_v43, %v6073_v30 }
 0x33e   :  { %v4166_v59 = vmul.f32 %v3613_v15, %v2033_v18  ;;  %v3061_v63 = vpop.f32.mrb[22].mxu1  ;;  %v2035_v11 = vpop.f32.mrb[23].mxu0  ;;  %v3661_v42 = vrot.slane %v3358_v53, %v6070_v25 }
 0x33f   :  { %v4168_v21 = vmul.f32 %v3621_v19, %v3061_v63  ;;  %v4167_v8 = vmul.f32 %v3617_v20, %v2035_v11  ;;  %v3063_v36 = vpop.f32.mrb[23].mxu1  ;;  %4294 = vadd.xlane.f32.xlu0 %v4293_v23  ;;  %v4297_v26 = vadd.f32 %v4296_v16, %v4164_v61  ;;  %v3360_v19 = vcombine.high %v3350_v43, %v3350_v43 }
 0x340   :  { %v4169_v44 = vmul.f32 %v3625_v24, %v3063_v36  ;;  %v3665_v63 = vrot.slane %v3358_v53, %v6076_v31  ;;  %v3673_v36 = vrot.slane %v3358_v53, %v6079_v32  ;;  %v3343_v43 = vrot.slane %v3328_v28, %v5952_v38 }
 0x341   :  { %v4301_v46 = vadd.f32 %v4167_v8, %v4166_v59  ;;  %v2039_v47 = vpop.f32.mrb[24].mxu0  ;;  %v4298_v50 = vadd.f32 %v4297_v26, %v4165_v14  ;;  %v3669_v59 = vrot.slane %v3358_v53, %v6073_v30  ;;  %v3357_v53 = vrot.slane %v3329_v29, %v5952_v38 }
 0x342   :  { %v4170_v40 = vmul.f32 %v3629_v45, %v2039_v47  ;;  %v3067_v51 = vpop.f32.mrb[24].mxu1  ;;  %v2041_v58 = vpop.f32.mrb[25].mxu0  ;;  %v3359_v29 = vcombine.high %v3343_v43, %v3343_v43 }
 0x343   :  { %v4172_v62 = vmul.f32 %v3637_v48, %v3067_v51  ;;  %v4171_v9 = vmul.f32 %v3633_v49, %v2041_v58  ;;  %v3069_v52 = vpop.f32.mrb[25].mxu1  ;;  %4299 = vadd.xlane.f32.xlu0 %v4298_v50  ;;  %v4302_v55 = vadd.f32 %v4301_v46, %v4168_v21  ;;  %v3677_v48 = vrot.slane %v3360_v19, %v6070_v25 }
 0x344   :  { %v4173_v7 = vmul.f32 %v3641_v33, %v3069_v52  ;;  %v3681_v51 = vrot.slane %v3360_v19, %v6076_v31  ;;  %v3689_v52 = vrot.slane %v3360_v19, %v6079_v32  ;;  %v3709_v12 = vrot.slane %v3357_v53, %v6070_v25 }
 0x345   :  { %v4306_v54 = vadd.f32 %v4171_v9, %v4170_v40  ;;  %v2045_v41 = vpop.f32.mrb[26].mxu0  ;;  %v6140_v57 = vadd.f32 %v4302_v55, %v4169_v44  ;;  %v3685_v40 = vrot.slane %v3360_v19, %v6073_v30 }
 0x346   :  { %v4174_v60 = vmul.f32 %v3645_v27, %v2045_v41  ;;  %v3073_v61 = vpop.f32.mrb[26].mxu1  ;;  %v2047_v0 = vpop.f32.mrb[27].mxu0  ;;  %v3693_v41 = vrot.slane %v3343_v43, %v6070_v25 }
 0x347   :  { %v4176_v3 = vmul.f32 %v3653_v10, %v3073_v61  ;;  %v4175_v14 = vmul.f32 %v3649_v56, %v2047_v0  ;;  %v3075_v15 = vpop.f32.mrb[27].mxu1  ;;  %v4307_v16 = vadd.f32 %v4306_v54, %v4172_v62  ;;  %v3697_v61 = vrot.slane %v3343_v43, %v6076_v31 }
 0x348   :  { %v4177_v18 = vmul.f32 %v3657_v2, %v3075_v15  ;;  %v3705_v15 = vrot.slane %v3343_v43, %v6079_v32 }
 0x349   :  { %v4311_v20 = vadd.f32 %v4175_v14, %v4174_v60  ;;  %v2051_v23 = vpop.f32.mrb[28].mxu0  ;;  %v4308_v11 = vadd.f32 %v4307_v16, %v4173_v7  ;;  %v3701_v60 = vrot.slane %v3343_v43, %v6073_v30  ;;  %v3725_v43 = vrot.slane %v3359_v29, %v6070_v25 }
 0x34a   :  { %v4178_v24 = vmul.f32 %v3661_v42, %v2051_v23  ;;  %v3079_v21 = vpop.f32.mrb[28].mxu1  ;;  %v2053_v8 = vpop.f32.mrb[29].mxu0  ;;  %v3717_v23 = vrot.slane %v3357_v53, %v6073_v30 }
 0x34b   :  { %v4180_v26 = vmul.f32 %v3669_v59, %v3079_v21  ;;  %v4179_v44 = vmul.f32 %v3665_v63, %v2053_v8  ;;  %v3081_v45 = vpop.f32.mrb[29].mxu1  ;;  %4309 = vadd.xlane.f32.xlu1 %v4308_v11  ;;  %v4312_v46 = vadd.f32 %v4311_v20, %v4176_v3  ;;  %v3713_v59 = vrot.slane %v3357_v53, %v6076_v31 }
 0x34c   :  { %v4181_v47 = vmul.f32 %v3673_v36, %v3081_v45  ;;  %v3721_v8 = vrot.slane %v3357_v53, %v6079_v32 }
 0x34d   :  { %v4316_v49 = vadd.f32 %v4179_v44, %v4178_v24  ;;  %v2057_v50 = vpop.f32.mrb[30].mxu0  ;;  %v4313_v58 = vadd.f32 %v4312_v46, %v4177_v18 }
 0x34e   :  { %v4182_v33 = vmul.f32 %v3677_v48, %v2057_v50  ;;  %v3085_v62 = vpop.f32.mrb[30].mxu1  ;;  %v2059_v9 = vpop.f32.mrb[31].mxu0  ;;  %v3733_v50 = vrot.slane %v3359_v29, %v6073_v30 }
 0x34f   :  { %v4184_v55 = vmul.f32 %v3685_v40, %v3085_v62  ;;  %v4183_v7 = vmul.f32 %v3681_v51, %v2059_v9  ;;  %v3087_v27 = vpop.f32.mrb[31].mxu1  ;;  %4314 = vadd.xlane.f32.xlu1 %v4313_v58  ;;  %v4317_v28 = vadd.f32 %v4316_v49, %v4180_v26  ;;  %v3729_v40 = vrot.slane %v3359_v29, %v6076_v31 }
 0x350   :  { %v4185_v54 = vmul.f32 %v3689_v52, %v3087_v27  ;;  %v3737_v9 = vrot.slane %v3359_v29, %v6079_v32  ;;  %v3765_v29 = vrot.slane %v6041_v4, %v6073_v30 }
 0x351   :  { %v4321_v10 = vadd.f32 %v4183_v7, %v4182_v33  ;;  %v2063_v56 = vpop.f32.mrb[32].mxu0  ;;  %v4318_v0 = vadd.f32 %v4317_v28, %v4181_v47  ;;  %v3361_v47 = vcombine.high %v3357_v53, %v3357_v53 }
 0x352   :  { %v4186_v2 = vmul.f32 %v3693_v41, %v2063_v56  ;;  %v3091_v3 = vpop.f32.mrb[32].mxu1  ;;  %v2065_v14 = vpop.f32.mrb[33].mxu0 }
 0x353   :  { %v4188_v16 = vmul.f32 %v3701_v60, %v3091_v3  ;;  %v4187_v18 = vmul.f32 %v3697_v61, %v2065_v14  ;;  %v3093_v42 = vpop.f32.mrb[33].mxu1  ;;  %4319 = vadd.xlane.f32.xlu1 %v4318_v0  ;;  %v4322_v38 = vadd.f32 %v4321_v10, %v4184_v55  ;;  %v3741_v53 = vrot.slane %v3361_v47, %v6070_v25 }
 0x354   :  { %v4189_v1 = vmul.f32 %v3705_v15, %v3093_v42  ;;  %v3749_v10 = vrot.slane %v3361_v47, %v6073_v30  ;;  %v3745_v56 = vrot.slane %v3361_v47, %v6076_v31  ;;  %v3753_v3 = vrot.slane %v3361_v47, %v6079_v32 }
 0x355   :  { %v4326_v19 = vadd.f32 %v4187_v18, %v4186_v2  ;;  %v2069_v20 = vpop.f32.mrb[34].mxu0  ;;  %v4323_v63 = vadd.f32 %v4322_v38, %v4185_v54  ;;  %v3757_v38 = vrot.slane %v6041_v4, %v6070_v25  ;;  %v3781_v47 = vrot.slane %v6047_v13, %v6073_v30 }
 0x356   :  { %v4190_v11 = vmul.f32 %v3709_v12, %v2069_v20  ;;  %v3097_v24 = vpop.f32.mrb[34].mxu1  ;;  %v2071_v21 = vpop.f32.mrb[35].mxu0 }
 0x357   :  { %v4192_v36 = vmul.f32 %v3717_v23, %v3097_v24  ;;  %v4191_v26 = vmul.f32 %v3713_v59, %v2071_v21  ;;  %v3099_v44 = vpop.f32.mrb[35].mxu1  ;;  %4324 = vadd.xlane.f32.xlu1 %v4323_v63  ;;  %v4327_v45 = vadd.f32 %v4326_v19, %v4188_v16  ;;  %v3761_v19 = vrot.slane %v6041_v4, %v6076_v31 }
 0x358   :  { %v4193_v46 = vmul.f32 %v3721_v8, %v3099_v44  ;;  %v3773_v44 = vrot.slane %v6047_v13, %v6070_v25 }
 0x359   :  { %v4331_v48 = vadd.f32 %v4191_v26, %v4190_v11  ;;  %v2075_v49 = vpop.f32.mrb[36].mxu0  ;;  %v4328_v51 = vadd.f32 %v4327_v45, %v4189_v1  ;;  %v3769_v11 = vrot.slane %v6041_v4, %v6079_v32  ;;  %v3426_v45 = vcombine.high %v6041_v4, %v6041_v4 }
 0x35a   :  { %v4194_v58 = vmul.f32 %v3725_v43, %v2075_v49  ;;  %v3103_v33 = vpop.f32.mrb[36].mxu1  ;;  %v2077_v62 = vpop.f32.mrb[37].mxu0 }
 0x35b   :  { %v4196_v52 = vmul.f32 %v3733_v50, %v3103_v33  ;;  %v4195_v55 = vmul.f32 %v3729_v40, %v2077_v62  ;;  %v3105_v7 = vpop.f32.mrb[37].mxu1  ;;  %4329 = vadd.xlane.f32.xlu1 %v4328_v51  ;;  %v4332_v27 = vadd.f32 %v4331_v48, %v4192_v36  ;;  %v3777_v48 = vrot.slane %v6047_v13, %v6076_v31 }
 0x35c   :  { %v4197_v28 = vmul.f32 %v3737_v9, %v3105_v7  ;;  %v3428_v7 = vcombine.high %v6047_v13, %v6047_v13 }
 0x35d   :  { %v4336_v54 = vadd.f32 %v4195_v55, %v4194_v58  ;;  %v2081_v41 = vpop.f32.mrb[38].mxu0  ;;  %v4333_v60 = vadd.f32 %v4332_v27, %v4193_v46  ;;  %v3785_v58 = vrot.slane %v6047_v13, %v6079_v32  ;;  %v3789_v55 = vrot.slane %v3426_v45, %v6070_v25 }
 0x35e   :  { %v4198_v61 = vmul.f32 %v3741_v53, %v2081_v41  ;;  %v3109_v0 = vpop.f32.mrb[38].mxu1  ;;  %v2083_v2 = vpop.f32.mrb[39].mxu0  ;;  %v3797_v53 = vrot.slane %v3426_v45, %v6073_v30  ;;  %v3805_v13 = vrot.slane %v3428_v7, %v6070_v25 }
 0x35f   :  { %v4200_v14 = vmul.f32 %v3749_v10, %v3109_v0  ;;  %v4199_v15 = vmul.f32 %v3745_v56, %v2083_v2  ;;  %v3111_v16 = vpop.f32.mrb[39].mxu1  ;;  %4334 = vadd.xlane.f32.xlu1 %v4333_v60  ;;  %v4337_v18 = vadd.f32 %v4336_v54, %v4196_v52  ;;  %v3793_v54 = vrot.slane %v3426_v45, %v6076_v31 }
 0x360   :  { %v4201_v42 = vmul.f32 %v3753_v3, %v3111_v16 }
 0x361   :  { %v4341_v1 = vadd.f32 %v4199_v15, %v4198_v61  ;;  %v2087_v12 = vpop.f32.mrb[40].mxu0  ;;  %v4338_v20 = vadd.f32 %v4337_v18, %v4197_v28  ;;  %v3801_v61 = vrot.slane %v3426_v45, %v6079_v32 }
 0x362   :  { %v4202_v23 = vmul.f32 %v3757_v38, %v2087_v12  ;;  %v3115_v59 = vpop.f32.mrb[40].mxu1  ;;  %v2089_v63 = vpop.f32.mrb[41].mxu0  ;;  %v3809_v38 = vrot.slane %v3428_v7, %v6076_v31 }
 0x363   :  { %v4204_v24 = vmul.f32 %v3765_v29, %v3115_v59  ;;  %v4203_v21 = vmul.f32 %v3761_v19, %v2089_v63  ;;  %v3117_v8 = vpop.f32.mrb[41].mxu1  ;;  %4339 = vadd.xlane.f32.xlu1 %v4338_v20  ;;  %v4342_v36 = vadd.f32 %v4341_v1, %v4200_v14  ;;  %v3817_v20 = vrot.slane %v3428_v7, %v6079_v32 }
 0x364   :  { %v4205_v26 = vmul.f32 %v3769_v11, %v3117_v8 }
 0x365   :  { %v4346_v46 = vadd.f32 %v4203_v21, %v4202_v23  ;;  %v2093_v43 = vpop.f32.mrb[42].mxu0  ;;  %v4343_v49 = vadd.f32 %v4342_v36, %v4201_v42  ;;  %v3813_v42 = vrot.slane %v3428_v7, %v6073_v30  ;;  %v3821_v21 = vrot.slane %v6044_v5, %v6070_v25 }
 0x366   :  { %v4206_v50 = vmul.f32 %v3773_v44, %v2093_v43  ;;  %v3121_v40 = vpop.f32.mrb[42].mxu1  ;;  %v2095_v51 = vpop.f32.mrb[43].mxu0  ;;  %v3825_v44 = vrot.slane %v6044_v5, %v6076_v31  ;;  %v3841_v7 = vrot.slane %v6051_v17, %v6076_v31 }
 0x367   :  { %v4208_v33 = vmul.f32 %v3781_v47, %v3121_v40  ;;  %v4207_v62 = vmul.f32 %v3777_v48, %v2095_v51  ;;  %v3123_v9 = vpop.f32.mrb[43].mxu1  ;;  %v4347_v52 = vadd.f32 %v4346_v46, %v4204_v24  ;;  %v3833_v48 = vrot.slane %v6044_v5, %v6079_v32 }
 0x368   :  { %v4209_v4 = vmul.f32 %v3785_v58, %v3123_v9  ;;  %v3427_v9 = vcombine.high %v6044_v5, %v6044_v5 }
 0x369   :  { %v4351_v27 = vadd.f32 %v4207_v62, %v4206_v50  ;;  %v2099_v28 = vpop.f32.mrb[44].mxu0  ;;  %v4348_v41 = vadd.f32 %v4347_v52, %v4205_v26  ;;  %v3829_v26 = vrot.slane %v6044_v5, %v6073_v30  ;;  %v3837_v62 = vrot.slane %v6051_v17, %v6070_v25 }
 0x36a   :  { %v4210_v10 = vmul.f32 %v3789_v55, %v2099_v28  ;;  %v3127_v56 = vpop.f32.mrb[44].mxu1  ;;  %v2101_v60 = vpop.f32.mrb[45].mxu0  ;;  %v3845_v55 = vrot.slane %v6051_v17, %v6073_v30 }
 0x36b   :  { %v4212_v0 = vmul.f32 %v3797_v53, %v3127_v56  ;;  %v4211_v2 = vmul.f32 %v3793_v54, %v2101_v60  ;;  %v3129_v3 = vpop.f32.mrb[45].mxu1  ;;  %4349 = vadd.xlane.f32.xlu0 %v4348_v41  ;;  %v4352_v14 = vadd.f32 %v4351_v27, %v4208_v33  ;;  %v3849_v54 = vrot.slane %v6051_v17, %v6079_v32 }
 0x36c   :  { %v4213_v15 = vmul.f32 %v3801_v61, %v3129_v3  ;;  %v3853_v61 = vrot.slane %v3427_v9, %v6070_v25 }
 0x36d   :  { %v4356_v16 = vadd.f32 %v4211_v2, %v4210_v10  ;;  %v2105_v18 = vpop.f32.mrb[46].mxu0  ;;  %v4353_v1 = vadd.f32 %v4352_v14, %v4209_v4  ;;  %v3861_v14 = vrot.slane %v3427_v9, %v6073_v30 }
 0x36e   :  { %v4214_v12 = vmul.f32 %v3805_v13, %v2105_v18  ;;  %v3133_v29 = vpop.f32.mrb[46].mxu1  ;;  %v2107_v19 = vpop.f32.mrb[47].mxu0 }
 0x36f   :  { %v4216_v23 = vmul.f32 %v3813_v42, %v3133_v29  ;;  %v4215_v59 = vmul.f32 %v3809_v38, %v2107_v19  ;;  %v3135_v63 = vpop.f32.mrb[47].mxu1  ;;  %4354 = vadd.xlane.f32.xlu1 %v4353_v1  ;;  %v4357_v11 = vadd.f32 %v4356_v16, %v4212_v0  ;;  %v3429_v0 = vcombine.high %v6051_v17, %v6051_v17 }
 0x370   :  { %v4217_v24 = vmul.f32 %v3817_v20, %v3135_v63  ;;  %v3865_v38 = vrot.slane %v3427_v9, %v6079_v32 }
 0x371   :  { %v4361_v8 = vadd.f32 %v4215_v59, %v4214_v12  ;;  %v2111_v36 = vpop.f32.mrb[48].mxu0  ;;  %v4358_v45 = vadd.f32 %v4357_v11, %v4213_v15  ;;  %v3857_v15 = vrot.slane %v3427_v9, %v6076_v31  ;;  %v3869_v17 = vrot.slane %v3429_v0, %v6070_v25 }
 0x372   :  { %v4218_v46 = vmul.f32 %v3821_v21, %v2111_v36  ;;  %v3139_v43 = vpop.f32.mrb[48].mxu1  ;;  %v2113_v47 = vpop.f32.mrb[49].mxu0  ;;  %v3877_v63 = vrot.slane %v3429_v0, %v6073_v30  ;;  %v3873_v11 = vrot.slane %v3429_v0, %v6076_v31 }
 0x373   :  { %v4220_v50 = vmul.f32 %v3829_v26, %v3139_v43  ;;  %v4219_v40 = vmul.f32 %v3825_v44, %v2113_v47  ;;  %v3141_v51 = vpop.f32.mrb[49].mxu1  ;;  %4344 = vadd.xlane.f32.xlu1 %v4343_v49  ;;  %4359 = vadd.xlane.f32.xlu0 %v4358_v45  ;;  %v4362_v58 = vadd.f32 %v4361_v8, %v4216_v23 }
 0x374   :  { %v4221_v33 = vmul.f32 %v3833_v48, %v3141_v51  ;;  %v3881_v26 = vrot.slane %v3429_v0, %v6079_v32  ;;  %v3885_v48 = vrot.slane %v6054_v34, %v6070_v25  ;;  %v3893_v51 = vrot.slane %v6054_v34, %v6073_v30 }
 0x375   :  { %v4366_v52 = vadd.f32 %v4219_v40, %v4218_v46  ;;  %v2117_v4 = vpop.f32.mrb[50].mxu0  ;;  %v4363_v27 = vadd.f32 %v4362_v58, %v4217_v24  ;;  %v3889_v58 = vrot.slane %v6054_v34, %v6076_v31 }
 0x376   :  { %v4222_v28 = vmul.f32 %v3837_v62, %v2117_v4  ;;  %v3145_v49 = vpop.f32.mrb[50].mxu1  ;;  %v2119_v53 = vpop.f32.mrb[51].mxu0  ;;  %v3897_v4 = vrot.slane %v6054_v34, %v6079_v32 }
 0x377   :  { %v4224_v41 = vmul.f32 %v3845_v55, %v3145_v49  ;;  %v4223_v10 = vmul.f32 %v3841_v7, %v2119_v53  ;;  %v3147_v56 = vpop.f32.mrb[51].mxu1  ;;  %4364 = vadd.xlane.f32.xlu0 %v4363_v27  ;;  %v4367_v5 = vadd.f32 %v4366_v52, %v4220_v50  ;;  %v3901_v53 = vrot.slane %v6057_v35, %v6070_v25 }
 0x378   :  { %v4225_v60 = vmul.f32 %v3849_v54, %v3147_v56  ;;  %v3494_v54 = vcombine.high %v6054_v34, %v6054_v34  ;;  %v3909_v56 = vrot.slane %v6057_v35, %v6073_v30 }
 0x379   :  { %v4371_v2 = vadd.f32 %v4223_v10, %v4222_v28  ;;  %v2123_v3 = vpop.f32.mrb[52].mxu0  ;;  %v4368_v13 = vadd.f32 %v4367_v5, %v4221_v33  ;;  %v3905_v5 = vrot.slane %v6057_v35, %v6076_v31 }
 0x37a   :  { %v4226_v16 = vmul.f32 %v3853_v61, %v2123_v3  ;;  %v3151_v18 = vpop.f32.mrb[52].mxu1  ;;  %v2125_v42 = vpop.f32.mrb[53].mxu0  ;;  %v3913_v3 = vrot.slane %v6057_v35, %v6079_v32 }
 0x37b   :  { %v4228_v1 = vmul.f32 %v3861_v14, %v3151_v18  ;;  %v4227_v12 = vmul.f32 %v3857_v15, %v2125_v42  ;;  %v3153_v29 = vpop.f32.mrb[53].mxu1  ;;  %4369 = vadd.xlane.f32.xlu0 %v4368_v13  ;;  %v4372_v19 = vadd.f32 %v4371_v2, %v4224_v41  ;;  %v3917_v18 = vrot.slane %v3494_v54, %v6070_v25 }
 0x37c   :  { %v4229_v20 = vmul.f32 %v3865_v38, %v3153_v29  ;;  %v3496_v42 = vcombine.high %v6057_v35, %v6057_v35  ;;  %v3921_v29 = vrot.slane %v3494_v54, %v6076_v31 }
 0x37d   :  { %v4376_v23 = vadd.f32 %v4227_v12, %v4226_v16  ;;  %v2129_v59 = vpop.f32.mrb[54].mxu0  ;;  %v4373_v24 = vadd.f32 %v4372_v19, %v4225_v60  ;;  %v3925_v12 = vrot.slane %v3494_v54, %v6073_v30 }
 0x37e   :  { %v4230_v21 = vmul.f32 %v3869_v17, %v2129_v59  ;;  %v3157_v8 = vpop.f32.mrb[54].mxu1  ;;  %v2131_v36 = vpop.f32.mrb[55].mxu0  ;;  %v3929_v59 = vrot.slane %v3494_v54, %v6079_v32  ;;  %v3933_v35 = vrot.slane %v3496_v42, %v6070_v25 }
 0x37f   :  { %v4232_v44 = vmul.f32 %v3877_v63, %v3157_v8  ;;  %v4231_v45 = vmul.f32 %v3873_v11, %v2131_v36  ;;  %v3159_v46 = vpop.f32.mrb[55].mxu1  ;;  %4374 = vadd.xlane.f32.xlu0 %v4373_v24  ;;  %v4377_v43 = vadd.f32 %v4376_v23, %v4228_v1 }
 0x380   :  { %v4233_v47 = vmul.f32 %v3881_v26, %v3159_v46 }
 0x381   :  { %v4381_v50 = vadd.f32 %v4231_v45, %v4230_v21  ;;  %v2135_v40 = vpop.f32.mrb[56].mxu0  ;;  %v4378_v33 = vadd.f32 %v4377_v43, %v4229_v20  ;;  %v3937_v45 = vrot.slane %v3496_v42, %v6076_v31 }
 0x382   :  { %v4234_v62 = vmul.f32 %v3885_v48, %v2135_v40  ;;  %v3163_v9 = vpop.f32.mrb[56].mxu1  ;;  %v2137_v52 = vpop.f32.mrb[57].mxu0 }
 0x383   :  { %v4236_v55 = vmul.f32 %v3893_v51, %v3163_v9  ;;  %v4235_v7 = vmul.f32 %v3889_v58, %v2137_v52  ;;  %v3165_v27 = vpop.f32.mrb[57].mxu1  ;;  %4379 = vadd.xlane.f32.xlu0 %v4378_v33  ;;  %v4382_v28 = vadd.f32 %v4381_v50, %v4232_v44  ;;  %v3941_v44 = vrot.slane %v3496_v42, %v6073_v30 }
 0x384   :  { %v4237_v49 = vmul.f32 %v3897_v4, %v3165_v27  ;;  %v3945_v50 = vrot.slane %v3496_v42, %v6079_v32  ;;  %v3949_v9 = vrot.slane %v6060_v37, %v6070_v25 }
 0x385   :  { %v4386_v41 = vadd.f32 %v4235_v7, %v4234_v62  ;;  %v2141_v10 = vpop.f32.mrb[58].mxu0  ;;  %v4383_v60 = vadd.f32 %v4382_v28, %v4233_v47  ;;  %v3953_v7 = vrot.slane %v6060_v37, %v6076_v31 }
 0x386   :  { %v4238_v61 = vmul.f32 %v3901_v53, %v2141_v10  ;;  %v3169_v0 = vpop.f32.mrb[58].mxu1  ;;  %v2143_v2 = vpop.f32.mrb[59].mxu0 }
 0x387   :  { %v4240_v14 = vmul.f32 %v3909_v56, %v3169_v0  ;;  %v4239_v15 = vmul.f32 %v3905_v5, %v2143_v2  ;;  %v3171_v13 = vpop.f32.mrb[59].mxu1  ;;  %v4387_v16 = vadd.f32 %v4386_v41, %v4236_v55  ;;  %v3957_v55 = vrot.slane %v6060_v37, %v6073_v30 }
 0x388   :  { %v4241_v34 = vmul.f32 %v3913_v3, %v3171_v13  ;;  %v3495_v0 = vcombine.high %v6060_v37, %v6060_v37 }
 0x389   :  { %v4391_v38 = vadd.f32 %v4239_v15, %v4238_v61  ;;  %v2147_v1 = vpop.f32.mrb[60].mxu0  ;;  %v4388_v19 = vadd.f32 %v4387_v16, %v4237_v49  ;;  %v3965_v61 = vrot.slane %v6063_v39, %v6070_v25  ;;  %v3969_v15 = vrot.slane %v6063_v39, %v6076_v31 }
 0x38a   :  { %v4242_v20 = vmul.f32 %v3917_v18, %v2147_v1  ;;  %v3175_v17 = vpop.f32.mrb[60].mxu1  ;;  %v2149_v23 = vpop.f32.mrb[61].mxu0  ;;  %v3977_v18 = vrot.slane %v6063_v39, %v6079_v32 }
 0x38b   :  { %v4244_v63 = vmul.f32 %v3925_v12, %v3175_v17  ;;  %v4243_v11 = vmul.f32 %v3921_v29, %v2149_v23  ;;  %v3177_v24 = vpop.f32.mrb[61].mxu1  ;;  %4389 = vadd.xlane.f32.xlu0 %v4388_v19  ;;  %v4392_v21 = vadd.f32 %v4391_v38, %v4240_v14  ;;  %v3973_v14 = vrot.slane %v6063_v39, %v6073_v30 }
 0x38c   :  { %v4245_v8 = vmul.f32 %v3929_v59, %v3177_v24  ;;  %v3981_v29 = vrot.slane %v3495_v0, %v6070_v25  ;;  %v3497_v19 = vcombine.high %v6063_v39, %v6063_v39  ;;  %v3989_v23 = vrot.slane %v3495_v0, %v6073_v30 }
 0x38d   :  { %v4396_v36 = vadd.f32 %v4243_v11, %v4242_v20  ;;  %v2153_v26 = vpop.f32.mrb[62].mxu0  ;;  %v4393_v46 = vadd.f32 %v4392_v21, %v4241_v34  ;;  %v3985_v59 = vrot.slane %v3495_v0, %v6076_v31 }
 0x38e   :  { %v4246_v43 = vmul.f32 %v3933_v35, %v2153_v26  ;;  %v3181_v47 = vpop.f32.mrb[62].mxu1  ;;  %v2155_v48 = vpop.f32.mrb[63].mxu0  ;;  %v3997_v39 = vrot.slane %v3497_v19, %v6070_v25 }
 0x38f   :  { %v4248_v40 = vmul.f32 %v3941_v44, %v3181_v47  ;;  %v4247_v51 = vmul.f32 %v3937_v45, %v2155_v48  ;;  %v3183_v58 = vpop.f32.mrb[63].mxu1  ;;  %4304 = vadd.xlane.f32.xlu0 %v6140_v57  ;;  %4394 = vadd.xlane.f32.xlu1 %v4393_v46  ;;  %v4397_v33 = vadd.f32 %v4396_v36, %v4244_v63 }
 0x390   :  { %v4249_v62 = vmul.f32 %v3945_v50, %v3183_v58  ;;  %v3961_v57 = vrot.slane %v6060_v37, %v6079_v32  ;;  %v4005_v47 = vrot.slane %v3497_v19, %v6073_v30  ;;  %v4001_v48 = vrot.slane %v3497_v19, %v6076_v31 }
 0x391   :  { %v4401_v52 = vadd.f32 %v4247_v51, %v4246_v43  ;;  %v2159_v4 = vpop.f32.mrb[64].mxu0  ;;  %v4398_v27 = vadd.f32 %v4397_v33, %v4245_v8  ;;  %v3993_v8 = vrot.slane %v3495_v0, %v6079_v32  ;;  %v4009_v33 = vrot.slane %v3497_v19, %v6079_v32 }
 0x392   :  { %v4250_v28 = vmul.f32 %v3949_v9, %v2159_v4  ;;  %v3187_v49 = vpop.f32.mrb[64].mxu1  ;;  %v2161_v53 = vpop.f32.mrb[65].mxu0 }
 0x393   :  { %v4252_v54 = vmul.f32 %v3957_v55, %v3187_v49  ;;  %v4251_v41 = vmul.f32 %v3953_v7, %v2161_v53  ;;  %v3189_v10 = vpop.f32.mrb[65].mxu1  ;;  %4384 = vadd.xlane.f32.xlu0 %v4383_v60  ;;  %4399 = vadd.xlane.f32.xlu1 %v4398_v27  ;;  %v4402_v56 = vadd.f32 %v4401_v52, %v4248_v40 }
 0x394   :  { %v4253_v5 = vmul.f32 %v3961_v57, %v3189_v10 }
 0x395   :  { %v4406_v2 = vadd.f32 %v4251_v41, %v4250_v28  ;;  %v2165_v3 = vpop.f32.mrb[66].mxu0  ;;  %v4403_v13 = vadd.f32 %v4402_v56, %v4249_v62 }
 0x396   :  { %v4254_v16 = vmul.f32 %v3965_v61, %v2165_v3  ;;  %v3193_v60 = vpop.f32.mrb[66].mxu1  ;;  %v2167_v34 = vpop.f32.mrb[67].mxu0 }
 0x397   :  { %v4256_v42 = vmul.f32 %v3973_v14, %v3193_v60  ;;  %v4255_v38 = vmul.f32 %v3969_v15, %v2167_v34  ;;  %v3195_v1 = vpop.f32.mrb[67].mxu1  ;;  %4404 = vadd.xlane.f32.xlu1 %v4403_v13  ;;  %v4407_v37 = vadd.f32 %v4406_v2, %v4252_v54  ;;  %v4491_v15 = vand.u32 127, %v3233_v6 }
 0x398   :  { %v4257_v12 = vmul.f32 %v3977_v18, %v3195_v1 }
 0x399   :  { %v4411_v20 = vadd.f32 %v4255_v38, %v4254_v16  ;;  %v2171_v17 = vpop.f32.mrb[68].mxu0  ;;  %v4408_v63 = vadd.f32 %v4407_v37, %v4253_v5 }
 0x39a   :  { %v4258_v11 = vmul.f32 %v3981_v29, %v2171_v17  ;;  %v3199_v24 = vpop.f32.mrb[68].mxu1  ;;  %v2173_v21 = vpop.f32.mrb[69].mxu0 }
 0x39b   :  { %v4260_v35 = vmul.f32 %v3989_v23, %v3199_v24  ;;  %v4259_v36 = vmul.f32 %v3985_v59, %v2173_v21  ;;  %v3201_v26 = vpop.f32.mrb[69].mxu1  ;;  %4409 = vadd.xlane.f32.xlu1 %v4408_v63  ;;  %v4412_v44 = vadd.f32 %v4411_v20, %v4256_v42  ;;  %v6290_v42 = vsub.s32 %v4491_v15, %v5949_v22 }
 0x39c   :  { %v4261_v45 = vmul.f32 %v3993_v8, %v3201_v26 }
 0x39d   :  { %v4416_v46 = vadd.f32 %v4259_v36, %v4258_v11  ;;  %v2177_v43 = vpop.f32.mrb[70].mxu0  ;;  %v4413_v50 = vadd.f32 %v4412_v44, %v4257_v12 }
 0x39e   :  { %v4262_v40 = vmul.f32 %v3997_v39, %v2177_v43  ;;  %v3205_v51 = vpop.f32.mrb[70].mxu1  ;;  %v2179_v58 = vpop.f32.mrb[71].mxu0 }
 0x39f   :  { %v4264_v62 = vmul.f32 %v4005_v47, %v3205_v51  ;;  %v4263_v9 = vmul.f32 %v4001_v48, %v2179_v58  ;;  %v3207_v52 = vpop.f32.mrb[71].mxu1  ;;  %4414 = vadd.xlane.f32.xlu1 %v4413_v50  ;;  %v4417_v4 = vadd.f32 %v4416_v46, %v4260_v35 }
 0x3a0   :  { %v4265_v55 = vmul.f32 %v4009_v33, %v3207_v52 }
 0x3a1   :  { %v4421_v7 = vadd.f32 %v4263_v9, %v4262_v40  ;;  %v4418_v25 = vadd.f32 %v4417_v4, %v4261_v45 }
 0x3a3   :  { %4419 = vadd.xlane.f32.xlu1 %v4418_v25  ;;  %v4422_v27 = vadd.f32 %v4421_v7, %v4264_v62 }
 0x3a5   :  { %v4423_v28 = vadd.f32 %v4422_v27, %v4265_v55 }
 0x3a7   :  { %4424 = vadd.xlane.f32.xlu1 %v4423_v28 }
 0x3b8   :  { %v4270_v30 = vpop.xlane.xlu0 %4269 }
 0x3bc   :  { %v4275_v49 = vpop.xlane.xlu0 %4274 }
 0x3c0   :  { %v4280_v57 = vpop.xlane.xlu0 %4279 }
 0x3c4   :  { %v4285_v41 = vpop.xlane.xlu0 %4284 }
 0x3c8   :  { %v4290_v10 = vpop.xlane.xlu0 %4289 }
 0x3cc   :  { %v4295_v5 = vpop.xlane.xlu0 %4294 }
 0x3d0   :  { %v4300_v0 = vpop.xlane.xlu0 %4299 }
 0x3d8   :  { %v4310_v31 = vpop.xlane.xlu1 %4309 }
 0x3d9   :  { %5706 = vtanh.f32 %v4310_v31 }
 0x3dc   :  { %v4315_v53 = vpop.xlane.xlu1 %4314 }
 0x3dd   :  { %5708 = vtanh.f32 %v4315_v53 }
 0x3e0   :  { %v4320_v54 = vpop.xlane.xlu1 %4319 }
 0x3e1   :  { %5710 = vtanh.f32 %v4320_v54 }
 0x3e3   :  { %v5707_v13 = vpop.eup %5706 }
 0x3e4   :  { %v4325_v32 = vpop.xlane.xlu1 %4324  ;;  %v4527_v6 = vrot.slane %v5707_v13, %v6290_v42 }
 0x3e5   :  { %5712 = vtanh.f32 %v4325_v32 }
 0x3e7   :  { %v5709_v34 = vpop.eup %5708 }
 0x3e8   :  { %v4330_v56 = vpop.xlane.xlu1 %4329  ;;  %v4531_v37 = vrot.slane %v5709_v34, %v6290_v42 }
 0x3e9   :  { %5714 = vtanh.f32 %v4330_v56 }
 0x3ea   :  { %v4634_v22 = vsel %vm4620_vm0, %v4531_v37, %v4527_v6 }
 0x3eb   :  { %v5711_v18 = vpop.eup %5710 }
 0x3ec   :  { %v4335_v61 = vpop.xlane.xlu1 %4334  ;;  %v4535_v19 = vrot.slane %v5711_v18, %v6290_v42 }
 0x3ed   :  { %5716 = vtanh.f32 %v4335_v61 }
 0x3ee   :  { %v4635_v11 = vsel %vm4622_vm1, %v4535_v19, %v4634_v22 }
 0x3ef   :  { %v5713_v38 = vpop.eup %5712 }
 0x3f0   :  { %v4340_v2 = vpop.xlane.xlu1 %4339  ;;  %v4539_v17 = vrot.slane %v5713_v38, %v6290_v42 }
 0x3f1   :  { %5718 = vtanh.f32 %v4340_v2 }
 0x3f2   :  { %v4636_v21 = vsel %vm4624_vm2, %v4539_v17, %v4635_v11 }
 0x3f3   :  { %v5715_v1 = vpop.eup %5714 }
 0x3f4   :  { %v4543_v23 = vrot.slane %v5715_v1, %v6290_v42 }
 0x3f6   :  { %v4637_v35 = vsel %vm4626_vm3, %v4543_v23, %v4636_v21 }
 0x3f7   :  { %v5717_v29 = vpop.eup %5716 }
 0x3f8   :  { %v4350_v3 = vpop.xlane.xlu0 %4349  ;;  %v4547_v59 = vrot.slane %v5717_v29, %v6290_v42 }
 0x3fa   :  { %v4638_v36 = vsel %vm4628_vm4, %v4547_v59, %v4637_v35 }
 0x3fb   :  { %v5719_v20 = vpop.eup %5718 }
 0x3fc   :  { %v4355_v14 = vpop.xlane.xlu1 %4354  ;;  %v4551_v24 = vrot.slane %v5719_v20, %v6290_v42 }
 0x3fe   :  { %v4639_v44 = vsel %vm4630_vm6, %v4551_v24, %v4638_v36 }
 0x400   :  { %v4345_v16 = vpop.xlane.xlu1 %4344  ;;  %v4360_v60 = vpop.xlane.xlu0 %4359 }
 0x401   :  { %5720 = vtanh.f32 %v4345_v16 }
 0x402   :  { %5722 = vtanh.f32 %v4270_v30 }
 0x403   :  { %5724 = vtanh.f32 %v4275_v49 }
 0x404   :  { %v4365_v12 = vpop.xlane.xlu0 %4364  ;;  %5726 = vtanh.f32 %v4280_v57 }
 0x405   :  { %5728 = vtanh.f32 %v4285_v41 }
 0x406   :  { %5730 = vtanh.f32 %v4290_v10 }
 0x407   :  { %5732 = vtanh.f32 %v4295_v5 }
 0x408   :  { %v4370_v63 = vpop.xlane.xlu0 %4369  ;;  %5734 = vtanh.f32 %v4300_v0 }
 0x409   :  { %5736 = vtanh.f32 %v4350_v3 }
 0x40a   :  { %5738 = vtanh.f32 %v4355_v14 }
 0x40b   :  { %v5721_v8 = vpop.eup %5720  ;;  %5740 = vtanh.f32 %v4360_v60 }
 0x40c   :  { %v4555_v26 = vrot.slane %v5721_v8, %v6290_v42  ;;  %v4375_v39 = vpop.xlane.xlu0 %4374  ;;  %v5723_v47 = vpop.eup %5722  ;;  %5742 = vtanh.f32 %v4365_v12 }
 0x40d   :  { %v5725_v48 = vpop.eup %5724  ;;  %5744 = vtanh.f32 %v4370_v63  ;;  %v4495_v30 = vrot.slane %v5723_v47, %v6290_v42 }
 0x40e   :  { %v4640_v45 = vsel %vm4632_vm5, %v4555_v26, %v4639_v44  ;;  %v5727_v50 = vpop.eup %5726  ;;  %5746 = vtanh.f32 %v4375_v39  ;;  %v4499_v4 = vrot.slane %v5725_v48, %v6290_v42 }
 0x40f   :  { %4661 = vst.msk [vmem:[%s6372_s4 + $0x8] sm:$0xff] %vm4659_vm7, %v4640_v45  ;;  %v5729_v40 = vpop.eup %5728  ;;  %v4503_v27 = vrot.slane %v5727_v50, %v6290_v42 }
 0x410   :  { %v4380_v46 = vpop.xlane.xlu0 %4379  ;;  %v5731_v33 = vpop.eup %5730  ;;  %v4507_v31 = vrot.slane %v5729_v40, %v6290_v42  ;;  %v4621_v54 = vsel %vm4620_vm0, %v4499_v4, %v4495_v30 }
 0x411   :  { %5748 = vtanh.f32 %v4380_v46  ;;  %v5733_v62 = vpop.eup %5732  ;;  %v4511_v53 = vrot.slane %v5731_v33, %v6290_v42  ;;  %v4623_v5 = vsel %vm4622_vm1, %v4503_v27, %v4621_v54 }
 0x412   :  { %v5735_v9 = vpop.eup %5734  ;;  %v4515_v41 = vrot.slane %v5733_v62, %v6290_v42  ;;  %v4625_v3 = vsel %vm4624_vm2, %v4507_v31, %v4623_v5 }
 0x413   :  { %v5737_v52 = vpop.eup %5736  ;;  %v4519_v61 = vrot.slane %v5735_v9, %v6290_v42  ;;  %v4627_v16 = vsel %vm4626_vm3, %v4511_v53, %v4625_v3 }
 0x414   :  { %v5739_v25 = vpop.eup %5738  ;;  %v4559_v14 = vrot.slane %v5737_v52, %v6290_v42  ;;  %v4629_v34 = vsel %vm4628_vm4, %v4515_v41, %v4627_v16 }
 0x415   :  { %v5741_v28 = vpop.eup %5740  ;;  %v4563_v32 = vrot.slane %v5739_v25, %v6290_v42  ;;  %v4631_v12 = vsel %vm4630_vm6, %v4519_v61, %v4629_v34 }
 0x416   :  { %v5743_v49 = vpop.eup %5742  ;;  %v4567_v0 = vrot.slane %v5741_v28, %v6290_v42 }
 0x417   :  { %v5745_v57 = vpop.eup %5744  ;;  %v4571_v15 = vrot.slane %v5743_v49, %v6290_v42  ;;  %v4641_v18 = vsel %vm4620_vm0, %v4563_v32, %v4559_v14 }
 0x418   :  { %v4390_v43 = vpop.xlane.xlu0 %4389  ;;  %v5747_v56 = vpop.eup %5746  ;;  %v4575_v60 = vrot.slane %v5745_v57, %v6290_v42  ;;  %v4642_v29 = vsel %vm4622_vm1, %v4567_v0, %v4641_v18 }
 0x419   :  { %v4579_v38 = vrot.slane %v5747_v56, %v6290_v42  ;;  %v4643_v20 = vsel %vm4624_vm2, %v4571_v15, %v4642_v29 }
 0x41a   :  { %v4644_v23 = vsel %vm4626_vm3, %v4575_v60, %v4643_v20 }
 0x41b   :  { %v5749_v2 = vpop.eup %5748  ;;  %v4645_v22 = vsel %vm4628_vm4, %v4579_v38, %v4644_v23 }
 0x41c   :  { %v4305_v51 = vpop.xlane.xlu0 %4304  ;;  %v4395_v58 = vpop.xlane.xlu1 %4394  ;;  %v4583_v19 = vrot.slane %v5749_v2, %v6290_v42 }
 0x41d   :  { %5750 = vtanh.f32 %v4305_v51 }
 0x41e   :  { %v4646_v11 = vsel %vm4630_vm6, %v4583_v19, %v4645_v22 }
 0x420   :  { %v4385_v55 = vpop.xlane.xlu0 %4384  ;;  %v4400_v7 = vpop.xlane.xlu1 %4399 }
 0x421   :  { %5752 = vtanh.f32 %v4385_v55 }
 0x422   :  { %5754 = vtanh.f32 %v4390_v43 }
 0x423   :  { %5756 = vtanh.f32 %v4395_v58 }
 0x424   :  { %v4405_v10 = vpop.xlane.xlu1 %4404  ;;  %5758 = vtanh.f32 %v4400_v7 }
 0x425   :  { %5760 = vtanh.f32 %v4405_v10 }
 0x427   :  { %v5751_v13 = vpop.eup %5750 }
 0x428   :  { %v4523_v1 = vrot.slane %v5751_v13, %v6290_v42  ;;  %v4410_v37 = vpop.xlane.xlu1 %4409 }
 0x429   :  { %5762 = vtanh.f32 %v4410_v37 }
 0x42a   :  { %v4633_v6 = vsel %vm4632_vm5, %v4523_v1, %v4631_v12 }
 0x42b   :  { %v5753_v17 = vpop.eup %5752  ;;  %4660 = vst.msk [vmem:[%s6372_s4] sm:$0xff] %vm4659_vm7, %v4633_v6 }
 0x42c   :  { %v4587_v59 = vrot.slane %v5753_v17, %v6290_v42  ;;  %v4415_v63 = vpop.xlane.xlu1 %4414  ;;  %v5755_v8 = vpop.eup %5754 }
 0x42d   :  { %5764 = vtanh.f32 %v4415_v63  ;;  %v5757_v36 = vpop.eup %5756  ;;  %v4591_v47 = vrot.slane %v5755_v8, %v6290_v42 }
 0x42e   :  { %v4647_v24 = vsel %vm4632_vm5, %v4587_v59, %v4646_v11  ;;  %v5759_v26 = vpop.eup %5758  ;;  %v4595_v39 = vrot.slane %v5757_v36, %v6290_v42 }
 0x42f   :  { %4662 = vst.msk [vmem:[%s6372_s4 + $0x10] sm:$0xff] %vm4659_vm7, %v4647_v24  ;;  %v5761_v44 = vpop.eup %5760  ;;  %v4599_v43 = vrot.slane %v5759_v26, %v6290_v42 }
 0x430   :  { %v4420_v21 = vpop.xlane.xlu1 %4419  ;;  %v4603_v48 = vrot.slane %v5761_v44, %v6290_v42  ;;  %v4648_v51 = vsel %vm4620_vm0, %v4595_v39, %v4591_v47 }
 0x431   :  { %5766 = vtanh.f32 %v4420_v21  ;;  %v4649_v33 = vsel %vm4622_vm1, %v4599_v43, %v4648_v51 }
 0x432   :  { %v4650_v9 = vsel %vm4624_vm2, %v4603_v48, %v4649_v33 }
 0x433   :  { %v5763_v45 = vpop.eup %5762 }
 0x434   :  { %v4425_v35 = vpop.xlane.xlu1 %4424  ;;  %v4607_v40 = vrot.slane %v5763_v45, %v6290_v42 }
 0x435   :  { %5768 = vtanh.f32 %v4425_v35 }
 0x436   :  { %v4651_v4 = vsel %vm4626_vm3, %v4607_v40, %v4650_v9 }
 0x437   :  { %v5765_v46 = vpop.eup %5764 }
 0x438   :  { %v4611_v58 = vrot.slane %v5765_v46, %v6290_v42 }
 0x43a   :  { %v4652_v55 = vsel %vm4628_vm4, %v4611_v58, %v4651_v4 }
 0x43b   :  { %v5767_v50 = vpop.eup %5766 }
 0x43c   :  { %v4615_v62 = vrot.slane %v5767_v50, %v6290_v42 }
 0x43e   :  { %v4653_v25 = vsel %vm4630_vm6, %v4615_v62, %v4652_v55 }
 0x43f   :  { %v5769_v52 = vpop.eup %5768 }
 0x440   :  { %v4619_v7 = vrot.slane %v5769_v52, %v6290_v42 }
 0x442   :  { %v4654_v27 = vsel %vm4632_vm5, %v4619_v7, %v4653_v25 }
 0x443   :  { %4663 = vst.msk [vmem:[%s6372_s4 + $0x18] sm:$0xff] %vm4659_vm7, %v4654_v27 }
 0x444   :  { %4668 = vsyncpa [#allocation3], 1 }
 0x445   :  { %4669 = vsyncpa [#allocation5], 1 }
 0x446   :  { %4670 = vsyncpa [#allocation8], 1 }

</bundles_post_ra>
